<compile_context>
chip_gen: v6e
topology: v6e:2x2x1
jax: 0.10.0
libtpu: 0.0.40
codegen_flags: <defaults>
</compile_context>

<pallas_src>
import functools
import math

import jax
import jax.numpy as jnp
from jax.experimental import pallas as pl
from jax.experimental.pallas import tpu as pltpu


_LN_EPS = 1e-5


def _layer_norm_f32(x, gamma, beta):
    x = x.astype(jnp.float32)
    mean = jnp.mean(x, axis=-1, keepdims=True)
    var = jnp.mean(jnp.square(x - mean), axis=-1, keepdims=True)
    return (x - mean) * jax.lax.rsqrt(var + _LN_EPS) * gamma + beta


def _gelu_tanh(x):
    c = 0.7978845608028654  # sqrt(2 / pi)
    return 0.5 * x * (1.0 + jnp.tanh(c * (x + 0.044715 * x * x * x)))


def _transformer_layer_kernel(
    # inputs
    x_ref,              # (1, S, D)   bf16 (full sequence of current batch)
    ln1_g, ln1_b,       # (1, D)      f32
    wq_ref, bq_ref,     # (D, D) bf16, (1, D) f32
    wkv_ref, bkv_ref,   # (D, 2D) bf16, (1, 2D) f32
    wo_ref, bo_ref,     # (D, D) bf16, (1, D) f32
    ln2_g, ln2_b,       # (1, D)      f32
    w1_ref, b1_ref,     # (D, tF) bf16, (1, tF) f32
    w2_ref,             # (tF, D) bf16
    b2_ref,             # (1, D)  f32
    # outputs
    out_ref,            # (1, tS, D)  out dtype
    # scratch (persist across grid steps; refreshed per batch)
    k_sc,               # (H, S, hd) bf16   head-major K, once per batch
    v_sc,               # (H, S, hd) bf16   head-major V, once per batch
    xn2_sc,             # (S, D)     bf16   LN2 activations, once per batch
    acc_sc,             # (S, D)     f32    residual2 + FFN accumulator
    *,
    num_heads,
):
    fi = pl.program_id(1)              # FFN hidden block (f axis)
    qi = pl.program_id(2)              # query tile (innermost)
    nf = pl.num_programs(1)

    S = x_ref.shape[1]
    D = wq_ref.shape[0]
    tS = out_ref.shape[1]
    H = num_heads
    hd = D // H
    scale = 1.0 / math.sqrt(hd)

    q_start = qi * tS
    if tS % 16 == 0:
        q_start = pl.multiple_of(q_start, 16)
    elif tS % 8 == 0:
        q_start = pl.multiple_of(q_start, 8)

    # ---- K/V for the whole sequence: ONCE per batch -------------------------
    @pl.when(jnp.logical_and(fi == 0, qi == 0))
    def _compute_kv():
        xn_all = _layer_norm_f32(x_ref[0], ln1_g[...], ln1_b[...])      # (S, D)
        kv2d = jnp.dot(xn_all.astype(jnp.bfloat16), wkv_ref[...],
                       preferred_element_type=jnp.float32) + bkv_ref[...]
        k = kv2d[:, :D].astype(jnp.bfloat16).reshape(S, H, hd)
        v = kv2d[:, D:].astype(jnp.bfloat16).reshape(S, H, hd)
        k_sc[...] = jnp.transpose(k, (1, 0, 2))                          # (H, S, hd)
        v_sc[...] = jnp.transpose(v, (1, 0, 2))

    # ---- Attention + residual + LN2: once per (batch, query-tile) -----------
    @pl.when(fi == 0)
    def _attention():
        x_q = x_ref[0, pl.ds(q_start, tS), :].astype(jnp.float32)        # (tS, D)
        xn_q = _layer_norm_f32(x_q, ln1_g[...], ln1_b[...])

        q2d = jnp.dot(xn_q.astype(jnp.bfloat16), wq_ref[...],
                      preferred_element_type=jnp.float32) + bq_ref[...]
        qh = (q2d * scale).astype(jnp.bfloat16).reshape(tS, H, hd)
        qh = jnp.transpose(qh, (1, 0, 2))                                # (H, tS, hd)

        # Head-batched softmax attention core (batch dim = H).
        scores = jnp.einsum("hqd,hkd->hqk", qh, k_sc[...],
                            preferred_element_type=jnp.float32)          # (H, tS, S)
        scores = scores - jnp.max(scores, axis=-1, keepdims=True)
        p = jnp.exp(scores)
        p = p / jnp.sum(p, axis=-1, keepdims=True)                       # exact divide
        pv = jnp.einsum("hqk,hkd->hqd", p.astype(jnp.bfloat16), v_sc[...],
                        preferred_element_type=jnp.float32)              # (H, tS, hd)
        attn = jnp.transpose(pv, (1, 0, 2)).reshape(tS, D)               # lane-dense

        attn_out = jnp.dot(attn.astype(jnp.bfloat16), wo_ref[...],
                           preferred_element_type=jnp.float32) + bo_ref[...]

        y = x_q + attn_out                                               # residual 1
        xn2_sc[pl.ds(q_start, tS), :] = _layer_norm_f32(
            y, ln2_g[...], ln2_b[...]).astype(jnp.bfloat16)
        acc_sc[pl.ds(q_start, tS), :] = y + b2_ref[...]                  # residual 2 + out bias

    # ---- FFN: one (D,tF)x(tF,D) block per grid step on the f axis -----------
    h1 = jnp.dot(xn2_sc[pl.ds(q_start, tS), :], w1_ref[...],
                 preferred_element_type=jnp.float32) + b1_ref[...]       # (tS, tF)
    h1 = _gelu_tanh(h1).astype(jnp.bfloat16)
    acc_sc[pl.ds(q_start, tS), :] += jnp.dot(
        h1, w2_ref[...], preferred_element_type=jnp.float32)

    @pl.when(fi == nf - 1)
    def _write_output():
        out_ref[0] = acc_sc[pl.ds(q_start, tS), :].astype(out_ref.dtype)


def _pick_tile(total, target, align):
    """Largest divisor of `total` that is a multiple of `align` and <= target, else full."""
    if total <= target:
        return total
    t = (target // align) * align
    while t >= align:
        if total % t == 0:
            return t
        t -= align
    return total


def _vmem_capacity_bytes():
    try:
        return int(pltpu.get_tpu_info().vmem_capacity_bytes)
    except Exception:
        return 64 * 1024 * 1024   # conservative fallback (v7x per-TC size)


def boring_transformer_layer(x, params, *, num_heads,
                             q_tile=256, f_tile=1024,
                             single_buffer_weights=True):
    """x: (B, S, D). params: dict of lane-dense 2-D weights (see init_params)."""
    B, S, D = x.shape
    F = params["w1"].shape[-1]
    assert D % num_heads == 0
    hd = D // num_heads

    tS = _pick_tile(S, q_tile, 16)     # align to bf16 (16,128) sublane tile
    tF = _pick_tile(F, f_tile, 128)
    nq = S // tS
    nf = F // tF
    grid = (B, nf, nq)                 # f outer, q inner -> w1/w2 fetched once per batch

    bf16, f32 = jnp.bfloat16, jnp.float32
    out_itemsize = jnp.dtype(x.dtype).itemsize

    # Halve x DMA + VMEM; LN statistics are still computed in f32 in-kernel.
    x_in = x.astype(bf16)

    # Pre-cast matmul weights to bf16 (native MXU dtype; halves DMA + VMEM).
    wq = params["wq"].astype(bf16)
    wkv = params["wkv"].astype(bf16)
    wo = params["wo"].astype(bf16)
    w1 = params["w1"].astype(bf16)
    w2 = params["w2"].astype(bf16)

    def resident(shape):
        index_map = lambda b, f, q, _s=shape: tuple(0 for _ in _s)
        if single_buffer_weights:
            # Constant-index blocks are only fetched once; single-buffer them
            # to halve their VMEM footprint.
            return pl.BlockSpec(shape, index_map, pipeline_mode=pl.Buffered(1))
        return pl.BlockSpec(shape, index_map)

    in_specs = [
        pl.BlockSpec((1, S, D), lambda b, f, q: (b, 0, 0)),   # x (full seq, per batch)
        resident((1, D)), resident((1, D)),                   # ln1 gamma / beta
        resident((D, D)), resident((1, D)),                   # wq, bq
        resident((D, 2 * D)), resident((1, 2 * D)),           # wkv, bkv
        resident((D, D)), resident((1, D)),                   # wo, bo
        resident((1, D)), resident((1, D)),                   # ln2 gamma / beta
        pl.BlockSpec((D, tF), lambda b, f, q: (0, f)),        # w1 block (streamed over f)
        pl.BlockSpec((1, tF), lambda b, f, q: (0, f)),        # b1 block
        pl.BlockSpec((tF, D), lambda b, f, q: (f, 0)),        # w2 block
        resident((1, D)),                                     # b2
    ]
    out_specs = pl.BlockSpec((1, tS, D), lambda b, f, q: (b, q, 0))

    scratch_shapes = [
        pltpu.VMEM((num_heads, S, hd), bf16),   # K, head-major, per batch
        pltpu.VMEM((num_heads, S, hd), bf16),   # V, head-major, per batch
        pltpu.VMEM((S, D), bf16),               # LN2 activations, per batch
        pltpu.VMEM((S, D), f32),                # residual + FFN accumulator
    ]

    # Rough VMEM footprint (blocks + scratch + live intermediates) -> scoped
    # limit with headroom, capped at ~80% of the generation's physical VMEM.
    hd_pad = hd if hd >= 128 else 128           # lane padding of head-major scratch
    nbuf_w = 1 if single_buffer_weights else 2
    est = (
        2 * S * D * 2                           # x block (bf16, double-buffered)
        + 2 * tS * D * out_itemsize             # out block
        + nbuf_w * 4 * D * D * 2                # wq + wkv + wo (bf16)
        + 2 * 2 * D * tF * 2                    # w1 + w2 blocks (bf16, 2 buffers)
        + 2 * num_heads * S * hd_pad * 2        # K/V scratch (lane-padded)
        + S * D * (2 + 4)                       # xn2 + acc scratch
        + S * 2 * D * 4 + S * D * 4             # kv2d + xn_all live (per batch)
        + 2 * num_heads * tS * S * 4            # scores + p live
        + 3 * tS * D * 4 + 2 * tS * tF * 4      # q/attn/y + h1 live
        + 32 * D * 4                            # small params
    )
    cap = int(_vmem_capacity_bytes() * 0.8)     # ~51 MiB v7x, ~102 MiB v5e/v6e
    vmem_limit = int(min(max(est * 5 // 4, 32 * 1024 * 1024), cap))

    # Cost model reflecting the *actual* traffic of this grid layout.
    flops = 2 * B * (
        S * D * D                  # Q projection
        + S * D * 2 * D            # K/V projection (once per batch)
        + 2 * S * S * D            # scores + PV
        + S * D * D                # output projection
        + 2 * S * D * F            # FFN
    )
    transcendentals = B * (num_heads * S * S + S * F)
    bytes_accessed = (
        x_in.size * 2                                   # x read once per batch (bf16)
        + B * nf * S * D * out_itemsize                 # output writebacks (incl. revisits)
        + (wq.size + wkv.size + wo.size) * 2            # resident weights, fetched once
        + B * (w1.size + w2.size) * 2                   # FFN weights streamed per batch
        + B * F * 4                                     # b1 per batch
        + 12 * D * 4                                    # biases / LN params
    )

    kernel = functools.partial(_transformer_layer_kernel, num_heads=num_heads)

    return pl.pallas_call(
        kernel,
        out_shape=jax.ShapeDtypeStruct((B, S, D), x.dtype),
        grid_spec=pltpu.PrefetchScalarGridSpec(
            num_scalar_prefetch=0,
            grid=grid,
            in_specs=in_specs,
            out_specs=out_specs,
            scratch_shapes=scratch_shapes,
        ),
        compiler_params=pltpu.CompilerParams(
            dimension_semantics=("parallel", "arbitrary", "arbitrary"),
            vmem_limit_bytes=vmem_limit,
        ),
        cost_estimate=pl.CostEstimate(
            flops=int(flops),
            transcendentals=int(transcendentals),
            bytes_accessed=int(bytes_accessed),
        ),
    )(
        x_in,
        params["ln1_g"], params["ln1_b"],
        wq, params["bq"],
        wkv, params["bkv"],
        wo, params["bo"],
        params["ln2_g"], params["ln2_b"],
        w1, params["b1"],
        w2, params["b2"],
    )


def init_params(key, d_model, num_heads, d_ff):
    D, F = d_model, d_ff
    del num_heads  # head split happens inside the kernel on the dense slabs
    ks = jax.random.split(key, 8)
    s = 0.02

    def nrm(k, shape):
        return jax.random.normal(k, shape, dtype=jnp.float32) * s

    wq = nrm(ks[0], (D, D))
    wk = nrm(ks[1], (D, D))
    wv = nrm(ks[2], (D, D))
    wo = nrm(ks[3], (D, D))
    bq = nrm(ks[4], (1, D))
    bk = jnp.zeros((1, D), jnp.float32)
    bv = nrm(ks[5], (1, D))
    bo = jnp.zeros((1, D), jnp.float32)

    return dict(
        ln1_g=jnp.ones((1, D), jnp.float32), ln1_b=jnp.zeros((1, D), jnp.float32),
        wq=wq, bq=bq,
        wkv=jnp.concatenate([wk, wv], axis=1),     # (D, 2D)
        bkv=jnp.concatenate([bk, bv], axis=1),     # (1, 2D)
        wo=wo, bo=bo,
        ln2_g=jnp.ones((1, D), jnp.float32), ln2_b=jnp.zeros((1, D), jnp.float32),
        w1=nrm(ks[6], (D, F)), b1=jnp.zeros((1, F), jnp.float32),
        w2=nrm(ks[7], (F, D)), b2=jnp.zeros((1, D), jnp.float32),
    )


def reference_forward(x, params, *, num_heads):
    """Pure-JAX f32 reference of the same forward pass (correctness check)."""
    B, S, D = x.shape
    H = num_heads
    hd = D // H

    def ln(v, g, b):
        m = jnp.mean(v, axis=-1, keepdims=True)
        var = jnp.mean(jnp.square(v - m), axis=-1, keepdims=True)
        return (v - m) * jax.lax.rsqrt(var + _LN_EPS) * g + b

    xn = ln(x, params["ln1_g"], params["ln1_b"])
    q = xn @ params["wq"] + params["bq"]
    kv = xn @ params["wkv"] + params["bkv"]
    k, v = kv[..., :D], kv[..., D:]

    def heads(t):
        return t.reshape(B, S, H, hd).transpose(0, 2, 1, 3)

    qh = heads(q) * (1.0 / math.sqrt(hd))
    kh, vh = heads(k), heads(v)
    scores = jnp.einsum("bhqd,bhkd->bhqk", qh, kh)
    p = jax.nn.softmax(scores, axis=-1)
    o = jnp.einsum("bhqk,bhkd->bhqd", p, vh).transpose(0, 2, 1, 3).reshape(B, S, D)
    y = x + o @ params["wo"] + params["bo"]

    yn = ln(y, params["ln2_g"], params["ln2_b"])
    ff = _gelu_tanh(yn @ params["w1"] + params["b1"]) @ params["w2"] + params["b2"]
    return y + ff


if __name__ == "__main__":
    B, S, D, H, F = 2, 8, 32, 4, 128

    key = jax.random.PRNGKey(0)
    kx, kp = jax.random.split(key)
    x = jax.random.normal(kx, (B, S, D), dtype=jnp.float32)
    params = init_params(kp, d_model=D, num_heads=H, d_ff=F)

    ref = reference_forward(x, params, num_heads=H)

    def _run(single_buffer):
        out = boring_transformer_layer(x, params, num_heads=H,
                                       single_buffer_weights=single_buffer)
        return jax.block_until_ready(out)

    try:
        out = _run(True)
        ok = bool(jnp.allclose(out, ref, rtol=3e-2, atol=3e-2))
    except Exception:
        out, ok = None, False
    if not ok:
        # TODO(synk): pl.Buffered(1) single-buffering of resident weights is not
        # accepted by every JAX/Mosaic version; fall back to default buffering.
        out = _run(False)
        ok = bool(jnp.allclose(out, ref, rtol=3e-2, atol=3e-2))

    assert out.shape == (B, S, D)
    assert ok, "Pallas kernel output does not match pure-JAX reference"
    print("KERNEL_OK")
</pallas_src>

<mosaic_0001>
module attributes {stable_mosaic.version = 11 : i64} {
  func.func @_transformer_layer_kernel(%arg0: i32, %arg1: i32, %arg2: i32, %arg3: memref<1x8x32xbf16, #tpu.memory_space<vmem>>, %arg4: memref<1x32xf32, #tpu.memory_space<vmem>>, %arg5: memref<1x32xf32, #tpu.memory_space<vmem>>, %arg6: memref<32x32xbf16, #tpu.memory_space<vmem>>, %arg7: memref<1x32xf32, #tpu.memory_space<vmem>>, %arg8: memref<32x64xbf16, #tpu.memory_space<vmem>>, %arg9: memref<1x64xf32, #tpu.memory_space<vmem>>, %arg10: memref<32x32xbf16, #tpu.memory_space<vmem>>, %arg11: memref<1x32xf32, #tpu.memory_space<vmem>>, %arg12: memref<1x32xf32, #tpu.memory_space<vmem>>, %arg13: memref<1x32xf32, #tpu.memory_space<vmem>>, %arg14: memref<32x128xbf16, #tpu.memory_space<vmem>>, %arg15: memref<1x128xf32, #tpu.memory_space<vmem>>, %arg16: memref<128x32xbf16, #tpu.memory_space<vmem>>, %arg17: memref<1x32xf32, #tpu.memory_space<vmem>>, %arg18: memref<1x8x32xf32, #tpu.memory_space<vmem>>, %arg19: memref<4x8x8xbf16, #tpu.memory_space<vmem>>, %arg20: memref<4x8x8xbf16, #tpu.memory_space<vmem>>, %arg21: memref<8x32xbf16, #tpu.memory_space<vmem>>, %arg22: memref<8x32xf32, #tpu.memory_space<vmem>>) attributes {dimension_semantics = [#tpu.dimension_semantics<parallel>, #tpu.dimension_semantics<arbitrary>, #tpu.dimension_semantics<arbitrary>], iteration_bounds = array<i64: 2, 1, 1>, scalar_prefetch = 0 : i64, scratch_operands = 4 : i64, tpu.core_type = #tpu.core_type<tc>, window_params = [{transform_indices = @transform_0, window_bounds = array<i64: 1, 8, 32>}, {pipeline_mode = #tpu.pipeline_mode<synchronous>, transform_indices = @transform_1, window_bounds = array<i64: 1, 32>}, {pipeline_mode = #tpu.pipeline_mode<synchronous>, transform_indices = @transform_2, window_bounds = array<i64: 1, 32>}, {pipeline_mode = #tpu.pipeline_mode<synchronous>, transform_indices = @transform_3, window_bounds = array<i64: 32, 32>}, {pipeline_mode = #tpu.pipeline_mode<synchronous>, transform_indices = @transform_4, window_bounds = array<i64: 1, 32>}, {pipeline_mode = #tpu.pipeline_mode<synchronous>, transform_indices = @transform_5, window_bounds = array<i64: 32, 64>}, {pipeline_mode = #tpu.pipeline_mode<synchronous>, transform_indices = @transform_6, window_bounds = array<i64: 1, 64>}, {pipeline_mode = #tpu.pipeline_mode<synchronous>, transform_indices = @transform_7, window_bounds = array<i64: 32, 32>}, {pipeline_mode = #tpu.pipeline_mode<synchronous>, transform_indices = @transform_8, window_bounds = array<i64: 1, 32>}, {pipeline_mode = #tpu.pipeline_mode<synchronous>, transform_indices = @transform_9, window_bounds = array<i64: 1, 32>}, {pipeline_mode = #tpu.pipeline_mode<synchronous>, transform_indices = @transform_10, window_bounds = array<i64: 1, 32>}, {transform_indices = @transform_11, window_bounds = array<i64: 32, 128>}, {transform_indices = @transform_12, window_bounds = array<i64: 1, 128>}, {transform_indices = @transform_13, window_bounds = array<i64: 128, 32>}, {pipeline_mode = #tpu.pipeline_mode<synchronous>, transform_indices = @transform_14, window_bounds = array<i64: 1, 32>}, {transform_indices = @transform_15, window_bounds = array<i64: 1, 8, 32>}]} {
    %c8_i32 = arith.constant 8 : i32
    %0 = arith.muli %arg2, %c8_i32 : i32
    %1 = tpu.assume_multiple %0, 8 : i32
    %c0_i32 = arith.constant 0 : i32
    %2 = arith.cmpi eq, %arg1, %c0_i32 : i32
    %c0_i32_0 = arith.constant 0 : i32
    %3 = arith.cmpi eq, %arg2, %c0_i32_0 : i32
    %4 = arith.andi %2, %3 : i1
    %5 = arith.extui %4 : i1 to i32
    %c0_i32_1 = arith.constant 0 : i32
    %6 = arith.cmpi ne, %5, %c0_i32_1 : i32
    scf.if %6 {
      %c0_19 = arith.constant 0 : index
      %c0_20 = arith.constant 0 : index
      %c0_21 = arith.constant 0 : index
      %41 = vector.load %arg3[%c0_19, %c0_20, %c0_21] : memref<1x8x32xbf16, #tpu.memory_space<vmem>>, vector<1x8x32xbf16>
      %42 = vector.shape_cast %41 : vector<1x8x32xbf16> to vector<8x32xbf16>
      %c0_22 = arith.constant 0 : index
      %c0_23 = arith.constant 0 : index
      %43 = vector.load %arg4[%c0_22, %c0_23] : memref<1x32xf32, #tpu.memory_space<vmem>>, vector<1x32xf32>
      %c0_24 = arith.constant 0 : index
      %c0_25 = arith.constant 0 : index
      %44 = vector.load %arg5[%c0_24, %c0_25] : memref<1x32xf32, #tpu.memory_space<vmem>>, vector<1x32xf32>
      %45 = arith.extf %42 : vector<8x32xbf16> to vector<8x32xf32>
      %cst_26 = arith.constant dense<0.000000e+00> : vector<8xf32>
      %46 = vector.multi_reduction <add>, %45, %cst_26 [1] : vector<8x32xf32> to vector<8xf32>
      %47 = vector.shape_cast %46 : vector<8xf32> to vector<8x1xf32>
      %cst_27 = arith.constant 3.200000e+01 : f32
      %48 = vector.broadcast %cst_27 : f32 to vector<8x1xf32>
      %49 = arith.divf %47, %48 : vector<8x1xf32>
      %50 = vector.broadcast %49 : vector<8x1xf32> to vector<8x32xf32>
      %51 = arith.subf %45, %50 : vector<8x32xf32>
      %52 = arith.mulf %51, %51 : vector<8x32xf32>
      %cst_28 = arith.constant dense<0.000000e+00> : vector<8xf32>
      %53 = vector.multi_reduction <add>, %52, %cst_28 [1] : vector<8x32xf32> to vector<8xf32>
      %54 = vector.shape_cast %53 : vector<8xf32> to vector<8x1xf32>
      %cst_29 = arith.constant 3.200000e+01 : f32
      %55 = vector.broadcast %cst_29 : f32 to vector<8x1xf32>
      %56 = arith.divf %54, %55 : vector<8x1xf32>
      %57 = vector.broadcast %49 : vector<8x1xf32> to vector<8x32xf32>
      %58 = arith.subf %45, %57 : vector<8x32xf32>
      %cst_30 = arith.constant 9.99999974E-6 : f32
      %59 = vector.broadcast %cst_30 : f32 to vector<8x1xf32>
      %60 = arith.addf %56, %59 : vector<8x1xf32>
      %61 = math.rsqrt %60 : vector<8x1xf32>
      %62 = vector.broadcast %61 : vector<8x1xf32> to vector<8x32xf32>
      %63 = arith.mulf %58, %62 : vector<8x32xf32>
      %64 = vector.broadcast %43 : vector<1x32xf32> to vector<8x32xf32>
      %65 = arith.mulf %63, %64 : vector<8x32xf32>
      %66 = vector.broadcast %44 : vector<1x32xf32> to vector<8x32xf32>
      %67 = arith.addf %65, %66 : vector<8x32xf32>
      %68 = arith.truncf %67 : vector<8x32xf32> to vector<8x32xbf16>
      %c0_31 = arith.constant 0 : index
      %c0_32 = arith.constant 0 : index
      %69 = vector.load %arg8[%c0_31, %c0_32] : memref<32x64xbf16, #tpu.memory_space<vmem>>, vector<32x64xbf16>
      %cst_33 = arith.constant dense<0.000000e+00> : vector<8x64xf32>
      %70 = tpu.matmul %68, %69, %cst_33 {dimension_numbers = #tpu.dot_dimension_numbers<[1], [0], [0], [1], [0, 0, 1, 1], [], []>} : vector<8x32xbf16>, vector<32x64xbf16>, vector<8x64xf32> -> vector<8x64xf32>
      %c0_34 = arith.constant 0 : index
      %c0_35 = arith.constant 0 : index
      %71 = vector.load %arg9[%c0_34, %c0_35] : memref<1x64xf32, #tpu.memory_space<vmem>>, vector<1x64xf32>
      %72 = vector.broadcast %71 : vector<1x64xf32> to vector<8x64xf32>
      %73 = arith.addf %70, %72 : vector<8x64xf32>
      %74 = vector.extract_strided_slice %73 {offsets = [0, 0], sizes = [8, 32], strides = [1, 1]} : vector<8x64xf32> to vector<8x32xf32>
      %75 = arith.truncf %74 : vector<8x32xf32> to vector<8x32xbf16>
      %76 = vector.shape_cast %75 : vector<8x32xbf16> to vector<8x4x8xbf16>
      %77 = vector.extract_strided_slice %73 {offsets = [0, 32], sizes = [8, 32], strides = [1, 1]} : vector<8x64xf32> to vector<8x32xf32>
      %78 = arith.truncf %77 : vector<8x32xf32> to vector<8x32xbf16>
      %79 = vector.shape_cast %78 : vector<8x32xbf16> to vector<8x4x8xbf16>
      %80 = tpu.transpose %76, [1, 0, 2] : vector<8x4x8xbf16> -> vector<4x8x8xbf16>
      %c0_36 = arith.constant 0 : index
      %c0_37 = arith.constant 0 : index
      %c0_38 = arith.constant 0 : index
      %81 = vector.load %arg19[%c0_36, %c0_37, %c0_38] : memref<4x8x8xbf16, #tpu.memory_space<vmem>>, vector<4x8x8xbf16>
      tpu.vector_store %arg19[%c0_36, %c0_37, %c0_38], %80 {strides = array<i32>} : memref<4x8x8xbf16, #tpu.memory_space<vmem>>, vector<4x8x8xbf16>,
      %82 = tpu.transpose %79, [1, 0, 2] : vector<8x4x8xbf16> -> vector<4x8x8xbf16>
      %c0_39 = arith.constant 0 : index
      %c0_40 = arith.constant 0 : index
      %c0_41 = arith.constant 0 : index
      %83 = vector.load %arg20[%c0_39, %c0_40, %c0_41] : memref<4x8x8xbf16, #tpu.memory_space<vmem>>, vector<4x8x8xbf16>
      tpu.vector_store %arg20[%c0_39, %c0_40, %c0_41], %82 {strides = array<i32>} : memref<4x8x8xbf16, #tpu.memory_space<vmem>>, vector<4x8x8xbf16>,
    } else {
    }
    %c0_i32_2 = arith.constant 0 : i32
    %7 = arith.cmpi eq, %arg1, %c0_i32_2 : i32
    %8 = arith.extui %7 : i1 to i32
    %c0_i32_3 = arith.constant 0 : i32
    %9 = arith.cmpi ne, %8, %c0_i32_3 : i32
    scf.if %9 {
      %c0_19 = arith.constant 0 : index
      %41 = arith.index_cast %1 : i32 to index
      %c0_20 = arith.constant 0 : index
      %42 = vector.load %arg3[%c0_19, %41, %c0_20] : memref<1x8x32xbf16, #tpu.memory_space<vmem>>, vector<1x8x32xbf16>
      %43 = vector.shape_cast %42 : vector<1x8x32xbf16> to vector<8x32xbf16>
      %44 = arith.extf %43 : vector<8x32xbf16> to vector<8x32xf32>
      %c0_21 = arith.constant 0 : index
      %c0_22 = arith.constant 0 : index
      %45 = vector.load %arg4[%c0_21, %c0_22] : memref<1x32xf32, #tpu.memory_space<vmem>>, vector<1x32xf32>
      %c0_23 = arith.constant 0 : index
      %c0_24 = arith.constant 0 : index
      %46 = vector.load %arg5[%c0_23, %c0_24] : memref<1x32xf32, #tpu.memory_space<vmem>>, vector<1x32xf32>
      %cst_25 = arith.constant dense<0.000000e+00> : vector<8xf32>
      %47 = vector.multi_reduction <add>, %44, %cst_25 [1] : vector<8x32xf32> to vector<8xf32>
      %48 = vector.shape_cast %47 : vector<8xf32> to vector<8x1xf32>
      %cst_26 = arith.constant 3.200000e+01 : f32
      %49 = vector.broadcast %cst_26 : f32 to vector<8x1xf32>
      %50 = arith.divf %48, %49 : vector<8x1xf32>
      %51 = vector.broadcast %50 : vector<8x1xf32> to vector<8x32xf32>
      %52 = arith.subf %44, %51 : vector<8x32xf32>
      %53 = arith.mulf %52, %52 : vector<8x32xf32>
      %cst_27 = arith.constant dense<0.000000e+00> : vector<8xf32>
      %54 = vector.multi_reduction <add>, %53, %cst_27 [1] : vector<8x32xf32> to vector<8xf32>
      %55 = vector.shape_cast %54 : vector<8xf32> to vector<8x1xf32>
      %cst_28 = arith.constant 3.200000e+01 : f32
      %56 = vector.broadcast %cst_28 : f32 to vector<8x1xf32>
      %57 = arith.divf %55, %56 : vector<8x1xf32>
      %58 = vector.broadcast %50 : vector<8x1xf32> to vector<8x32xf32>
      %59 = arith.subf %44, %58 : vector<8x32xf32>
      %cst_29 = arith.constant 9.99999974E-6 : f32
      %60 = vector.broadcast %cst_29 : f32 to vector<8x1xf32>
      %61 = arith.addf %57, %60 : vector<8x1xf32>
      %62 = math.rsqrt %61 : vector<8x1xf32>
      %63 = vector.broadcast %62 : vector<8x1xf32> to vector<8x32xf32>
      %64 = arith.mulf %59, %63 : vector<8x32xf32>
      %65 = vector.broadcast %45 : vector<1x32xf32> to vector<8x32xf32>
      %66 = arith.mulf %64, %65 : vector<8x32xf32>
      %67 = vector.broadcast %46 : vector<1x32xf32> to vector<8x32xf32>
      %68 = arith.addf %66, %67 : vector<8x32xf32>
      %69 = arith.truncf %68 : vector<8x32xf32> to vector<8x32xbf16>
      %c0_30 = arith.constant 0 : index
      %c0_31 = arith.constant 0 : index
      %70 = vector.load %arg6[%c0_30, %c0_31] : memref<32x32xbf16, #tpu.memory_space<vmem>>, vector<32x32xbf16>
      %cst_32 = arith.constant dense<0.000000e+00> : vector<8x32xf32>
      %71 = tpu.matmul %69, %70, %cst_32 {dimension_numbers = #tpu.dot_dimension_numbers<[1], [0], [0], [1], [0, 0, 1, 1], [], []>} : vector<8x32xbf16>, vector<32x32xbf16>, vector<8x32xf32> -> vector<8x32xf32>
      %c0_33 = arith.constant 0 : index
      %c0_34 = arith.constant 0 : index
      %72 = vector.load %arg7[%c0_33, %c0_34] : memref<1x32xf32, #tpu.memory_space<vmem>>, vector<1x32xf32>
      %73 = vector.broadcast %72 : vector<1x32xf32> to vector<8x32xf32>
      %74 = arith.addf %71, %73 : vector<8x32xf32>
      %cst_35 = arith.constant 0.353553385 : f32
      %75 = vector.broadcast %cst_35 : f32 to vector<8x32xf32>
      %76 = arith.mulf %74, %75 : vector<8x32xf32>
      %77 = arith.truncf %76 : vector<8x32xf32> to vector<8x32xbf16>
      %78 = vector.shape_cast %77 : vector<8x32xbf16> to vector<8x4x8xbf16>
      %79 = tpu.transpose %78, [1, 0, 2] : vector<8x4x8xbf16> -> vector<4x8x8xbf16>
      %c0_36 = arith.constant 0 : index
      %c0_37 = arith.constant 0 : index
      %c0_38 = arith.constant 0 : index
      %80 = vector.load %arg19[%c0_36, %c0_37, %c0_38] : memref<4x8x8xbf16, #tpu.memory_space<vmem>>, vector<4x8x8xbf16>
      "tpu.trace_start"() <{level = 10 : i32, message = "hqd,hkd->hqk"}> : () -> ()
      %cst_39 = arith.constant dense<0.000000e+00> : vector<4x8x8xf32>
      %81 = tpu.matmul %79, %80, %cst_39 {dimension_numbers = #tpu.dot_dimension_numbers<[2], [2], [1], [1], [0, 0, 0, 1, 1, 1], [0], [0]>} : vector<4x8x8xbf16>, vector<4x8x8xbf16>, vector<4x8x8xf32> -> vector<4x8x8xf32>
      "tpu.trace_stop"() : () -> ()
      %cst_40 = arith.constant dense<0xFF800000> : vector<4x8xf32>
      %82 = vector.multi_reduction <maximumf>, %81, %cst_40 [2] : vector<4x8x8xf32> to vector<4x8xf32>
      %83 = vector.shape_cast %82 : vector<4x8xf32> to vector<4x8x1xf32>
      %84 = vector.broadcast %83 : vector<4x8x1xf32> to vector<4x8x8xf32>
      %85 = arith.subf %81, %84 : vector<4x8x8xf32>
      %86 = math.exp %85 : vector<4x8x8xf32>
      %cst_41 = arith.constant dense<0.000000e+00> : vector<4x8xf32>
      %87 = vector.multi_reduction <add>, %86, %cst_41 [2] : vector<4x8x8xf32> to vector<4x8xf32>
      %88 = vector.shape_cast %87 : vector<4x8xf32> to vector<4x8x1xf32>
      %89 = vector.broadcast %88 : vector<4x8x1xf32> to vector<4x8x8xf32>
      %90 = arith.divf %86, %89 : vector<4x8x8xf32>
      %91 = arith.truncf %90 : vector<4x8x8xf32> to vector<4x8x8xbf16>
      %c0_42 = arith.constant 0 : index
      %c0_43 = arith.constant 0 : index
      %c0_44 = arith.constant 0 : index
      %92 = vector.load %arg20[%c0_42, %c0_43, %c0_44] : memref<4x8x8xbf16, #tpu.memory_space<vmem>>, vector<4x8x8xbf16>
      "tpu.trace_start"() <{level = 10 : i32, message = "hqk,hkd->hqd"}> : () -> ()
      %cst_45 = arith.constant dense<0.000000e+00> : vector<4x8x8xf32>
      %93 = tpu.matmul %91, %92, %cst_45 {dimension_numbers = #tpu.dot_dimension_numbers<[2], [1], [1], [2], [0, 0, 0, 1, 1, 2], [0], [0]>} : vector<4x8x8xbf16>, vector<4x8x8xbf16>, vector<4x8x8xf32> -> vector<4x8x8xf32>
      "tpu.trace_stop"() : () -> ()
      %94 = tpu.transpose %93, [1, 0, 2] : vector<4x8x8xf32> -> vector<8x4x8xf32>
      %95 = vector.shape_cast %94 : vector<8x4x8xf32> to vector<8x32xf32>
      %96 = arith.truncf %95 : vector<8x32xf32> to vector<8x32xbf16>
      %c0_46 = arith.constant 0 : index
      %c0_47 = arith.constant 0 : index
      %97 = vector.load %arg10[%c0_46, %c0_47] : memref<32x32xbf16, #tpu.memory_space<vmem>>, vector<32x32xbf16>
      %cst_48 = arith.constant dense<0.000000e+00> : vector<8x32xf32>
      %98 = tpu.matmul %96, %97, %cst_48 {dimension_numbers = #tpu.dot_dimension_numbers<[1], [0], [0], [1], [0, 0, 1, 1], [], []>} : vector<8x32xbf16>, vector<32x32xbf16>, vector<8x32xf32> -> vector<8x32xf32>
      %c0_49 = arith.constant 0 : index
      %c0_50 = arith.constant 0 : index
      %99 = vector.load %arg11[%c0_49, %c0_50] : memref<1x32xf32, #tpu.memory_space<vmem>>, vector<1x32xf32>
      %100 = vector.broadcast %99 : vector<1x32xf32> to vector<8x32xf32>
      %101 = arith.addf %98, %100 : vector<8x32xf32>
      %102 = arith.addf %44, %101 : vector<8x32xf32>
      %c0_51 = arith.constant 0 : index
      %c0_52 = arith.constant 0 : index
      %103 = vector.load %arg12[%c0_51, %c0_52] : memref<1x32xf32, #tpu.memory_space<vmem>>, vector<1x32xf32>
      %c0_53 = arith.constant 0 : index
      %c0_54 = arith.constant 0 : index
      %104 = vector.load %arg13[%c0_53, %c0_54] : memref<1x32xf32, #tpu.memory_space<vmem>>, vector<1x32xf32>
      %cst_55 = arith.constant dense<0.000000e+00> : vector<8xf32>
      %105 = vector.multi_reduction <add>, %102, %cst_55 [1] : vector<8x32xf32> to vector<8xf32>
      %106 = vector.shape_cast %105 : vector<8xf32> to vector<8x1xf32>
      %cst_56 = arith.constant 3.200000e+01 : f32
      %107 = vector.broadcast %cst_56 : f32 to vector<8x1xf32>
      %108 = arith.divf %106, %107 : vector<8x1xf32>
      %109 = vector.broadcast %108 : vector<8x1xf32> to vector<8x32xf32>
      %110 = arith.subf %102, %109 : vector<8x32xf32>
      %111 = arith.mulf %110, %110 : vector<8x32xf32>
      %cst_57 = arith.constant dense<0.000000e+00> : vector<8xf32>
      %112 = vector.multi_reduction <add>, %111, %cst_57 [1] : vector<8x32xf32> to vector<8xf32>
      %113 = vector.shape_cast %112 : vector<8xf32> to vector<8x1xf32>
      %cst_58 = arith.constant 3.200000e+01 : f32
      %114 = vector.broadcast %cst_58 : f32 to vector<8x1xf32>
      %115 = arith.divf %113, %114 : vector<8x1xf32>
      %116 = vector.broadcast %108 : vector<8x1xf32> to vector<8x32xf32>
      %117 = arith.subf %102, %116 : vector<8x32xf32>
      %cst_59 = arith.constant 9.99999974E-6 : f32
      %118 = vector.broadcast %cst_59 : f32 to vector<8x1xf32>
      %119 = arith.addf %115, %118 : vector<8x1xf32>
      %120 = math.rsqrt %119 : vector<8x1xf32>
      %121 = vector.broadcast %120 : vector<8x1xf32> to vector<8x32xf32>
      %122 = arith.mulf %117, %121 : vector<8x32xf32>
      %123 = vector.broadcast %103 : vector<1x32xf32> to vector<8x32xf32>
      %124 = arith.mulf %122, %123 : vector<8x32xf32>
      %125 = vector.broadcast %104 : vector<1x32xf32> to vector<8x32xf32>
      %126 = arith.addf %124, %125 : vector<8x32xf32>
      %127 = arith.truncf %126 : vector<8x32xf32> to vector<8x32xbf16>
      %128 = arith.index_cast %1 : i32 to index
      %c0_60 = arith.constant 0 : index
      %129 = vector.load %arg21[%128, %c0_60] : memref<8x32xbf16, #tpu.memory_space<vmem>>, vector<8x32xbf16>
      tpu.vector_store %arg21[%128, %c0_60], %127 {strides = array<i32>} : memref<8x32xbf16, #tpu.memory_space<vmem>>, vector<8x32xbf16>,
      %c0_61 = arith.constant 0 : index
      %c0_62 = arith.constant 0 : index
      %130 = vector.load %arg17[%c0_61, %c0_62] : memref<1x32xf32, #tpu.memory_space<vmem>>, vector<1x32xf32>
      %131 = vector.broadcast %130 : vector<1x32xf32> to vector<8x32xf32>
      %132 = arith.addf %102, %131 : vector<8x32xf32>
      %133 = arith.index_cast %1 : i32 to index
      %c0_63 = arith.constant 0 : index
      %134 = vector.load %arg22[%133, %c0_63] : memref<8x32xf32, #tpu.memory_space<vmem>>, vector<8x32xf32>
      tpu.vector_store %arg22[%133, %c0_63], %132 {strides = array<i32>} : memref<8x32xf32, #tpu.memory_space<vmem>>, vector<8x32xf32>,
    } else {
    }
    %10 = arith.index_cast %1 : i32 to index
    %c0 = arith.constant 0 : index
    %11 = vector.load %arg21[%10, %c0] : memref<8x32xbf16, #tpu.memory_space<vmem>>, vector<8x32xbf16>
    %c0_4 = arith.constant 0 : index
    %c0_5 = arith.constant 0 : index
    %12 = vector.load %arg14[%c0_4, %c0_5] : memref<32x128xbf16, #tpu.memory_space<vmem>>, vector<32x128xbf16>
    %cst = arith.constant dense<0.000000e+00> : vector<8x128xf32>
    %13 = tpu.matmul %11, %12, %cst {dimension_numbers = #tpu.dot_dimension_numbers<[1], [0], [0], [1], [0, 0, 1, 1], [], []>} : vector<8x32xbf16>, vector<32x128xbf16>, vector<8x128xf32> -> vector<8x128xf32>
    %c0_6 = arith.constant 0 : index
    %c0_7 = arith.constant 0 : index
    %14 = vector.load %arg15[%c0_6, %c0_7] : memref<1x128xf32, #tpu.memory_space<vmem>>, vector<1x128xf32>
    %15 = vector.broadcast %14 : vector<1x128xf32> to vector<8x128xf32>
    %16 = arith.addf %13, %15 : vector<8x128xf32>
    %cst_8 = arith.constant 5.000000e-01 : f32
    %17 = vector.broadcast %cst_8 : f32 to vector<8x128xf32>
    %18 = arith.mulf %17, %16 : vector<8x128xf32>
    %cst_9 = arith.constant 4.471500e-02 : f32
    %19 = vector.broadcast %cst_9 : f32 to vector<8x128xf32>
    %20 = arith.mulf %19, %16 : vector<8x128xf32>
    %21 = arith.mulf %20, %16 : vector<8x128xf32>
    %22 = arith.mulf %21, %16 : vector<8x128xf32>
    %23 = arith.addf %16, %22 : vector<8x128xf32>
    %cst_10 = arith.constant 0.797884583 : f32
    %24 = vector.broadcast %cst_10 : f32 to vector<8x128xf32>
    %25 = arith.mulf %24, %23 : vector<8x128xf32>
    %26 = math.tanh %25 : vector<8x128xf32>
    %cst_11 = arith.constant 1.000000e+00 : f32
    %27 = vector.broadcast %cst_11 : f32 to vector<8x128xf32>
    %28 = arith.addf %27, %26 : vector<8x128xf32>
    %29 = arith.mulf %18, %28 : vector<8x128xf32>
    %30 = arith.truncf %29 : vector<8x128xf32> to vector<8x128xbf16>
    %31 = arith.index_cast %1 : i32 to index
    %c0_12 = arith.constant 0 : index
    %32 = vector.load %arg22[%31, %c0_12] : memref<8x32xf32, #tpu.memory_space<vmem>>, vector<8x32xf32>
    %c0_13 = arith.constant 0 : index
    %c0_14 = arith.constant 0 : index
    %33 = vector.load %arg16[%c0_13, %c0_14] : memref<128x32xbf16, #tpu.memory_space<vmem>>, vector<128x32xbf16>
    %cst_15 = arith.constant dense<0.000000e+00> : vector<8x32xf32>
    %34 = tpu.matmul %30, %33, %cst_15 {dimension_numbers = #tpu.dot_dimension_numbers<[1], [0], [0], [1], [0, 0, 1, 1], [], []>} : vector<8x128xbf16>, vector<128x32xbf16>, vector<8x32xf32> -> vector<8x32xf32>
    %35 = arith.addf %32, %34 : vector<8x32xf32>
    %36 = arith.index_cast %1 : i32 to index
    %c0_16 = arith.constant 0 : index
    %37 = vector.load %arg22[%36, %c0_16] : memref<8x32xf32, #tpu.memory_space<vmem>>, vector<8x32xf32>
    tpu.vector_store %arg22[%36, %c0_16], %35 {strides = array<i32>} : memref<8x32xf32, #tpu.memory_space<vmem>>, vector<8x32xf32>,
    %c0_i32_17 = arith.constant 0 : i32
    %38 = arith.cmpi eq, %arg1, %c0_i32_17 : i32
    %39 = arith.extui %38 : i1 to i32
    %c0_i32_18 = arith.constant 0 : i32
    %40 = arith.cmpi ne, %39, %c0_i32_18 : i32
    scf.if %40 {
      %41 = arith.index_cast %1 : i32 to index
      %c0_19 = arith.constant 0 : index
      %42 = vector.load %arg22[%41, %c0_19] : memref<8x32xf32, #tpu.memory_space<vmem>>, vector<8x32xf32>
      %c0_20 = arith.constant 0 : index
      %c0_21 = arith.constant 0 : index
      %c0_22 = arith.constant 0 : index
      %43 = vector.load %arg18[%c0_20, %c0_21, %c0_22] : memref<1x8x32xf32, #tpu.memory_space<vmem>>, vector<1x8x32xf32>
      %44 = vector.shape_cast %43 : vector<1x8x32xf32> to vector<8x32xf32>
      %45 = vector.shape_cast %42 : vector<8x32xf32> to vector<1x8x32xf32>
      tpu.vector_store %arg18[%c0_20, %c0_21, %c0_22], %45 {strides = array<i32>} : memref<1x8x32xf32, #tpu.memory_space<vmem>>, vector<1x8x32xf32>,
    } else {
    }
    return
  }
  func.func @transform_0(%arg0: i32, %arg1: i32, %arg2: i32) -> (i32, i32, i32) {
    %c0_i32 = arith.constant 0 : i32
    %c0_i32_0 = arith.constant 0 : i32
    %c0_i32_1 = arith.constant 0 : i32
    return %arg0, %c0_i32, %c0_i32_0 : i32, i32, i32
  }
  func.func @transform_1(%arg0: i32, %arg1: i32, %arg2: i32) -> (i32, i32) {
    %c0_i32 = arith.constant 0 : i32
    %c0_i32_0 = arith.constant 0 : i32
    %c0_i32_1 = arith.constant 0 : i32
    return %c0_i32, %c0_i32_0 : i32, i32
  }
  func.func @transform_2(%arg0: i32, %arg1: i32, %arg2: i32) -> (i32, i32) {
    %c0_i32 = arith.constant 0 : i32
    %c0_i32_0 = arith.constant 0 : i32
    %c0_i32_1 = arith.constant 0 : i32
    return %c0_i32, %c0_i32_0 : i32, i32
  }
  func.func @transform_3(%arg0: i32, %arg1: i32, %arg2: i32) -> (i32, i32) {
    %c0_i32 = arith.constant 0 : i32
    %c0_i32_0 = arith.constant 0 : i32
    %c0_i32_1 = arith.constant 0 : i32
    return %c0_i32, %c0_i32_0 : i32, i32
  }
  func.func @transform_4(%arg0: i32, %arg1: i32, %arg2: i32) -> (i32, i32) {
    %c0_i32 = arith.constant 0 : i32
    %c0_i32_0 = arith.constant 0 : i32
    %c0_i32_1 = arith.constant 0 : i32
    return %c0_i32, %c0_i32_0 : i32, i32
  }
  func.func @transform_5(%arg0: i32, %arg1: i32, %arg2: i32) -> (i32, i32) {
    %c0_i32 = arith.constant 0 : i32
    %c0_i32_0 = arith.constant 0 : i32
    %c0_i32_1 = arith.constant 0 : i32
    return %c0_i32, %c0_i32_0 : i32, i32
  }
  func.func @transform_6(%arg0: i32, %arg1: i32, %arg2: i32) -> (i32, i32) {
    %c0_i32 = arith.constant 0 : i32
    %c0_i32_0 = arith.constant 0 : i32
    %c0_i32_1 = arith.constant 0 : i32
    return %c0_i32, %c0_i32_0 : i32, i32
  }
  func.func @transform_7(%arg0: i32, %arg1: i32, %arg2: i32) -> (i32, i32) {
    %c0_i32 = arith.constant 0 : i32
    %c0_i32_0 = arith.constant 0 : i32
    %c0_i32_1 = arith.constant 0 : i32
    return %c0_i32, %c0_i32_0 : i32, i32
  }
  func.func @transform_8(%arg0: i32, %arg1: i32, %arg2: i32) -> (i32, i32) {
    %c0_i32 = arith.constant 0 : i32
    %c0_i32_0 = arith.constant 0 : i32
    %c0_i32_1 = arith.constant 0 : i32
    return %c0_i32, %c0_i32_0 : i32, i32
  }
  func.func @transform_9(%arg0: i32, %arg1: i32, %arg2: i32) -> (i32, i32) {
    %c0_i32 = arith.constant 0 : i32
    %c0_i32_0 = arith.constant 0 : i32
    %c0_i32_1 = arith.constant 0 : i32
    return %c0_i32, %c0_i32_0 : i32, i32
  }
  func.func @transform_10(%arg0: i32, %arg1: i32, %arg2: i32) -> (i32, i32) {
    %c0_i32 = arith.constant 0 : i32
    %c0_i32_0 = arith.constant 0 : i32
    %c0_i32_1 = arith.constant 0 : i32
    return %c0_i32, %c0_i32_0 : i32, i32
  }
  func.func @transform_11(%arg0: i32, %arg1: i32, %arg2: i32) -> (i32, i32) {
    %c0_i32 = arith.constant 0 : i32
    %c0_i32_0 = arith.constant 0 : i32
    return %c0_i32, %arg1 : i32, i32
  }
  func.func @transform_12(%arg0: i32, %arg1: i32, %arg2: i32) -> (i32, i32) {
    %c0_i32 = arith.constant 0 : i32
    %c0_i32_0 = arith.constant 0 : i32
    return %c0_i32, %arg1 : i32, i32
  }
  func.func @transform_13(%arg0: i32, %arg1: i32, %arg2: i32) -> (i32, i32) {
    %c0_i32 = arith.constant 0 : i32
    %c0_i32_0 = arith.constant 0 : i32
    return %arg1, %c0_i32 : i32, i32
  }
  func.func @transform_14(%arg0: i32, %arg1: i32, %arg2: i32) -> (i32, i32) {
    %c0_i32 = arith.constant 0 : i32
    %c0_i32_0 = arith.constant 0 : i32
    %c0_i32_1 = arith.constant 0 : i32
    return %c0_i32, %c0_i32_0 : i32, i32
  }
  func.func @transform_15(%arg0: i32, %arg1: i32, %arg2: i32) -> (i32, i32, i32) {
    %c0_i32 = arith.constant 0 : i32
    %c0_i32_0 = arith.constant 0 : i32
    return %arg0, %arg2, %c0_i32 : i32, i32, i32
  }
}

module attributes {stable_mosaic.version = 11 : i64} {
  func.func @_transformer_layer_kernel(%arg0: i32, %arg1: i32, %arg2: i32, %arg3: memref<1x8x32xbf16, #tpu.memory_space<vmem>>, %arg4: memref<1x32xf32, #tpu.memory_space<vmem>>, %arg5: memref<1x32xf32, #tpu.memory_space<vmem>>, %arg6: memref<32x32xbf16, #tpu.memory_space<vmem>>, %arg7: memref<1x32xf32, #tpu.memory_space<vmem>>, %arg8: memref<32x64xbf16, #tpu.memory_space<vmem>>, %arg9: memref<1x64xf32, #tpu.memory_space<vmem>>, %arg10: memref<32x32xbf16, #tpu.memory_space<vmem>>, %arg11: memref<1x32xf32, #tpu.memory_space<vmem>>, %arg12: memref<1x32xf32, #tpu.memory_space<vmem>>, %arg13: memref<1x32xf32, #tpu.memory_space<vmem>>, %arg14: memref<32x128xbf16, #tpu.memory_space<vmem>>, %arg15: memref<1x128xf32, #tpu.memory_space<vmem>>, %arg16: memref<128x32xbf16, #tpu.memory_space<vmem>>, %arg17: memref<1x32xf32, #tpu.memory_space<vmem>>, %arg18: memref<1x8x32xf32, #tpu.memory_space<vmem>>, %arg19: memref<4x8x8xbf16, #tpu.memory_space<vmem>>, %arg20: memref<4x8x8xbf16, #tpu.memory_space<vmem>>, %arg21: memref<8x32xbf16, #tpu.memory_space<vmem>>, %arg22: memref<8x32xf32, #tpu.memory_space<vmem>>) attributes {dimension_semantics = [#tpu.dimension_semantics<parallel>, #tpu.dimension_semantics<arbitrary>, #tpu.dimension_semantics<arbitrary>], iteration_bounds = array<i64: 2, 1, 1>, scalar_prefetch = 0 : i64, scratch_operands = 4 : i64, tpu.core_type = #tpu.core_type<tc>, window_params = [{transform_indices = @transform_0, window_bounds = array<i64: 1, 8, 32>}, {pipeline_mode = #tpu.pipeline_mode<synchronous>, transform_indices = @transform_1, window_bounds = array<i64: 1, 32>}, {pipeline_mode = #tpu.pipeline_mode<synchronous>, transform_indices = @transform_2, window_bounds = array<i64: 1, 32>}, {pipeline_mode = #tpu.pipeline_mode<synchronous>, transform_indices = @transform_3, window_bounds = array<i64: 32, 32>}, {pipeline_mode = #tpu.pipeline_mode<synchronous>, transform_indices = @transform_4, window_bounds = array<i64: 1, 32>}, {pipeline_mode = #tpu.pipeline_mode<synchronous>, transform_indices = @transform_5, window_bounds = array<i64: 32, 64>}, {pipeline_mode = #tpu.pipeline_mode<synchronous>, transform_indices = @transform_6, window_bounds = array<i64: 1, 64>}, {pipeline_mode = #tpu.pipeline_mode<synchronous>, transform_indices = @transform_7, window_bounds = array<i64: 32, 32>}, {pipeline_mode = #tpu.pipeline_mode<synchronous>, transform_indices = @transform_8, window_bounds = array<i64: 1, 32>}, {pipeline_mode = #tpu.pipeline_mode<synchronous>, transform_indices = @transform_9, window_bounds = array<i64: 1, 32>}, {pipeline_mode = #tpu.pipeline_mode<synchronous>, transform_indices = @transform_10, window_bounds = array<i64: 1, 32>}, {transform_indices = @transform_11, window_bounds = array<i64: 32, 128>}, {transform_indices = @transform_12, window_bounds = array<i64: 1, 128>}, {transform_indices = @transform_13, window_bounds = array<i64: 128, 32>}, {pipeline_mode = #tpu.pipeline_mode<synchronous>, transform_indices = @transform_14, window_bounds = array<i64: 1, 32>}, {transform_indices = @transform_15, window_bounds = array<i64: 1, 8, 32>}]} {
    %c8_i32 = arith.constant 8 : i32
    %0 = arith.muli %arg2, %c8_i32 : i32
    %1 = tpu.assume_multiple %0, 8 : i32
    %c0_i32 = arith.constant 0 : i32
    %2 = arith.cmpi eq, %arg1, %c0_i32 : i32
    %c0_i32_0 = arith.constant 0 : i32
    %3 = arith.cmpi eq, %arg2, %c0_i32_0 : i32
    %4 = arith.andi %2, %3 : i1
    %5 = arith.extui %4 : i1 to i32
    %c0_i32_1 = arith.constant 0 : i32
    %6 = arith.cmpi ne, %5, %c0_i32_1 : i32
    scf.if %6 {
      %c0_19 = arith.constant 0 : index
      %c0_20 = arith.constant 0 : index
      %c0_21 = arith.constant 0 : index
      %41 = vector.load %arg3[%c0_19, %c0_20, %c0_21] : memref<1x8x32xbf16, #tpu.memory_space<vmem>>, vector<1x8x32xbf16>
      %42 = vector.shape_cast %41 : vector<1x8x32xbf16> to vector<8x32xbf16>
      %c0_22 = arith.constant 0 : index
      %c0_23 = arith.constant 0 : index
      %43 = vector.load %arg4[%c0_22, %c0_23] : memref<1x32xf32, #tpu.memory_space<vmem>>, vector<1x32xf32>
      %c0_24 = arith.constant 0 : index
      %c0_25 = arith.constant 0 : index
      %44 = vector.load %arg5[%c0_24, %c0_25] : memref<1x32xf32, #tpu.memory_space<vmem>>, vector<1x32xf32>
      %45 = arith.extf %42 : vector<8x32xbf16> to vector<8x32xf32>
      %cst_26 = arith.constant dense<0.000000e+00> : vector<8xf32>
      %46 = vector.multi_reduction <add>, %45, %cst_26 [1] : vector<8x32xf32> to vector<8xf32>
      %47 = vector.shape_cast %46 : vector<8xf32> to vector<8x1xf32>
      %cst_27 = arith.constant 3.200000e+01 : f32
      %48 = vector.broadcast %cst_27 : f32 to vector<8x1xf32>
      %49 = arith.divf %47, %48 : vector<8x1xf32>
      %50 = vector.broadcast %49 : vector<8x1xf32> to vector<8x32xf32>
      %51 = arith.subf %45, %50 : vector<8x32xf32>
      %52 = arith.mulf %51, %51 : vector<8x32xf32>
      %cst_28 = arith.constant dense<0.000000e+00> : vector<8xf32>
      %53 = vector.multi_reduction <add>, %52, %cst_28 [1] : vector<8x32xf32> to vector<8xf32>
      %54 = vector.shape_cast %53 : vector<8xf32> to vector<8x1xf32>
      %cst_29 = arith.constant 3.200000e+01 : f32
      %55 = vector.broadcast %cst_29 : f32 to vector<8x1xf32>
      %56 = arith.divf %54, %55 : vector<8x1xf32>
      %57 = vector.broadcast %49 : vector<8x1xf32> to vector<8x32xf32>
      %58 = arith.subf %45, %57 : vector<8x32xf32>
      %cst_30 = arith.constant 9.99999974E-6 : f32
      %59 = vector.broadcast %cst_30 : f32 to vector<8x1xf32>
      %60 = arith.addf %56, %59 : vector<8x1xf32>
      %61 = math.rsqrt %60 : vector<8x1xf32>
      %62 = vector.broadcast %61 : vector<8x1xf32> to vector<8x32xf32>
      %63 = arith.mulf %58, %62 : vector<8x32xf32>
      %64 = vector.broadcast %43 : vector<1x32xf32> to vector<8x32xf32>
      %65 = arith.mulf %63, %64 : vector<8x32xf32>
      %66 = vector.broadcast %44 : vector<1x32xf32> to vector<8x32xf32>
      %67 = arith.addf %65, %66 : vector<8x32xf32>
      %68 = arith.truncf %67 : vector<8x32xf32> to vector<8x32xbf16>
      %c0_31 = arith.constant 0 : index
      %c0_32 = arith.constant 0 : index
      %69 = vector.load %arg8[%c0_31, %c0_32] : memref<32x64xbf16, #tpu.memory_space<vmem>>, vector<32x64xbf16>
      %cst_33 = arith.constant dense<0.000000e+00> : vector<8x64xf32>
      %70 = tpu.matmul %68, %69, %cst_33 {dimension_numbers = #tpu.dot_dimension_numbers<[1], [0], [0], [1], [0, 0, 1, 1], [], []>} : vector<8x32xbf16>, vector<32x64xbf16>, vector<8x64xf32> -> vector<8x64xf32>
      %c0_34 = arith.constant 0 : index
      %c0_35 = arith.constant 0 : index
      %71 = vector.load %arg9[%c0_34, %c0_35] : memref<1x64xf32, #tpu.memory_space<vmem>>, vector<1x64xf32>
      %72 = vector.broadcast %71 : vector<1x64xf32> to vector<8x64xf32>
      %73 = arith.addf %70, %72 : vector<8x64xf32>
      %74 = vector.extract_strided_slice %73 {offsets = [0, 0], sizes = [8, 32], strides = [1, 1]} : vector<8x64xf32> to vector<8x32xf32>
      %75 = arith.truncf %74 : vector<8x32xf32> to vector<8x32xbf16>
      %76 = vector.shape_cast %75 : vector<8x32xbf16> to vector<8x4x8xbf16>
      %77 = vector.extract_strided_slice %73 {offsets = [0, 32], sizes = [8, 32], strides = [1, 1]} : vector<8x64xf32> to vector<8x32xf32>
      %78 = arith.truncf %77 : vector<8x32xf32> to vector<8x32xbf16>
      %79 = vector.shape_cast %78 : vector<8x32xbf16> to vector<8x4x8xbf16>
      %80 = tpu.transpose %76, [1, 0, 2] : vector<8x4x8xbf16> -> vector<4x8x8xbf16>
      %c0_36 = arith.constant 0 : index
      %c0_37 = arith.constant 0 : index
      %c0_38 = arith.constant 0 : index
      %81 = vector.load %arg19[%c0_36, %c0_37, %c0_38] : memref<4x8x8xbf16, #tpu.memory_space<vmem>>, vector<4x8x8xbf16>
      tpu.vector_store %arg19[%c0_36, %c0_37, %c0_38], %80 {strides = array<i32>} : memref<4x8x8xbf16, #tpu.memory_space<vmem>>, vector<4x8x8xbf16>,
      %82 = tpu.transpose %79, [1, 0, 2] : vector<8x4x8xbf16> -> vector<4x8x8xbf16>
      %c0_39 = arith.constant 0 : index
      %c0_40 = arith.constant 0 : index
      %c0_41 = arith.constant 0 : index
      %83 = vector.load %arg20[%c0_39, %c0_40, %c0_41] : memref<4x8x8xbf16, #tpu.memory_space<vmem>>, vector<4x8x8xbf16>
      tpu.vector_store %arg20[%c0_39, %c0_40, %c0_41], %82 {strides = array<i32>} : memref<4x8x8xbf16, #tpu.memory_space<vmem>>, vector<4x8x8xbf16>,
    } else {
    }
    %c0_i32_2 = arith.constant 0 : i32
    %7 = arith.cmpi eq, %arg1, %c0_i32_2 : i32
    %8 = arith.extui %7 : i1 to i32
    %c0_i32_3 = arith.constant 0 : i32
    %9 = arith.cmpi ne, %8, %c0_i32_3 : i32
    scf.if %9 {
      %c0_19 = arith.constant 0 : index
      %41 = arith.index_cast %1 : i32 to index
      %c0_20 = arith.constant 0 : index
      %42 = vector.load %arg3[%c0_19, %41, %c0_20] : memref<1x8x32xbf16, #tpu.memory_space<vmem>>, vector<1x8x32xbf16>
      %43 = vector.shape_cast %42 : vector<1x8x32xbf16> to vector<8x32xbf16>
      %44 = arith.extf %43 : vector<8x32xbf16> to vector<8x32xf32>
      %c0_21 = arith.constant 0 : index
      %c0_22 = arith.constant 0 : index
      %45 = vector.load %arg4[%c0_21, %c0_22] : memref<1x32xf32, #tpu.memory_space<vmem>>, vector<1x32xf32>
      %c0_23 = arith.constant 0 : index
      %c0_24 = arith.constant 0 : index
      %46 = vector.load %arg5[%c0_23, %c0_24] : memref<1x32xf32, #tpu.memory_space<vmem>>, vector<1x32xf32>
      %cst_25 = arith.constant dense<0.000000e+00> : vector<8xf32>
      %47 = vector.multi_reduction <add>, %44, %cst_25 [1] : vector<8x32xf32> to vector<8xf32>
      %48 = vector.shape_cast %47 : vector<8xf32> to vector<8x1xf32>
      %cst_26 = arith.constant 3.200000e+01 : f32
      %49 = vector.broadcast %cst_26 : f32 to vector<8x1xf32>
      %50 = arith.divf %48, %49 : vector<8x1xf32>
      %51 = vector.broadcast %50 : vector<8x1xf32> to vector<8x32xf32>
      %52 = arith.subf %44, %51 : vector<8x32xf32>
      %53 = arith.mulf %52, %52 : vector<8x32xf32>
      %cst_27 = arith.constant dense<0.000000e+00> : vector<8xf32>
      %54 = vector.multi_reduction <add>, %53, %cst_27 [1] : vector<8x32xf32> to vector<8xf32>
      %55 = vector.shape_cast %54 : vector<8xf32> to vector<8x1xf32>
      %cst_28 = arith.constant 3.200000e+01 : f32
      %56 = vector.broadcast %cst_28 : f32 to vector<8x1xf32>
      %57 = arith.divf %55, %56 : vector<8x1xf32>
      %58 = vector.broadcast %50 : vector<8x1xf32> to vector<8x32xf32>
      %59 = arith.subf %44, %58 : vector<8x32xf32>
      %cst_29 = arith.constant 9.99999974E-6 : f32
      %60 = vector.broadcast %cst_29 : f32 to vector<8x1xf32>
      %61 = arith.addf %57, %60 : vector<8x1xf32>
      %62 = math.rsqrt %61 : vector<8x1xf32>
      %63 = vector.broadcast %62 : vector<8x1xf32> to vector<8x32xf32>
      %64 = arith.mulf %59, %63 : vector<8x32xf32>
      %65 = vector.broadcast %45 : vector<1x32xf32> to vector<8x32xf32>
      %66 = arith.mulf %64, %65 : vector<8x32xf32>
      %67 = vector.broadcast %46 : vector<1x32xf32> to vector<8x32xf32>
      %68 = arith.addf %66, %67 : vector<8x32xf32>
      %69 = arith.truncf %68 : vector<8x32xf32> to vector<8x32xbf16>
      %c0_30 = arith.constant 0 : index
      %c0_31 = arith.constant 0 : index
      %70 = vector.load %arg6[%c0_30, %c0_31] : memref<32x32xbf16, #tpu.memory_space<vmem>>, vector<32x32xbf16>
      %cst_32 = arith.constant dense<0.000000e+00> : vector<8x32xf32>
      %71 = tpu.matmul %69, %70, %cst_32 {dimension_numbers = #tpu.dot_dimension_numbers<[1], [0], [0], [1], [0, 0, 1, 1], [], []>} : vector<8x32xbf16>, vector<32x32xbf16>, vector<8x32xf32> -> vector<8x32xf32>
      %c0_33 = arith.constant 0 : index
      %c0_34 = arith.constant 0 : index
      %72 = vector.load %arg7[%c0_33, %c0_34] : memref<1x32xf32, #tpu.memory_space<vmem>>, vector<1x32xf32>
      %73 = vector.broadcast %72 : vector<1x32xf32> to vector<8x32xf32>
      %74 = arith.addf %71, %73 : vector<8x32xf32>
      %cst_35 = arith.constant 0.353553385 : f32
      %75 = vector.broadcast %cst_35 : f32 to vector<8x32xf32>
      %76 = arith.mulf %74, %75 : vector<8x32xf32>
      %77 = arith.truncf %76 : vector<8x32xf32> to vector<8x32xbf16>
      %78 = vector.shape_cast %77 : vector<8x32xbf16> to vector<8x4x8xbf16>
      %79 = tpu.transpose %78, [1, 0, 2] : vector<8x4x8xbf16> -> vector<4x8x8xbf16>
      %c0_36 = arith.constant 0 : index
      %c0_37 = arith.constant 0 : index
      %c0_38 = arith.constant 0 : index
      %80 = vector.load %arg19[%c0_36, %c0_37, %c0_38] : memref<4x8x8xbf16, #tpu.memory_space<vmem>>, vector<4x8x8xbf16>
      "tpu.trace_start"() <{level = 10 : i32, message = "hqd,hkd->hqk"}> : () -> ()
      %cst_39 = arith.constant dense<0.000000e+00> : vector<4x8x8xf32>
      %81 = tpu.matmul %79, %80, %cst_39 {dimension_numbers = #tpu.dot_dimension_numbers<[2], [2], [1], [1], [0, 0, 0, 1, 1, 1], [0], [0]>} : vector<4x8x8xbf16>, vector<4x8x8xbf16>, vector<4x8x8xf32> -> vector<4x8x8xf32>
      "tpu.trace_stop"() : () -> ()
      %cst_40 = arith.constant dense<0xFF800000> : vector<4x8xf32>
      %82 = vector.multi_reduction <maximumf>, %81, %cst_40 [2] : vector<4x8x8xf32> to vector<4x8xf32>
      %83 = vector.shape_cast %82 : vector<4x8xf32> to vector<4x8x1xf32>
      %84 = vector.broadcast %83 : vector<4x8x1xf32> to vector<4x8x8xf32>
      %85 = arith.subf %81, %84 : vector<4x8x8xf32>
      %86 = math.exp %85 : vector<4x8x8xf32>
      %cst_41 = arith.constant dense<0.000000e+00> : vector<4x8xf32>
      %87 = vector.multi_reduction <add>, %86, %cst_41 [2] : vector<4x8x8xf32> to vector<4x8xf32>
      %88 = vector.shape_cast %87 : vector<4x8xf32> to vector<4x8x1xf32>
      %89 = vector.broadcast %88 : vector<4x8x1xf32> to vector<4x8x8xf32>
      %90 = arith.divf %86, %89 : vector<4x8x8xf32>
      %91 = arith.truncf %90 : vector<4x8x8xf32> to vector<4x8x8xbf16>
      %c0_42 = arith.constant 0 : index
      %c0_43 = arith.constant 0 : index
      %c0_44 = arith.constant 0 : index
      %92 = vector.load %arg20[%c0_42, %c0_43, %c0_44] : memref<4x8x8xbf16, #tpu.memory_space<vmem>>, vector<4x8x8xbf16>
      "tpu.trace_start"() <{level = 10 : i32, message = "hqk,hkd->hqd"}> : () -> ()
      %cst_45 = arith.constant dense<0.000000e+00> : vector<4x8x8xf32>
      %93 = tpu.matmul %91, %92, %cst_45 {dimension_numbers = #tpu.dot_dimension_numbers<[2], [1], [1], [2], [0, 0, 0, 1, 1, 2], [0], [0]>} : vector<4x8x8xbf16>, vector<4x8x8xbf16>, vector<4x8x8xf32> -> vector<4x8x8xf32>
      "tpu.trace_stop"() : () -> ()
      %94 = tpu.transpose %93, [1, 0, 2] : vector<4x8x8xf32> -> vector<8x4x8xf32>
      %95 = vector.shape_cast %94 : vector<8x4x8xf32> to vector<8x32xf32>
      %96 = arith.truncf %95 : vector<8x32xf32> to vector<8x32xbf16>
      %c0_46 = arith.constant 0 : index
      %c0_47 = arith.constant 0 : index
      %97 = vector.load %arg10[%c0_46, %c0_47] : memref<32x32xbf16, #tpu.memory_space<vmem>>, vector<32x32xbf16>
      %cst_48 = arith.constant dense<0.000000e+00> : vector<8x32xf32>
      %98 = tpu.matmul %96, %97, %cst_48 {dimension_numbers = #tpu.dot_dimension_numbers<[1], [0], [0], [1], [0, 0, 1, 1], [], []>} : vector<8x32xbf16>, vector<32x32xbf16>, vector<8x32xf32> -> vector<8x32xf32>
      %c0_49 = arith.constant 0 : index
      %c0_50 = arith.constant 0 : index
      %99 = vector.load %arg11[%c0_49, %c0_50] : memref<1x32xf32, #tpu.memory_space<vmem>>, vector<1x32xf32>
      %100 = vector.broadcast %99 : vector<1x32xf32> to vector<8x32xf32>
      %101 = arith.addf %98, %100 : vector<8x32xf32>
      %102 = arith.addf %44, %101 : vector<8x32xf32>
      %c0_51 = arith.constant 0 : index
      %c0_52 = arith.constant 0 : index
      %103 = vector.load %arg12[%c0_51, %c0_52] : memref<1x32xf32, #tpu.memory_space<vmem>>, vector<1x32xf32>
      %c0_53 = arith.constant 0 : index
      %c0_54 = arith.constant 0 : index
      %104 = vector.load %arg13[%c0_53, %c0_54] : memref<1x32xf32, #tpu.memory_space<vmem>>, vector<1x32xf32>
      %cst_55 = arith.constant dense<0.000000e+00> : vector<8xf32>
      %105 = vector.multi_reduction <add>, %102, %cst_55 [1] : vector<8x32xf32> to vector<8xf32>
      %106 = vector.shape_cast %105 : vector<8xf32> to vector<8x1xf32>
      %cst_56 = arith.constant 3.200000e+01 : f32
      %107 = vector.broadcast %cst_56 : f32 to vector<8x1xf32>
      %108 = arith.divf %106, %107 : vector<8x1xf32>
      %109 = vector.broadcast %108 : vector<8x1xf32> to vector<8x32xf32>
      %110 = arith.subf %102, %109 : vector<8x32xf32>
      %111 = arith.mulf %110, %110 : vector<8x32xf32>
      %cst_57 = arith.constant dense<0.000000e+00> : vector<8xf32>
      %112 = vector.multi_reduction <add>, %111, %cst_57 [1] : vector<8x32xf32> to vector<8xf32>
      %113 = vector.shape_cast %112 : vector<8xf32> to vector<8x1xf32>
      %cst_58 = arith.constant 3.200000e+01 : f32
      %114 = vector.broadcast %cst_58 : f32 to vector<8x1xf32>
      %115 = arith.divf %113, %114 : vector<8x1xf32>
      %116 = vector.broadcast %108 : vector<8x1xf32> to vector<8x32xf32>
      %117 = arith.subf %102, %116 : vector<8x32xf32>
      %cst_59 = arith.constant 9.99999974E-6 : f32
      %118 = vector.broadcast %cst_59 : f32 to vector<8x1xf32>
      %119 = arith.addf %115, %118 : vector<8x1xf32>
      %120 = math.rsqrt %119 : vector<8x1xf32>
      %121 = vector.broadcast %120 : vector<8x1xf32> to vector<8x32xf32>
      %122 = arith.mulf %117, %121 : vector<8x32xf32>
      %123 = vector.broadcast %103 : vector<1x32xf32> to vector<8x32xf32>
      %124 = arith.mulf %122, %123 : vector<8x32xf32>
      %125 = vector.broadcast %104 : vector<1x32xf32> to vector<8x32xf32>
      %126 = arith.addf %124, %125 : vector<8x32xf32>
      %127 = arith.truncf %126 : vector<8x32xf32> to vector<8x32xbf16>
      %128 = arith.index_cast %1 : i32 to index
      %c0_60 = arith.constant 0 : index
      %129 = vector.load %arg21[%128, %c0_60] : memref<8x32xbf16, #tpu.memory_space<vmem>>, vector<8x32xbf16>
      tpu.vector_store %arg21[%128, %c0_60], %127 {strides = array<i32>} : memref<8x32xbf16, #tpu.memory_space<vmem>>, vector<8x32xbf16>,
      %c0_61 = arith.constant 0 : index
      %c0_62 = arith.constant 0 : index
      %130 = vector.load %arg17[%c0_61, %c0_62] : memref<1x32xf32, #tpu.memory_space<vmem>>, vector<1x32xf32>
      %131 = vector.broadcast %130 : vector<1x32xf32> to vector<8x32xf32>
      %132 = arith.addf %102, %131 : vector<8x32xf32>
      %133 = arith.index_cast %1 : i32 to index
      %c0_63 = arith.constant 0 : index
      %134 = vector.load %arg22[%133, %c0_63] : memref<8x32xf32, #tpu.memory_space<vmem>>, vector<8x32xf32>
      tpu.vector_store %arg22[%133, %c0_63], %132 {strides = array<i32>} : memref<8x32xf32, #tpu.memory_space<vmem>>, vector<8x32xf32>,
    } else {
    }
    %10 = arith.index_cast %1 : i32 to index
    %c0 = arith.constant 0 : index
    %11 = vector.load %arg21[%10, %c0] : memref<8x32xbf16, #tpu.memory_space<vmem>>, vector<8x32xbf16>
    %c0_4 = arith.constant 0 : index
    %c0_5 = arith.constant 0 : index
    %12 = vector.load %arg14[%c0_4, %c0_5] : memref<32x128xbf16, #tpu.memory_space<vmem>>, vector<32x128xbf16>
    %cst = arith.constant dense<0.000000e+00> : vector<8x128xf32>
    %13 = tpu.matmul %11, %12, %cst {dimension_numbers = #tpu.dot_dimension_numbers<[1], [0], [0], [1], [0, 0, 1, 1], [], []>} : vector<8x32xbf16>, vector<32x128xbf16>, vector<8x128xf32> -> vector<8x128xf32>
    %c0_6 = arith.constant 0 : index
    %c0_7 = arith.constant 0 : index
    %14 = vector.load %arg15[%c0_6, %c0_7] : memref<1x128xf32, #tpu.memory_space<vmem>>, vector<1x128xf32>
    %15 = vector.broadcast %14 : vector<1x128xf32> to vector<8x128xf32>
    %16 = arith.addf %13, %15 : vector<8x128xf32>
    %cst_8 = arith.constant 5.000000e-01 : f32
    %17 = vector.broadcast %cst_8 : f32 to vector<8x128xf32>
    %18 = arith.mulf %17, %16 : vector<8x128xf32>
    %cst_9 = arith.constant 4.471500e-02 : f32
    %19 = vector.broadcast %cst_9 : f32 to vector<8x128xf32>
    %20 = arith.mulf %19, %16 : vector<8x128xf32>
    %21 = arith.mulf %20, %16 : vector<8x128xf32>
    %22 = arith.mulf %21, %16 : vector<8x128xf32>
    %23 = arith.addf %16, %22 : vector<8x128xf32>
    %cst_10 = arith.constant 0.797884583 : f32
    %24 = vector.broadcast %cst_10 : f32 to vector<8x128xf32>
    %25 = arith.mulf %24, %23 : vector<8x128xf32>
    %26 = math.tanh %25 : vector<8x128xf32>
    %cst_11 = arith.constant 1.000000e+00 : f32
    %27 = vector.broadcast %cst_11 : f32 to vector<8x128xf32>
    %28 = arith.addf %27, %26 : vector<8x128xf32>
    %29 = arith.mulf %18, %28 : vector<8x128xf32>
    %30 = arith.truncf %29 : vector<8x128xf32> to vector<8x128xbf16>
    %31 = arith.index_cast %1 : i32 to index
    %c0_12 = arith.constant 0 : index
    %32 = vector.load %arg22[%31, %c0_12] : memref<8x32xf32, #tpu.memory_space<vmem>>, vector<8x32xf32>
    %c0_13 = arith.constant 0 : index
    %c0_14 = arith.constant 0 : index
    %33 = vector.load %arg16[%c0_13, %c0_14] : memref<128x32xbf16, #tpu.memory_space<vmem>>, vector<128x32xbf16>
    %cst_15 = arith.constant dense<0.000000e+00> : vector<8x32xf32>
    %34 = tpu.matmul %30, %33, %cst_15 {dimension_numbers = #tpu.dot_dimension_numbers<[1], [0], [0], [1], [0, 0, 1, 1], [], []>} : vector<8x128xbf16>, vector<128x32xbf16>, vector<8x32xf32> -> vector<8x32xf32>
    %35 = arith.addf %32, %34 : vector<8x32xf32>
    %36 = arith.index_cast %1 : i32 to index
    %c0_16 = arith.constant 0 : index
    %37 = vector.load %arg22[%36, %c0_16] : memref<8x32xf32, #tpu.memory_space<vmem>>, vector<8x32xf32>
    tpu.vector_store %arg22[%36, %c0_16], %35 {strides = array<i32>} : memref<8x32xf32, #tpu.memory_space<vmem>>, vector<8x32xf32>,
    %c0_i32_17 = arith.constant 0 : i32
    %38 = arith.cmpi eq, %arg1, %c0_i32_17 : i32
    %39 = arith.extui %38 : i1 to i32
    %c0_i32_18 = arith.constant 0 : i32
    %40 = arith.cmpi ne, %39, %c0_i32_18 : i32
    scf.if %40 {
      %41 = arith.index_cast %1 : i32 to index
      %c0_19 = arith.constant 0 : index
      %42 = vector.load %arg22[%41, %c0_19] : memref<8x32xf32, #tpu.memory_space<vmem>>, vector<8x32xf32>
      %c0_20 = arith.constant 0 : index
      %c0_21 = arith.constant 0 : index
      %c0_22 = arith.constant 0 : index
      %43 = vector.load %arg18[%c0_20, %c0_21, %c0_22] : memref<1x8x32xf32, #tpu.memory_space<vmem>>, vector<1x8x32xf32>
      %44 = vector.shape_cast %43 : vector<1x8x32xf32> to vector<8x32xf32>
      %45 = vector.shape_cast %42 : vector<8x32xf32> to vector<1x8x32xf32>
      tpu.vector_store %arg18[%c0_20, %c0_21, %c0_22], %45 {strides = array<i32>} : memref<1x8x32xf32, #tpu.memory_space<vmem>>, vector<1x8x32xf32>,
    } else {
    }
    return
  }
  func.func @transform_0(%arg0: i32, %arg1: i32, %arg2: i32) -> (i32, i32, i32) {
    %c0_i32 = arith.constant 0 : i32
    %c0_i32_0 = arith.constant 0 : i32
    %c0_i32_1 = arith.constant 0 : i32
    return %arg0, %c0_i32, %c0_i32_0 : i32, i32, i32
  }
  func.func @transform_1(%arg0: i32, %arg1: i32, %arg2: i32) -> (i32, i32) {
    %c0_i32 = arith.constant 0 : i32
    %c0_i32_0 = arith.constant 0 : i32
    %c0_i32_1 = arith.constant 0 : i32
    return %c0_i32, %c0_i32_0 : i32, i32
  }
  func.func @transform_2(%arg0: i32, %arg1: i32, %arg2: i32) -> (i32, i32) {
    %c0_i32 = arith.constant 0 : i32
    %c0_i32_0 = arith.constant 0 : i32
    %c0_i32_1 = arith.constant 0 : i32
    return %c0_i32, %c0_i32_0 : i32, i32
  }
  func.func @transform_3(%arg0: i32, %arg1: i32, %arg2: i32) -> (i32, i32) {
    %c0_i32 = arith.constant 0 : i32
    %c0_i32_0 = arith.constant 0 : i32
    %c0_i32_1 = arith.constant 0 : i32
    return %c0_i32, %c0_i32_0 : i32, i32
  }
  func.func @transform_4(%arg0: i32, %arg1: i32, %arg2: i32) -> (i32, i32) {
    %c0_i32 = arith.constant 0 : i32
    %c0_i32_0 = arith.constant 0 : i32
    %c0_i32_1 = arith.constant 0 : i32
    return %c0_i32, %c0_i32_0 : i32, i32
  }
  func.func @transform_5(%arg0: i32, %arg1: i32, %arg2: i32) -> (i32, i32) {
    %c0_i32 = arith.constant 0 : i32
    %c0_i32_0 = arith.constant 0 : i32
    %c0_i32_1 = arith.constant 0 : i32
    return %c0_i32, %c0_i32_0 : i32, i32
  }
  func.func @transform_6(%arg0: i32, %arg1: i32, %arg2: i32) -> (i32, i32) {
    %c0_i32 = arith.constant 0 : i32
    %c0_i32_0 = arith.constant 0 : i32
    %c0_i32_1 = arith.constant 0 : i32
    return %c0_i32, %c0_i32_0 : i32, i32
  }
  func.func @transform_7(%arg0: i32, %arg1: i32, %arg2: i32) -> (i32, i32) {
    %c0_i32 = arith.constant 0 : i32
    %c0_i32_0 = arith.constant 0 : i32
    %c0_i32_1 = arith.constant 0 : i32
    return %c0_i32, %c0_i32_0 : i32, i32
  }
  func.func @transform_8(%arg0: i32, %arg1: i32, %arg2: i32) -> (i32, i32) {
    %c0_i32 = arith.constant 0 : i32
    %c0_i32_0 = arith.constant 0 : i32
    %c0_i32_1 = arith.constant 0 : i32
    return %c0_i32, %c0_i32_0 : i32, i32
  }
  func.func @transform_9(%arg0: i32, %arg1: i32, %arg2: i32) -> (i32, i32) {
    %c0_i32 = arith.constant 0 : i32
    %c0_i32_0 = arith.constant 0 : i32
    %c0_i32_1 = arith.constant 0 : i32
    return %c0_i32, %c0_i32_0 : i32, i32
  }
  func.func @transform_10(%arg0: i32, %arg1: i32, %arg2: i32) -> (i32, i32) {
    %c0_i32 = arith.constant 0 : i32
    %c0_i32_0 = arith.constant 0 : i32
    %c0_i32_1 = arith.constant 0 : i32
    return %c0_i32, %c0_i32_0 : i32, i32
  }
  func.func @transform_11(%arg0: i32, %arg1: i32, %arg2: i32) -> (i32, i32) {
    %c0_i32 = arith.constant 0 : i32
    %c0_i32_0 = arith.constant 0 : i32
    return %c0_i32, %arg1 : i32, i32
  }
  func.func @transform_12(%arg0: i32, %arg1: i32, %arg2: i32) -> (i32, i32) {
    %c0_i32 = arith.constant 0 : i32
    %c0_i32_0 = arith.constant 0 : i32
    return %c0_i32, %arg1 : i32, i32
  }
  func.func @transform_13(%arg0: i32, %arg1: i32, %arg2: i32) -> (i32, i32) {
    %c0_i32 = arith.constant 0 : i32
    %c0_i32_0 = arith.constant 0 : i32
    return %arg1, %c0_i32 : i32, i32
  }
  func.func @transform_14(%arg0: i32, %arg1: i32, %arg2: i32) -> (i32, i32) {
    %c0_i32 = arith.constant 0 : i32
    %c0_i32_0 = arith.constant 0 : i32
    %c0_i32_1 = arith.constant 0 : i32
    return %c0_i32, %c0_i32_0 : i32, i32
  }
  func.func @transform_15(%arg0: i32, %arg1: i32, %arg2: i32) -> (i32, i32, i32) {
    %c0_i32 = arith.constant 0 : i32
    %c0_i32_0 = arith.constant 0 : i32
    return %arg0, %arg2, %c0_i32 : i32, i32, i32
  }
}

</mosaic_0001>

<bundles_post_ra>
// kernel: tpu_custom_call.1
= control target key start
LH: loop header
LB: loop body
LE: loop exit
PB: predicated region body
PF: predicated region fallthrough
CT: control target
= control target key end

     0   :  { %s3195_s0 = inlined_call_operand.vmem [shape: bf16[2,8,32], index: 0, kind: input, shape index: {}]   ;;  %s3196_s1 = inlined_call_operand.vmem [shape: f32[1,32], index: 1, kind: input, shape index: {}]   ;;  %s3197_s2 = inlined_call_operand.vmem [shape: f32[1,32], index: 2, kind: input, shape index: {}]   ;;  %s3198_s3 = inlined_call_operand.vmem [shape: bf16[32,32], index: 3, kind: input, shape index: {}]   ;;  %s3199_s4 = inlined_call_operand.vmem [shape: f32[1,32], index: 4, kind: input, shape index: {}]   ;;  %s3200_s5 = inlined_call_operand.vmem [shape: bf16[32,64], index: 5, kind: input, shape index: {}]   ;;  %s3201_s6 = inlined_call_operand.vmem [shape: f32[1,64], index: 6, kind: input, shape index: {}]   ;;  %s3202_s7 = inlined_call_operand.vmem [shape: bf16[32,32], index: 7, kind: input, shape index: {}]   ;;  %s3203_s8 = inlined_call_operand.vmem [shape: f32[1,32], index: 8, kind: input, shape index: {}]   ;;  %s3204_s9 = inlined_call_operand.vmem [shape: f32[1,32], index: 9, kind: input, shape index: {}]   ;;  %s3205_s10 = inlined_call_operand.vmem [shape: f32[1,32], index: 10, kind: input, shape index: {}]   ;;  %s3206_s11 = inlined_call_operand.vmem [shape: bf16[32,128], index: 11, kind: input, shape index: {}]   ;;  %s3207_s12 = inlined_call_operand.vmem [shape: f32[1,128], index: 12, kind: input, shape index: {}]   ;;  %s3208_s13 = inlined_call_operand.vmem [shape: bf16[128,32], index: 13, kind: input, shape index: {}]   ;;  %s3209_s14 = inlined_call_operand.vmem [shape: f32[1,32], index: 14, kind: input, shape index: {}]   ;;  %s3210_s15 = inlined_call_operand.hbm [shape: f32[2,8,32], index: 15, kind: output, shape index: {}]  }
   0x1   :  { %3213 = sst [smem:[#allocation11_spill]] %s3195_s0 }
   0x2   :  { %3214 = sst [smem:[#allocation12_spill]] %s3196_s1 }
   0x3   :  { %3215 = sst [smem:[#allocation13_spill]] %s3197_s2 }
   0x4   :  { %3216 = sst [smem:[#allocation14_spill]] %s3198_s3 }
   0x5   :  { %3217 = sst [smem:[#allocation15_spill]] %s3199_s4 }
   0x6   :  { %20 = vsyncpa [#allocation7], 0 }
   0x7   :  { %22 = vsyncpa [#allocation7 + $0x1], 0  ;;  %s2799_s18 = smov 0   ;;  %s2801_s19 = smov 0  }
   0x8   :  { %s2803_s20 = smov 0   ;;  %s2805_s21 = smov 0  }
   0x9   :  { %s2807_s22 = smov 0   ;;  %s2809_s23 = smov 0  }
   0xa LB: > { %3218 = sst [smem:[#allocation9_spill]] %s2684_s18  ;;  %s2329_s24 = sadd.s32 4294967295, %s2704_s23   ;;  %s2704_s23 = sphi %s2809_s23, %s28_s23   ;;  %s2700_s22 = sphi %s2807_s22, %s3233_s22   ;;  %s2696_s21 = sphi %s2805_s21, %s3232_s21   ;;  %s2692_s20 = sphi %s2803_s20, %s3231_s20   ;;  %s2688_s19 = sphi %s2801_s19, %s3230_s19   ;;  %s2684_s18 = sphi %s2799_s18, %s3229_s18  }
   0xb   : > { %s2330_s25 = sadd.s32 4294967294, %s2704_s23   ;;  %s47_s26 = sadd.s32 1, %s2700_s22 }
   0xc   : > { %s391_s27 = sadd.s32 1, %s2692_s20  ;;  %p49_p0 = scmp.ge.s32.totalorder %s47_s26, 2 }
   0xd   : > { %p401_p1 = scmp.ne.s32.totalorder %s2692_s20, %s2688_s19  ;;  %p402_p2 = scmp.eq.s32.totalorder %s2329_s24, 1 }
   0xe   : > { %p407_p3 = scmp.ne.s32.totalorder %s2688_s19, %s2684_s18  ;;  %s3235_s26 = smov (%p49_p0, %s47_s26), 0 }
   0xf   : > { %3219 = sst [smem:[#allocation10_spill]] %s3235_s26  ;;  %p2839_p4 = por %p402_p2, %p401_p1 }
  0x10   : > { %p408_p5 = scmp.eq.s32.totalorder %s2330_s25, 1  ;;  %s386_s29 = ssub.s32 %s2700_s22, %s3235_s26 }
  0x11   : > { %p2336_p6 = scmp.ge.s32.totalorder %s2704_s23, 1  ;;  %p389_p7 = scmp.eq.s32.totalorder %s386_s29, 0 }
  0x12   : > { %p2846_p8 = por %p408_p5, %p407_p3  ;;  %p488_p9 = scmp.lt.s32.totalorder %s2704_s23, 3 }
  0x13   : > { %s2852_s16 = scalar_select %p389_p7, %s2692_s20, %s391_s27  }
  0x14   : > { %p489_p10 = pnand %p2336_p6, %p488_p9 }
  0x15   : > { %p547_p11 = scmp.lt.s32.totalorder (!%p489_p10), %s2696_s21, 1  ;;  %s3222_s0 = sld [smem:[#allocation11_spill]] (!%p489_p10) }
  0x16   : > { %492 = sbr.rel (%p489_p10) target bundleno = 2515 (0x9d3), region = 80  ;;  %s3223_s1 = sld [smem:[#allocation12_spill]] (!%p489_p10) }
  0x17   : > { %s3224_s2 = sld [smem:[#allocation13_spill]] (!%p489_p10)  ;;  %s2708_s18 = smov (!%p489_p10), 120  }
  0x18   : > { %s3225_s3 = sld [smem:[#allocation14_spill]] (!%p489_p10)  ;;  %s2715_s29 = smov (!%p489_p10), 16  }
  0x19   : > { %s3226_s4 = sld [smem:[#allocation15_spill]] (!%p489_p10)  ;;  %s544_s25 = sand.u32 (!%p489_p10), 1, %s2688_s19  }
  0x1b   : > { %s548_s17 = scalar_select %p547_p11, %s2696_s21, 1  ;;  %vm576_vm0 = vcmask 261120   ;;  %v2588_v16 = vld [vmem:[%s3200_s5 + $0x8] sm:$0xff]   ;;  %v2706_v17 = vmov 0.0   ;;  %v2589_v18 = vld [vmem:[%s3200_s5] sm:$0xff]   ;;  %vm2707_vm1 = vmmov 0   ;;  %v683_v56 = vlaneseq }
  0x1c   : > { %2421 = vmatprep.subr.bf16.mxu1 %v2706_v17  ;;  %2449 = vmatprep.subr.bf16.mxu0 %v2706_v17  ;;  %v2339_v26 = vld [vmem:[%s3223_s1] ss:$0 sm:$0xff]  ;;  %v2711_v54 = vmov 1983009808   ;;  %v2712_v59 = vmov 1934713408  }
  0x1d   : > { %s2338_s24 = sshll.u32 %s548_s17, 2  ;;  %2422 = vmatpush3.bf16.msra.mxu1 %v2588_v16  ;;  %2425 = vmatprep.mubr.msk.bf16.mxu1 %vm2707_vm1, %v2706_v17  ;;  %v2340_v28 = vld [vmem:[%s3224_s2] ss:$0 sm:$0xff]  ;;  %s2710_s17 = smov 104   ;;  %v681_v55 = vunpack.c.l.s4 %v2711_v54  ;;  %v684_v58 = vshrl.u32 %v683_v56, 7  ;;  %v698_v60 = vunpack.c.l.s4 %v2712_v59  ;;  %vm953_vm2 = vcmask 60416  }
  0x1e   : > { %s550_s26 = scalar_lea.vmem %s3222_s0, %s2338_s24  ;;  %2423 = vmatprep.subr.bf16.mxu1 %v2706_v17  ;;  %2451 = vmatprep.mubr.msk.bf16.mxu0 %vm2707_vm1, %v2706_v17  ;;  %v2590_v33 = vld [vmem:[%s3225_s3 + $0x8] sm:$0xff]   ;;  %v2591_v36 = vld [vmem:[%s3225_s3] sm:$0xff]   ;;  %vm1309_vm3 = vcmask 64512   ;;  %s2714_s24 = smov 96   ;;  %vm1549_vm4 = vcmask 1043456   ;;  %vm1880_vm5 = vcmask 130048  }
  0x1f   : > { %v572_v0 = vld [vmem:[%s550_s26] sm:$0xf]  ;;  %v682_v57 = vunpack.c.0.s8 %v681_v55  ;;  %v699_v62 = vunpack.c.0.s8 %v698_v60  ;;  %vm1882_vm6 = vcmask 195584   ;;  %vm1984_vm7 = vcmask 257024   ;;  %s2192_s1 = scalar_lea.sflag [#allocation7], %s544_s25  ;;  %s2718_s3 = smov [#allocation6]  }
  0x20   : > { %v1035_v1 = vld [vmem:[%s550_s26] sm:$0xf]  ;;  %v575_v2 = vunpack.c.l.bf16 %v572_v0  ;;  %s2709_s26 = smov 112  }
  0x21   : > { %v2859_v3 = vunpack.c.l.bf16 %v1035_v1  ;;  %2424 = vmatpush3.bf16.msra.mxu1 %v2589_v18  ;;  %v2341_v39 = vld [vmem:[%s3201_s6] ss:$0 sm:$0xff]  ;;  %v2912_v61 = vsub.s32 %v682_v57, %v684_v58  ;;  %v2918_v1 = vsub.s32 %v699_v62, %v684_v58 }
  0x22   : > { %v577_v4 = vsel %vm576_vm0, %v575_v2, 0.0  ;;  %2429 = vmatprep.subr.bf16.mxu1 %v2706_v17  ;;  %v2347_v46 = vld [vmem:[%s3226_s4] ss:$0 sm:$0xff]  ;;  %s2632_s4 = sshll.u32 %s2718_s3, 4  ;;  %s2633_s4 = int_to_ptr.vmem [resolvable:$false] %s2632_s4 }
  0x23   : > { %v1040_v5 = vsel %vm576_vm0, %v2859_v3, 0.0  ;;  %578 = vadd.xlane.f32.xlu0 %v577_v4 }
  0x27   : > { %1041 = vadd.xlane.f32.xlu0 %v1040_v5 }
  0xac   : > { %v579_v6 = vpop.xlane.xlu0 %578 }
  0xad   : > { %v581_v7 = vmul.f32 0.03125, %v579_v6 }
  0xaf   : > { %v582_v8 = vsub.f32 %v575_v2, %v581_v7 }
  0xb0   : > { %v1042_v9 = vpop.xlane.xlu0 %1041 }
  0xb1   : > { %v1044_v10 = vmul.f32 0.03125, %v1042_v9  ;;  %v583_v11 = vmul.f32 %v582_v8, %v582_v8 }
  0xb3   : > { %v1045_v12 = vsub.f32 %v2859_v3, %v1044_v10  ;;  %v584_v13 = vsel %vm576_vm0, %v583_v11, 0.0 }
  0xb4   : > { %585 = vadd.xlane.f32.xlu1 %v584_v13 }
  0xb5   : > { %v1046_v14 = vmul.f32 %v1045_v12, %v1045_v12 }
  0xb7   : > { %v1047_v15 = vsel %vm576_vm0, %v1046_v14, 0.0 }
  0xb8   : > { %1048 = vadd.xlane.f32.xlu1 %v1047_v15 }
 0x13d   : > { %v586_v19 = vpop.xlane.xlu1 %585 }
 0x13e   : > { %v587_v20 = vmul.f32 0.03125, %v586_v19 }
 0x140   : > { %v588_v21 = vadd.f32 1e-05, %v587_v20 }
 0x141   : > { %v1049_v22 = vpop.xlane.xlu1 %1048 }
 0x142   : > { %2604 = vrsqrt.f32 %v588_v21  ;;  %v1050_v23 = vmul.f32 0.03125, %v1049_v22 }
 0x144   : > { %v1051_v24 = vadd.f32 1e-05, %v1050_v23 }
 0x146   : > { %2606 = vrsqrt.f32 %v1051_v24 }
 0x14f   : > { %v2605_v25 = vpop.eup %2604 }
 0x150   : > { %v590_v27 = vmul.f32 %v2605_v25, %v582_v8 }
 0x152   : > { %v597_v29 = vmul.f32 %v2339_v26, %v590_v27 }
 0x153   : > { %v2607_v30 = vpop.eup %2606 }
 0x154   : > { %v1053_v31 = vmul.f32 %v2607_v30, %v1045_v12  ;;  %v604_v32 = vadd.f32 %v2340_v28, %v597_v29  ;;  %v2713_v12 = vmov 0  }
 0x156   : > { %v605_v34 = vpack.c.bf16 %v604_v32, %v604_v32  ;;  %v1060_v35 = vmul.f32 %v2339_v26, %v1053_v31 }
 0x158   : > { %2426 = vmatmul.mubr.msk.bf16.vlgmr.msra.gmra.mxu1 %vm576_vm0, %v605_v34  ;;  %v1067_v37 = vadd.f32 %v2340_v28, %v1060_v35 }
 0x159   : > { %2430 = vmatpush3.bf16.msra.mxu1 %v2590_v33  ;;  %2433 = vmatprep.mubr.msk.bf16.mxu1 %vm2707_vm1, %v2706_v17 }
 0x15a   : > { %2431 = vmatprep.subr.bf16.mxu1 %v2706_v17  ;;  %v1068_v38 = vpack.c.bf16 %v1067_v37, %v1067_v37 }
 0x15d   : > { %2432 = vmatpush3.bf16.msra.mxu1 %v2591_v36 }
 0x15e   : > { %2437 = vmatprep.subr.bf16.mxu1 %v2706_v17 }
 0x160   : > { %2434 = vmatmul.mubr.msk.bf16.vlgmr.msra.gmra.mxu1 %vm576_vm0, %v1068_v38 }
 0x161   : > { %2439 = vmatprep.mubr.msk.bf16.mxu1 %vm2707_vm1, %v2706_v17 }
 0x218   : > { %v666_v40 = vpop.f32.mrf.mxu1 }
 0x219   : > { %v667_v41 = vadd.f32 %v2341_v39, %v666_v40 }
 0x21a   : > { %v2427_v42 = vpop.f32.mrf.mxu1 }
 0x21b   : > { %v2904_v43 = vpack.c.bf16 %v667_v41, %v667_v41 }
 0x21c   : > { %v669_v44 = vpop.f32.mrf.mxu1 }
 0x21d   : > { %674 = vrot.lane.b32.xlu0 %v2904_v43, %s2708_s18  ;;  %676 = vrot.lane.b32.xlu1 %v2904_v43, %s2709_s26  ;;  %v686_v0 = vrot.slane %v2904_v43, %v2912_v61 }
 0x21e   : > { %v2428_v45 = vpop.f32.mrf.mxu1 }
 0x220   : > { %v1129_v47 = vpop.f32.mrf.mxu1 }
 0x221   : > { %v1130_v48 = vadd.f32 %v2347_v46, %v1129_v47  ;;  %678 = vrot.lane.b32.xlu1 %v2904_v43, %s2710_s17 }
 0x222   : > { %v2435_v49 = vpop.f32.mrf.mxu1 }
 0x223   : > { %v1135_v50 = vmul.f32 0.35355338, %v1130_v48 }
 0x224   : > { %v1132_v51 = vpop.f32.mrf.mxu1 }
 0x225   : > { %v1136_v52 = vpack.c.bf16 %v1135_v50, %v1135_v50 }
 0x226   : > { %v2436_v53 = vpop.f32.mrf.mxu1 }
 0x227   : > { %1140 = vrot.lane.b32.xlu0 %v1136_v52, %s2709_s26  ;;  %1138 = vrot.lane.b32.xlu1 %v1136_v52, %s2708_s18  ;;  %v1150_v22 = vrot.slane %v1136_v52, %v2912_v61  ;;  %s2337_s18 = sshll.u32 %s544_s25, 3  ;;  %s2381_s26 = sshll.u32 %s2696_s21, 7 }
 0x228   : > { %s546_s0 = scalar_lea.vmem [#allocation6], %s2337_s18  ;;  %s2634_s21 = scalar_lea.vmem %s2633_s4, 256 }
 0x229   : > { %s2206_s27 = sshll.u32 %s546_s0, 4  ;;  %s2207_s27 = int_to_ptr.vmem [resolvable:$true] %s2206_s27 }
 0x22a   : > { %s2628_s2 = scalar_lea.vmem %s2207_s27, 128  ;;  %p2635_p1 = scmp.lt.s32.totalorder %s2207_s27, %s2633_s4 }
 0x22b   : > { %1142 = vrot.lane.b32.xlu1 %v1136_v52, %s2710_s17  ;;  %s2716_s17 = smov 8   ;;  %p2629_p12 = scmp.ne.s32.totalorder %s2207_s27, %s2628_s2 }
 0x22c   : > { %p2636_p2 = scmp.lt.s32.totalorder %s2634_s21, %s2628_s2 }
 0x22d   : > { %p2630_p13 = pnand %p2629_p12, %p2839_p4 }
 0x22e   : > { %p2637_p3 = por %p2636_p2, %p2635_p1 }
 0x22f   : > { %p2631_p0 = pneg %p2630_p13 }
 0x231   : > { %p2638_p5 = pnand %p2637_p3, %p2631_p0 }
 0x28f   : > { %v2914_v63 = vpop.permute.xlu1 %676  ;;  %v2922_v6 = vpop.permute.xlu0 %674 }
 0x290   : > { %v694_v2 = vrot.slane %v2914_v63, %v2912_v61  ;;  %v720_v11 = vrot.slane %v2922_v6, %v2912_v61 }
 0x292   : > { %v695_v4 = vcombine.low %v686_v0, %v694_v2  ;;  %v696_v5 = vcombine.high %v686_v0, %v694_v2 }
 0x293   : > { %v2924_v7 = vpop.permute.xlu1 %678 }
 0x294   : > { %v703_v8 = vrot.slane %v695_v4, %v2918_v1  ;;  %v710_v9 = vrot.slane %v696_v5, %v2918_v1  ;;  %v728_v10 = vrot.slane %v2924_v7, %v2912_v61 }
 0x296   : > { %v711_v13 = vcombine.high %v703_v8, %v2713_v12  ;;  %v712_v14 = vcombine.high %v710_v9, %v2713_v12  ;;  %v729_v15 = vcombine.low %v720_v11, %v728_v10  ;;  %v730_v16 = vcombine.high %v720_v11, %v728_v10 }
 0x297   : > { %v751_v18 = vshrl.u32 %v703_v8, 16  ;;  %v767_v25 = vshrl.u32 %v710_v9, 16 }
 0x298   : > { %v737_v19 = vrot.slane %v729_v15, %v2918_v1  ;;  %v744_v20 = vrot.slane %v730_v16, %v2918_v1  ;;  %v759_v24 = vshrl.u32 %v711_v13, 16  ;;  %v775_v26 = vshrl.u32 %v712_v14, 16 }
 0x299   : > { %v1139_v21 = vpop.permute.xlu1 %1138  ;;  %v1141_v23 = vpop.permute.xlu0 %1140 }
 0x29a   : > { %v1158_v27 = vrot.slane %v1141_v23, %v2912_v61  ;;  %v745_v28 = vcombine.high %v737_v19, %v2713_v12  ;;  %v746_v29 = vcombine.high %v744_v20, %v2713_v12  ;;  %v749_v30 = vpack.i.b16 %v737_v19, %v703_v8 }
 0x29b   : > { %v752_v31 = vshrl.u32 %v737_v19, 16  ;;  %v765_v32 = vpack.i.b16 %v744_v20, %v710_v9  ;;  %v768_v33 = vshrl.u32 %v744_v20, 16  ;;  %v1184_v52 = vrot.slane %v1139_v21, %v2912_v61 }
 0x29c   : > { %v1159_v34 = vcombine.low %v1150_v22, %v1158_v27  ;;  %v1160_v35 = vcombine.high %v1150_v22, %v1158_v27  ;;  %v757_v37 = vpack.i.b16 %v745_v28, %v711_v13  ;;  %v760_v38 = vshrl.u32 %v745_v28, 16 }
 0x29d   : > { %v753_v36 = vpack.i.b16 %v752_v31, %v751_v18  ;;  %v773_v39 = vpack.i.b16 %v746_v29, %v712_v14  ;;  %v1143_v40 = vpop.permute.xlu1 %1142  ;;  %v769_v41 = vpack.i.b16 %v768_v33, %v767_v25  ;;  %v776_v42 = vshrl.u32 %v746_v29, 16 }
 0x29e   : > { %v887_v44 = vcombine.low %v749_v30, %v765_v32  ;;  %v1167_v45 = vrot.slane %v1159_v34, %v2918_v1  ;;  %v761_v46 = vpack.i.b16 %v760_v38, %v759_v24  ;;  %v1174_v48 = vrot.slane %v1160_v35, %v2918_v1 }
 0x29f   : > { %v895_v47 = vcombine.low %v757_v37, %v773_v39  ;;  %v1192_v49 = vrot.slane %v1143_v40, %v2912_v61  ;;  %v777_v50 = vpack.i.b16 %v776_v42, %v775_v26  ;;  %v912_v51 = vcombine.low %v753_v36, %v769_v41 }
 0x2a0   : > { %v894_v53 = vrot.slane %v887_v44, %v2912_v61  ;;  %v1175_v55 = vcombine.high %v1167_v45, %v2713_v12  ;;  %v1176_v57 = vcombine.high %v1174_v48, %v2713_v12  ;;  %v1215_v2 = vshrl.u32 %v1167_v45, 16 }
 0x2a1   : > { %v902_v54 = vrot.slane %v895_v47, %v2912_v61  ;;  %v920_v56 = vcombine.low %v761_v46, %v777_v50  ;;  %v1193_v58 = vcombine.low %v1184_v52, %v1192_v49  ;;  %v1194_v60 = vcombine.high %v1184_v52, %v1192_v49 }
 0x2a2   : > { %v919_v62 = vrot.slane %v912_v51, %v2912_v61  ;;  %v1223_v8 = vshrl.u32 %v1175_v55, 16  ;;  %v1231_v9 = vshrl.u32 %v1174_v48, 16  ;;  %v1239_v13 = vshrl.u32 %v1176_v57, 16 }
 0x2a3   : > { %v903_v59 = vcombine.low %v894_v53, %v902_v54  ;;  %v927_v0 = vrot.slane %v920_v56, %v2912_v61  ;;  %v1201_v4 = vrot.slane %v1193_v58, %v2918_v1  ;;  %v1208_v10 = vrot.slane %v1194_v60, %v2918_v1 }
 0x2a5   : > { %v910_v5 = vrot.slane %v903_v59, %v2918_v1  ;;  %v928_v11 = vcombine.low %v919_v62, %v927_v0  ;;  %v1209_v14 = vcombine.high %v1201_v4, %v2713_v12  ;;  %v1216_v15 = vshrl.u32 %v1201_v4, 16 }
 0x2a6   : > { %v1210_v19 = vcombine.high %v1208_v10, %v2713_v12  ;;  %v1213_v20 = vpack.i.b16 %v1201_v4, %v1167_v45  ;;  %v1229_v24 = vpack.i.b16 %v1208_v10, %v1174_v48  ;;  %v1232_v26 = vshrl.u32 %v1208_v10, 16 }
 0x2a7   : > { %v911_v16 = vcombine.high %v910_v5, %v2713_v12  ;;  %v941_v18 = vshrl.u32 %v910_v5, 16  ;;  %v935_v21 = vrot.slane %v928_v11, %v2918_v1  ;;  %v1221_v22 = vpack.i.b16 %v1209_v14, %v1175_v55 }
 0x2a8   : > { %v1224_v23 = vshrl.u32 %v1209_v14, 16  ;;  %v1217_v25 = vpack.i.b16 %v1216_v15, %v1215_v2  ;;  %v1237_v27 = vpack.i.b16 %v1210_v19, %v1176_v57  ;;  %v1240_v28 = vshrl.u32 %v1210_v19, 16 }
 0x2a9   : > { %v936_v29 = vcombine.high %v935_v21, %v2713_v12  ;;  %v939_v30 = vpack.i.b16 %v935_v21, %v910_v5  ;;  %v942_v31 = vshrl.u32 %v935_v21, 16  ;;  %v949_v33 = vshrl.u32 %v911_v16, 16 }
 0x2aa   : > { %v1225_v32 = vpack.i.b16 %v1224_v23, %v1223_v8  ;;  %v1233_v34 = vpack.i.b16 %v1232_v26, %v1231_v9  ;;  %v1241_v35 = vpack.i.b16 %v1240_v28, %v1239_v13  ;;  %v1251_v36 = vcombine.low %v1221_v22, %v1237_v27 }
 0x2ab   : > { %v943_v37 = vpack.i.b16 %v942_v31, %v941_v18  ;;  %v947_v38 = vpack.i.b16 %v936_v29, %v911_v16  ;;  %v950_v39 = vshrl.u32 %v936_v29, 16  ;;  %954 = vst.msk [vmem:[#allocation2] sm:$0xf] %vm953_vm2, %v939_v30  ;;  %v1243_v40 = vcombine.low %v1213_v20, %v1229_v24 }
 0x2ac   : > { %v1268_v41 = vcombine.low %v1217_v25, %v1233_v34  ;;  %v1276_v42 = vcombine.low %v1225_v32, %v1241_v35  ;;  %v1258_v45 = vrot.slane %v1251_v36, %v2912_v61 }
 0x2ad   : > { %v951_v44 = vpack.i.b16 %v950_v39, %v949_v33  ;;  %955 = vst.msk [vmem:[#allocation2 + $0x4] sm:$0xf] %vm953_vm2, %v943_v37  ;;  %956 = vst.msk [vmem:[#allocation2 + $0x8] sm:$0xf] %vm953_vm2, %v947_v38  ;;  %v1250_v48 = vrot.slane %v1243_v40, %v2912_v61 }
 0x2ae   : > { %v1275_v46 = vrot.slane %v1268_v41, %v2912_v61  ;;  %v1283_v47 = vrot.slane %v1276_v42, %v2912_v61 }
 0x2af   : > { %957 = vst.msk [vmem:[#allocation2 + $0xc] sm:$0xf] %vm953_vm2, %v951_v44  ;;  %v1259_v50 = vcombine.low %v1250_v48, %v1258_v45 }
 0x2b0   : > { %v1284_v49 = vcombine.low %v1275_v46, %v1283_v47 }
 0x2b1   : > { %v1266_v56 = vrot.slane %v1259_v50, %v2918_v1 }
 0x2b2   : > { %v1305_v51 = vld [vmem:[#allocation2] sm:$0xf]  ;;  %v1291_v53 = vrot.slane %v1284_v49, %v2918_v1 }
 0x2b3   : > { %v1314_v52 = vsel %vm1309_vm3, %v1305_v51, 0  ;;  %v1267_v60 = vcombine.high %v1266_v56, %v2713_v12  ;;  %v1296_v4 = vshrl.u32 %v1266_v56, 16 }
 0x2b4   : > { %2438 = vmatpush3.bf16.xpose.msra.mxu1 %v1314_v52  ;;  %v1307_v54 = vld [vmem:[#allocation2 + $0x8] sm:$0xf]  ;;  %v1292_v57 = vcombine.high %v1291_v53, %v2713_v12  ;;  %v1306_v58 = vld [vmem:[#allocation2 + $0x4] sm:$0xf]  ;;  %v1295_v59 = vpack.i.b16 %v1291_v53, %v1266_v56  ;;  %v1297_v2 = vshrl.u32 %v1291_v53, 16 }
 0x2b5   : > { %v1406_v55 = vsel %vm1309_vm3, %v1307_v54, 0  ;;  %2443 = vmatprep.subr.bf16.mxu1 %v2706_v17  ;;  %v1360_v62 = vsel %vm1309_vm3, %v1306_v58, 0  ;;  %v1302_v11 = vshrl.u32 %v1267_v60, 16 }
 0x2b6   : > { %2450 = vmatpush3.bf16.xpose.msra.mxu0 %v1406_v55  ;;  %v1301_v0 = vpack.i.b16 %v1292_v57, %v1267_v60  ;;  %v1308_v5 = vld [vmem:[#allocation2 + $0xc] sm:$0xf]  ;;  %v1298_v8 = vpack.i.b16 %v1297_v2, %v1296_v4  ;;  %v1303_v10 = vshrl.u32 %v1292_v57, 16 }
 0x2b7   : > { %2461 = vmatprep.subr.bf16.mxu0 %v2706_v17  ;;  %v1452_v9 = vsel %vm1309_vm3, %v1308_v5, 0 }
 0x2b8   : > { %v1304_v13 = vpack.i.b16 %v1303_v10, %v1302_v11 }
 0x2bb   : > { %2440 = vmatmul.mubr.msk.bf16.vlgmr.msra.gmra.mxu1 %vm1309_vm3, %v1295_v59 }
 0x2bc   : > { %2444 = vmatpush3.bf16.xpose.msra.mxu1 %v1360_v62  ;;  %2445 = vmatprep.mubr.msk.bf16.mxu1 %vm2707_vm1, %v2706_v17 }
 0x2bd   : > { %2452 = vmatmul.mubr.msk.bf16.vlgmr.msra.gmra.mxu0 %vm1309_vm3, %v1301_v0  ;;  %2455 = vmatprep.subr.bf16.mxu1 %v2706_v17 }
 0x2be   : > { %2463 = vmatprep.mubr.msk.bf16.mxu0 %vm2707_vm1, %v2706_v17 }
 0x2c3   : > { %2446 = vmatmul.mubr.msk.bf16.vlgmr.msra.gmra.mxu1 %vm1309_vm3, %v1298_v8 }
 0x2c4   : > { %2456 = vmatpush3.bf16.xpose.msra.mxu1 %v1452_v9  ;;  %2457 = vmatprep.mubr.msk.bf16.mxu1 %vm2707_vm1, %v2706_v17 }
 0x2c5   : > { %2467 = vmatprep.subr.bf16.mxu1 %v2706_v17 }
 0x2cb   : > { %2458 = vmatmul.mubr.msk.bf16.vlgmr.msra.gmra.mxu1 %vm1309_vm3, %v1304_v13 }
 0x2cc   : > { %2469 = vmatprep.mubr.msk.bf16.mxu1 %vm2707_vm1, %v2706_v17 }
 0x37b   : > { %v1350_v14 = vpop.f32.mrf.mxu1 }
 0x37c   : > { %v1494_v15 = vsel %vm1309_vm3, %v1350_v14, -inf }
 0x37d   : > { %1495 = vmax.xlane.f32.xlu0 %v1494_v15  ;;  %v2441_v16 = vpop.f32.mrf.mxu1  ;;  %v1442_v18 = vpop.f32.mrf.mxu0 }
 0x37e   : > { %v1500_v21 = vsel %vm1309_vm3, %v1442_v18, -inf }
 0x37f   : > { %v1353_v19 = vpop.f32.mrf.mxu1  ;;  %v2453_v20 = vpop.f32.mrf.mxu0 }
 0x381   : > { %v2442_v22 = vpop.f32.mrf.mxu1  ;;  %1501 = vmax.xlane.f32.xlu0 %v1500_v21  ;;  %v1445_v23 = vpop.f32.mrf.mxu0 }
 0x383   : > { %v1396_v24 = vpop.f32.mrf.mxu1  ;;  %v2454_v25 = vpop.f32.mrf.mxu0 }
 0x384   : > { %v1497_v26 = vsel %vm1309_vm3, %v1396_v24, -inf }
 0x385   : > { %1498 = vmax.xlane.f32.xlu1 %v1497_v26  ;;  %v2447_v27 = vpop.f32.mrf.mxu1 }
 0x387   : > { %v1399_v28 = vpop.f32.mrf.mxu1 }
 0x389   : > { %v2448_v29 = vpop.f32.mrf.mxu1 }
 0x38b   : > { %v1488_v30 = vpop.f32.mrf.mxu1 }
 0x38c   : > { %v1503_v31 = vsel %vm1309_vm3, %v1488_v30, -inf }
 0x38d   : > { %v2459_v32 = vpop.f32.mrf.mxu1  ;;  %1504 = vmax.xlane.f32.xlu0 %v1503_v31 }
 0x38f   : > { %v1491_v33 = vpop.f32.mrf.mxu1 }
 0x391   : > { %v2460_v34 = vpop.f32.mrf.mxu1 }
 0x396   : > { %781 = vrot.lane.b32.xlu1 %v2922_v6, %s2714_s24 }
 0x39a   : > { %783 = vrot.lane.b32.xlu1 %v2914_v63, %s2714_s24 }
 0x39e   : > { %785 = vrot.lane.b32.xlu1 %v2924_v7, %s2714_s24 }
 0x3a3   : > { %779 = vrot.lane.b32.xlu0 %v2904_v43, %s2714_s24  ;;  %s2717_s24 = smov 24  }
 0x406   : > { %v1496_v35 = vpop.xlane.xlu0 %1495 }
 0x407   : > { %v1506_v36 = vsub.f32 %v1350_v14, %v1496_v35 }
 0x409   : > { %v1510_v37 = vmul.f32 1.442695, %v1506_v36 }
 0x40a   : > { %v1502_v38 = vpop.xlane.xlu0 %1501 }
 0x40b   : > { %2608 = vpow2.f32 %v1510_v37  ;;  %v1508_v39 = vsub.f32 %v1442_v18, %v1502_v38 }
 0x40d   : > { %v1514_v40 = vmul.f32 1.442695, %v1508_v39 }
 0x40e   : > { %v1499_v41 = vpop.xlane.xlu1 %1498 }
 0x40f   : > { %2610 = vpow2.f32 %v1514_v40  ;;  %v1507_v42 = vsub.f32 %v1396_v24, %v1499_v41 }
 0x411   : > { %v1512_v44 = vmul.f32 1.442695, %v1507_v42 }
 0x412   : > { %v782_v45 = vpop.permute.xlu1 %781 }
 0x413   : > { %2612 = vpow2.f32 %v1512_v44  ;;  %v828_v48 = vrot.slane %v782_v45, %v2912_v61 }
 0x416   : > { %v784_v6 = vpop.permute.xlu1 %783  ;;  %v1505_v46 = vpop.xlane.xlu0 %1504 }
 0x417   : > { %v1509_v63 = vsub.f32 %v1488_v30, %v1505_v46  ;;  %v802_v51 = vrot.slane %v784_v6, %v2912_v61 }
 0x418   : > { %v2998_v47 = vpop.eup %2608 }
 0x419   : > { %v1516_v7 = vmul.f32 1.442695, %v1509_v63  ;;  %v1518_v43 = vsel %vm1309_vm3, %v2998_v47, 0.0 }
 0x41a   : > { %v786_v49 = vpop.permute.xlu1 %785  ;;  %1519 = vadd.xlane.f32.xlu0 %v1518_v43  ;;  %v780_v50 = vpop.permute.xlu0 %779 }
 0x41b   : > { %2614 = vpow2.f32 %v1516_v7  ;;  %v836_v52 = vrot.slane %v786_v49, %v2912_v61  ;;  %v794_v53 = vrot.slane %v780_v50, %v2912_v61 }
 0x41c   : > { %v3006_v54 = vpop.eup %2610 }
 0x41d   : > { %v837_v55 = vcombine.low %v828_v48, %v836_v52  ;;  %v838_v56 = vcombine.high %v828_v48, %v836_v52  ;;  %v803_v57 = vcombine.low %v794_v53, %v802_v51  ;;  %v804_v58 = vcombine.high %v794_v53, %v802_v51 }
 0x41e   : > { %v1524_v59 = vsel %vm1309_vm3, %v3006_v54, 0.0 }
 0x41f   : > { %v845_v60 = vrot.slane %v837_v55, %v2918_v1  ;;  %v852_v62 = vrot.slane %v838_v56, %v2918_v1  ;;  %v811_v0 = vrot.slane %v803_v57, %v2918_v1  ;;  %v818_v2 = vrot.slane %v804_v58, %v2918_v1  ;;  %1525 = vadd.xlane.f32.xlu0 %v1524_v59 }
 0x420   : > { %v3016_v10 = vpop.eup %2612 }
 0x421   : > { %v853_v4 = vcombine.high %v845_v60, %v2713_v12  ;;  %v854_v5 = vcombine.high %v852_v62, %v2713_v12  ;;  %v860_v8 = vshrl.u32 %v845_v60, 16  ;;  %v876_v9 = vshrl.u32 %v852_v62, 16 }
 0x422   : > { %v819_v11 = vcombine.high %v811_v0, %v2713_v12  ;;  %v820_v13 = vcombine.high %v818_v2, %v2713_v12  ;;  %v857_v14 = vpack.i.b16 %v845_v60, %v811_v0  ;;  %v859_v15 = vshrl.u32 %v811_v0, 16 }
 0x423   : > { %v868_v16 = vshrl.u32 %v853_v4, 16  ;;  %v884_v18 = vshrl.u32 %v854_v5, 16  ;;  %v873_v19 = vpack.i.b16 %v852_v62, %v818_v2  ;;  %v875_v20 = vshrl.u32 %v818_v2, 16 }
 0x424   : > { %v861_v21 = vpack.i.b16 %v860_v8, %v859_v15  ;;  %v865_v22 = vpack.i.b16 %v853_v4, %v819_v11  ;;  %v867_v23 = vshrl.u32 %v819_v11, 16  ;;  %v881_v24 = vpack.i.b16 %v854_v5, %v820_v13 }
 0x425   : > { %v877_v25 = vpack.i.b16 %v876_v9, %v875_v20  ;;  %v883_v26 = vshrl.u32 %v820_v13, 16  ;;  %v958_v27 = vcombine.low %v857_v14, %v873_v19  ;;  %v1521_v28 = vsel %vm1309_vm3, %v3016_v10, 0.0 }
 0x426   : > { %v869_v29 = vpack.i.b16 %v868_v16, %v867_v23  ;;  %v966_v30 = vcombine.low %v865_v22, %v881_v24  ;;  %1522 = vadd.xlane.f32.xlu1 %v1521_v28 }
 0x427   : > { %v885_v31 = vpack.i.b16 %v884_v18, %v883_v26  ;;  %v983_v32 = vcombine.low %v861_v21, %v877_v25  ;;  %v965_v34 = vrot.slane %v958_v27, %v2912_v61 }
 0x428   : > { %v3022_v33 = vpop.eup %2614  ;;  %v973_v35 = vrot.slane %v966_v30, %v2912_v61 }
 0x429   : > { %v991_v36 = vcombine.low %v869_v29, %v885_v31  ;;  %v1527_v37 = vsel %vm1309_vm3, %v3022_v33, 0.0  ;;  %v990_v39 = vrot.slane %v983_v32, %v2912_v61 }
 0x42a   : > { %v974_v38 = vcombine.low %v965_v34, %v973_v35  ;;  %1528 = vadd.xlane.f32.xlu0 %v1527_v37 }
 0x42b   : > { %v998_v40 = vrot.slane %v991_v36, %v2912_v61 }
 0x42c   : > { %v981_v41 = vrot.slane %v974_v38, %v2918_v1 }
 0x42d   : > { %v999_v42 = vcombine.low %v990_v39, %v998_v40 }
 0x42e   : > { %v982_v44 = vcombine.high %v981_v41, %v2713_v12  ;;  %v1012_v63 = vshrl.u32 %v981_v41, 16 }
 0x42f   : > { %v1006_v45 = vrot.slane %v999_v42, %v2918_v1 }
 0x430   : > { %v1020_v49 = vshrl.u32 %v982_v44, 16 }
 0x431   : > { %v1007_v6 = vcombine.high %v1006_v45, %v2713_v12  ;;  %v1010_v46 = vpack.i.b16 %v1006_v45, %v981_v41  ;;  %v1013_v7 = vshrl.u32 %v1006_v45, 16 }
 0x433   : > { %v1014_v43 = vpack.i.b16 %v1013_v7, %v1012_v63  ;;  %v1018_v48 = vpack.i.b16 %v1007_v6, %v982_v44  ;;  %v1021_v50 = vshrl.u32 %v1007_v6, 16  ;;  %1024 = vst.msk [vmem:[#allocation3] sm:$0xf] %vm953_vm2, %v1010_v46  ;;  %v2592_v6 = vld [vmem:[%s3202_s7 + $0x8] sm:$0xff]  }
 0x435   : > { %v1022_v51 = vpack.i.b16 %v1021_v50, %v1020_v49  ;;  %1025 = vst.msk [vmem:[#allocation3 + $0x4] sm:$0xf] %vm953_vm2, %v1014_v43  ;;  %1026 = vst.msk [vmem:[#allocation3 + $0x8] sm:$0xf] %vm953_vm2, %v1018_v48 }
 0x437   : > { %1027 = vst.msk [vmem:[#allocation3 + $0xc] sm:$0xf] %vm953_vm2, %v1022_v51 }
 0x43a   : > { %v1542_v52 = vld [vmem:[#allocation3] sm:$0xf] }
 0x43b   : > { %v1551_v12 = vsel %vm1549_vm4, %v1542_v52, 0 }
 0x43c   : > { %2462 = vmatpush3.bf16.msra.mxu0 %v1551_v12  ;;  %v1543_v53 = vld [vmem:[#allocation3 + $0x4] sm:$0xf]  ;;  %v1544_v0 = vld [vmem:[#allocation3 + $0x8] sm:$0xf]  ;;  %v2593_v12 = vld [vmem:[%s3202_s7] sm:$0xff]  }
 0x43d   : > { %v1597_v55 = vsel %vm1549_vm4, %v1543_v53, 0  ;;  %2473 = vmatprep.subr.bf16.mxu0 %v2706_v17  ;;  %v1643_v5 = vsel %vm1549_vm4, %v1544_v0, 0 }
 0x43e   : > { %2468 = vmatpush3.bf16.msra.mxu1 %v1597_v55  ;;  %v1545_v13 = vld [vmem:[#allocation3 + $0xc] sm:$0xf] }
 0x43f   : > { %2479 = vmatprep.subr.bf16.mxu1 %v2706_v17  ;;  %v1689_v16 = vsel %vm1549_vm4, %v1545_v13, 0 }
 0x4a3   : > { %v1520_v56 = vpop.xlane.xlu0 %1519 }
 0x4a4   : > { %2616 = vrcp.f32 %v1520_v56 }
 0x4a8   : > { %v1526_v57 = vpop.xlane.xlu0 %1525 }
 0x4a9   : > { %2618 = vrcp.f32 %v1526_v57 }
 0x4af   : > { %v1523_v58 = vpop.xlane.xlu1 %1522 }
 0x4b0   : > { %2620 = vrcp.f32 %v1523_v58 }
 0x4b1   : > { %v2617_v59 = vpop.eup %2616 }
 0x4b2   : > { %v1531_v60 = vmul.f32 %v2617_v59, %v2998_v47 }
 0x4b3   : > { %v1529_v62 = vpop.xlane.xlu0 %1528 }
 0x4b4   : > { %2622 = vrcp.f32 %v1529_v62  ;;  %v1538_v2 = vpack.c.bf16 %v1531_v60, %v1531_v60 }
 0x4b6   : > { %v2619_v4 = vpop.eup %2618  ;;  %2464 = vmatmul.mubr.msk.bf16.vlgmr.msra.gmra.mxu0 %vm1309_vm3, %v1538_v2 }
 0x4b7   : > { %2474 = vmatpush3.bf16.msra.mxu0 %v1643_v5  ;;  %2475 = vmatprep.mubr.msk.bf16.mxu0 %vm2707_vm1, %v2706_v17  ;;  %v1535_v8 = vmul.f32 %v2619_v4, %v3006_v54 }
 0x4b8   : > { %2485 = vmatprep.subr.bf16.mxu0 %v2706_v17 }
 0x4b9   : > { %v1540_v9 = vpack.c.bf16 %v1535_v8, %v1535_v8 }
 0x4bd   : > { %v2621_v11 = vpop.eup %2620 }
 0x4be   : > { %v1533_v47 = vmul.f32 %v2621_v11, %v3016_v10  ;;  %2476 = vmatmul.mubr.msk.bf16.vlgmr.msra.gmra.mxu0 %vm1309_vm3, %v1540_v9 }
 0x4bf   : > { %2489 = vmatprep.mubr.msk.bf16.mxu0 %vm2707_vm1, %v2706_v17  ;;  %2486 = vmatpush3.bf16.msra.mxu0 %v2592_v6  ;;  %v2597_v6 = vld [vmem:[%s3208_s13 + $0x30] sm:$0xff]  }
 0x4c0   : > { %v1539_v14 = vpack.c.bf16 %v1533_v47, %v1533_v47  ;;  %2487 = vmatprep.subr.bf16.mxu0 %v2706_v17 }
 0x4c1   : > { %v2623_v15 = vpop.eup %2622 }
 0x4c2   : > { %2470 = vmatmul.mubr.msk.bf16.vlgmr.msra.gmra.mxu1 %vm1309_vm3, %v1539_v14  ;;  %v1537_v54 = vmul.f32 %v2623_v15, %v3022_v33 }
 0x4c3   : > { %2480 = vmatpush3.bf16.msra.mxu1 %v1689_v16  ;;  %2481 = vmatprep.mubr.msk.bf16.mxu1 %vm2707_vm1, %v2706_v17 }
 0x4c4   : > { %2493 = vmatprep.subr.bf16.mxu1 %v2706_v17  ;;  %v1541_v10 = vpack.c.bf16 %v1537_v54, %v1537_v54  ;;  %2488 = vmatpush3.bf16.msra.mxu0 %v2593_v12 }
 0x4c5   : > { %2501 = vmatprep.subr.bf16.mxu0 %v2706_v17 }
 0x4ca   : > { %2482 = vmatmul.mubr.msk.bf16.vlgmr.msra.gmra.mxu1 %vm1309_vm3, %v1541_v10  ;;  %v2361_v10 = vld [vmem:[%s3203_s8] ss:$0 sm:$0xff] }
 0x4cb   : > { %2497 = vmatprep.mubr.msk.bf16.mxu1 %vm2707_vm1, %v2706_v17 }
 0x576   : > { %v1587_v18 = vpop.f32.mrf.mxu0 }
 0x578   : > { %v2465_v19 = vpop.f32.mrf.mxu0 }
 0x57a   : > { %v1590_v20 = vpop.f32.mrf.mxu0 }
 0x57b   : > { %v2367_v20 = vld [vmem:[%s3209_s14] ss:$0 sm:$0xff] }
 0x57c   : > { %v2466_v21 = vpop.f32.mrf.mxu0 }
 0x57e   : > { %v1679_v22 = vpop.f32.mrf.mxu0 }
 0x57f   : > { %v1731_v30 = vcombine.low %v1587_v18, %v1679_v22  ;;  %v1732_v31 = vcombine.high %v1587_v18, %v1679_v22 }
 0x580   : > { %v2477_v23 = vpop.f32.mrf.mxu0 }
 0x581   : > { %v1739_v36 = vrot.slane %v1731_v30, %v2912_v61  ;;  %v1746_v37 = vrot.slane %v1732_v31, %v2912_v61 }
 0x582   : > { %v1633_v24 = vpop.f32.mrf.mxu1  ;;  %v1682_v25 = vpop.f32.mrf.mxu0 }
 0x584   : > { %v2471_v26 = vpop.f32.mrf.mxu1  ;;  %v2478_v27 = vpop.f32.mrf.mxu0 }
 0x586   : > { %v1636_v28 = vpop.f32.mrf.mxu1 }
 0x588   : > { %v2472_v29 = vpop.f32.mrf.mxu1 }
 0x58a   : > { %v1725_v32 = vpop.f32.mrf.mxu1 }
 0x58b   : > { %v1747_v33 = vcombine.low %v1633_v24, %v1725_v32  ;;  %v1748_v34 = vcombine.high %v1633_v24, %v1725_v32  ;;  %v2594_v32 = vld [vmem:[%s3206_s11 + $0x8] sm:$0xff]  }
 0x58c   : > { %v2483_v35 = vpop.f32.mrf.mxu1  ;;  %2494 = vmatpush3.bf16.msra.mxu1 %v2594_v32 }
 0x58d   : > { %v1755_v38 = vrot.slane %v1747_v33, %v2912_v61  ;;  %v1762_v39 = vrot.slane %v1748_v34, %v2912_v61  ;;  %2495 = vmatprep.subr.bf16.mxu1 %v2706_v17 }
 0x58e   : > { %v1728_v40 = vpop.f32.mrf.mxu1 }
 0x58f   : > { %v1763_v41 = vcombine.low %v1739_v36, %v1755_v38  ;;  %v1764_v42 = vcombine.high %v1739_v36, %v1755_v38  ;;  %v1779_v44 = vcombine.low %v1746_v37, %v1762_v39  ;;  %v1780_v45 = vcombine.high %v1746_v37, %v1762_v39  ;;  %v2365_v37 = vld [vmem:[%s3204_s9] ss:$0 sm:$0xff] }
 0x590   : > { %v2484_v46 = vpop.f32.mrf.mxu1  ;;  %v2366_v39 = vld [vmem:[%s3205_s10] ss:$0 sm:$0xff] }
 0x591   : > { %v1771_v63 = vrot.slane %v1763_v41, %v2918_v1  ;;  %v1778_v7 = vrot.slane %v1764_v42, %v2918_v1  ;;  %v1787_v43 = vrot.slane %v1779_v44, %v2918_v1  ;;  %v1794_v48 = vrot.slane %v1780_v45, %v2918_v1  ;;  %v2596_v45 = vld [vmem:[%s3208_s13 + $0x38] sm:$0xff]   ;;  %v2598_v46 = vld [vmem:[%s3208_s13 + $0x28] sm:$0xff]  }
 0x593   : > { %v1799_v49 = vcombine.low %v1771_v63, %v1778_v7  ;;  %v2359_v50 = vcombine.high %v1771_v63, %v1778_v7  ;;  %v1815_v51 = vcombine.low %v1787_v43, %v1794_v48  ;;  %v2360_v52 = vcombine.high %v1787_v43, %v1794_v48  ;;  %v2599_v63 = vld [vmem:[%s3208_s13 + $0x20] sm:$0xff]   ;;  %v2600_v7 = vld [vmem:[%s3208_s13 + $0x18] sm:$0xff]   ;;  %v2601_v43 = vld [vmem:[%s3208_s13 + $0x10] sm:$0xff]  }
 0x594   : > { %v2602_v48 = vld [vmem:[%s3208_s13 + $0x8] sm:$0xff]  }
 0x595   : > { %v1806_v53 = vrot.slane %v1799_v49, %v2912_v61  ;;  %v1814_v55 = vrot.slane %v2359_v50, %v2912_v61  ;;  %v1822_v56 = vrot.slane %v1815_v51, %v2912_v61  ;;  %v1830_v57 = vrot.slane %v2360_v52, %v2912_v61  ;;  %v2603_v49 = vld [vmem:[%s3208_s13] sm:$0xff]  }
 0x596   : > { %v2368_v50 = vld [vmem:[%s3207_s12] ss:$0 sm:$0xff] }
 0x597   : > { %v1832_v58 = vcombine.high %v1806_v53, %v1814_v55  ;;  %v1848_v59 = vcombine.high %v1822_v56, %v1830_v57  ;;  %v1831_v60 = vcombine.low %v1806_v53, %v1814_v55  ;;  %v1847_v62 = vcombine.low %v1822_v56, %v1830_v57 }
 0x599   : > { %v1846_v0 = vrot.slane %v1832_v58, %v2918_v1  ;;  %v1862_v2 = vrot.slane %v1848_v59, %v2918_v1  ;;  %v1839_v4 = vrot.slane %v1831_v60, %v2918_v1  ;;  %v1855_v5 = vrot.slane %v1847_v62, %v2918_v1 }
 0x59b   : > { %v1865_v8 = vcombine.low %v1846_v0, %v1862_v2  ;;  %v1864_v9 = vcombine.high %v1839_v4, %v1855_v5  ;;  %v1863_v11 = vcombine.low %v1839_v4, %v1855_v5  ;;  %v1866_v61 = vcombine.high %v1846_v0, %v1862_v2 }
 0x59d   : > { %1872 = vrot.lane.b32.xlu1 %v1865_v8, %s2715_s29  ;;  %1868 = vrot.lane.b32.xlu0 %v1864_v9, %s2716_s17 }
 0x5a1   : > { %1876 = vrot.lane.b32.xlu1 %v1866_v61, %s2717_s24  ;;  %s3154_s24 = scalar_lea.hbm %s3210_s15, %s2381_s26 }
 0x60f   : > { %v1873_v47 = vpop.permute.xlu1 %1872  ;;  %v1869_v13 = vpop.permute.xlu0 %1868 }
 0x610   : > { %v1879_v14 = vsel %vm1309_vm3, %v1863_v11, %v1869_v13 }
 0x611   : > { %v1881_v16 = vsel %vm1880_vm5, %v1879_v14, %v1873_v47 }
 0x613   : > { %v1877_v15 = vpop.permute.xlu1 %1876 }
 0x614   : > { %v1883_v54 = vsel %vm1882_vm6, %v1881_v16, %v1877_v15 }
 0x615   : > { %v1884_v1 = vpack.c.bf16 %v1883_v54, %v1883_v54 }
 0x617   : > { %2490 = vmatmul.mubr.msk.bf16.vlgmr.msra.gmra.mxu0 %vm576_vm0, %v1884_v1 }
 0x618   : > { %2517 = vmatprep.mubr.msk.bf16.mxu0 %vm2707_vm1, %v2706_v17  ;;  %2502 = vmatpush3.bf16.msra.mxu0 %v2596_v45 }
 0x619   : > { %2503 = vmatprep.subr.bf16.mxu0 %v2706_v17 }
 0x61c   : > { %2504 = vmatpush3.bf16.msra.mxu0 %v2597_v6 }
 0x61d   : > { %2505 = vmatprep.subr.bf16.mxu0 %v2706_v17 }
 0x620   : > { %2506 = vmatpush3.bf16.msra.mxu0 %v2598_v46 }
 0x621   : > { %2507 = vmatprep.subr.bf16.mxu0 %v2706_v17 }
 0x624   : > { %2508 = vmatpush3.bf16.msra.mxu0 %v2599_v63 }
 0x625   : > { %2509 = vmatprep.subr.bf16.mxu0 %v2706_v17 }
 0x628   : > { %2510 = vmatpush3.bf16.msra.mxu0 %v2600_v7 }
 0x629   : > { %2511 = vmatprep.subr.bf16.mxu0 %v2706_v17 }
 0x62c   : > { %2512 = vmatpush3.bf16.msra.mxu0 %v2601_v43 }
 0x62d   : > { %2513 = vmatprep.subr.bf16.mxu0 %v2706_v17 }
 0x630   : > { %2514 = vmatpush3.bf16.msra.mxu0 %v2602_v48 }
 0x631   : > { %2515 = vmatprep.subr.bf16.mxu0 %v2706_v17 }
 0x634   : > { %2516 = vmatpush3.bf16.msra.mxu0 %v2603_v49 }
 0x6d7   : > { %v1945_v18 = vpop.f32.mrf.mxu0 }
 0x6d8   : > { %v1946_v19 = vadd.f32 %v2361_v10, %v1945_v18 }
 0x6d9   : > { %v2491_v21 = vpop.f32.mrf.mxu0 }
 0x6da   : > { %v1951_v22 = vadd.f32 %v1946_v19, %v2859_v3  ;;  %v2595_v3 = vld [vmem:[%s3206_s11] sm:$0xff]  }
 0x6db   : > { %v1948_v23 = vpop.f32.mrf.mxu0  ;;  %2496 = vmatpush3.bf16.msra.mxu1 %v2595_v3 }
 0x6dc   : > { %v1993_v24 = vadd.f32 %v2367_v20, %v1951_v22  ;;  %v1954_v25 = vsel %vm576_vm0, %v1951_v22, 0.0 }
 0x6dd   : > { %1955 = vadd.xlane.f32.xlu1 %v1954_v25  ;;  %v2492_v26 = vpop.f32.mrf.mxu0 }
 0x6de   : > { %1995 = vst.msk [vmem:[#allocation5] sm:$0xff] %vm576_vm0, %v1993_v24 }
 0x6e5   : > { %v2079_v5 = vld [vmem:[#allocation5] sm:$0xff] }
 0x766   : > { %v1956_v27 = vpop.xlane.xlu1 %1955 }
 0x767   : > { %v1957_v28 = vmul.f32 0.03125, %v1956_v27 }
 0x769   : > { %v1958_v29 = vsub.f32 %v1951_v22, %v1957_v28 }
 0x76b   : > { %v1959_v30 = vmul.f32 %v1958_v29, %v1958_v29 }
 0x76d   : > { %v1960_v31 = vsel %vm576_vm0, %v1959_v30, 0.0 }
 0x76e   : > { %1961 = vadd.xlane.f32.xlu0 %v1960_v31 }
 0x7f7   : > { %v1962_v33 = vpop.xlane.xlu0 %1961 }
 0x7f8   : > { %v1963_v34 = vmul.f32 0.03125, %v1962_v33 }
 0x7fa   : > { %v1964_v35 = vadd.f32 1e-05, %v1963_v34 }
 0x7fc   : > { %2624 = vrsqrt.f32 %v1964_v35 }
 0x809   : > { %v2625_v36 = vpop.eup %2624 }
 0x80a   : > { %v1966_v38 = vmul.f32 %v2625_v36, %v1958_v29 }
 0x80c   : > { %v1973_v40 = vmul.f32 %v2365_v37, %v1966_v38 }
 0x80e   : > { %v1980_v41 = vadd.f32 %v2366_v39, %v1973_v40 }
 0x810   : > { %v1981_v42 = vpack.c.bf16 %v1980_v41, %v1980_v41 }
 0x812   : > { %1985 = vst.msk [vmem:[#allocation4] sm:$0xf] %vm1984_vm7, %v1981_v42 }
 0x819   : > { %v2000_v44 = vld [vmem:[#allocation4] sm:$0xf] }
 0x81a   : > { %2498 = vmatmul.mubr.msk.bf16.vlgmr.msra.gmra.mxu1 %vm576_vm0, %v2000_v44 }
 0x8da   : > { %v2062_v51 = vpop.f32.mrf.mxu1 }
 0x8db   : > { %v2063_v52 = vadd.f32 %v2368_v50, %v2062_v51 }
 0x8dc   : > { %v2499_v12 = vpop.f32.mrf.mxu1 }
 0x8dd   : > { %v2069_v53 = vmul.f32 0.044715, %v2063_v52  ;;  %v2068_v17 = vmul.f32 0.5, %v2063_v52 }
 0x8de   : > { %v2065_v55 = vpop.f32.mrf.mxu1 }
 0x8df   : > { %v2070_v56 = vmul.f32 %v2069_v53, %v2063_v52 }
 0x8e0   : > { %v2500_v57 = vpop.f32.mrf.mxu1 }
 0x8e1   : > { %v2071_v58 = vmul.f32 %v2070_v56, %v2063_v52 }
 0x8e3   : > { %v2072_v59 = vadd.f32 %v2071_v58, %v2063_v52 }
 0x8e5   : > { %v2073_v60 = vmul.f32 0.7978846, %v2072_v59 }
 0x8e7   : > { %2626 = vtanh.f32 %v2073_v60 }
 0x8f4   : > { %v2627_v62 = vpop.eup %2626 }
 0x8f5   : > { %v2075_v0 = vadd.f32 1.0, %v2627_v62 }
 0x8f7   : > { %v2076_v2 = vmul.f32 %v2075_v0, %v2068_v17 }
 0x8f9   : > { %v2077_v4 = vpack.c.bf16 %v2076_v2, %v2076_v2 }
 0x8fb   : > { %2518 = vmatmul.mubr.bf16.vlgmr.msra.gmra.mxu0 %v2077_v4 }
 0x9bb   : > { %v2178_v8 = vpop.f32.mrf.mxu0 }
 0x9bc   : > { %v2184_v9 = vadd.f32 %v2178_v8, %v2079_v5 }
 0x9bd   : > { %v2519_v11 = vpop.f32.mrf.mxu0 }
 0x9be   : > { %2185 = vst.msk [vmem:[#allocation5] sm:$0xff] %vm576_vm0, %v2184_v9 }
 0x9bf   : > { %v2181_v61 = vpop.f32.mrf.mxu0 }
 0x9c1   : > { %v2520_v47 = vpop.f32.mrf.mxu0 }
 0x9c5   : > { %v2189_v13 = vld [vmem:[#allocation5] sm:$0xff] }
 0x9c6   : > { %2190 = vst.msk [vmem:[%s546_s0] sm:$0xff] %vm576_vm0, %v2189_v13 }
 0x9c7   : > { %2641 = shalt.err (!%p2638_p5)
}
 0x9c8   : > { %s2642_s18 = scalar_lea.hbm %s3154_s24, 128  ;;  %s2646_s3 = scalar_lea.hbm %s3210_s15, 256 }
 0x9c9   : > { %p2643_p6 = scmp.ne.s32.totalorder %s3154_s24, %s2642_s18  ;;  %p2647_p10 = scmp.lt.s32.totalorder %s3154_s24, %s3210_s15 }
 0x9ca   : > { %p2648_p11 = scmp.lt.s32.totalorder %s2646_s3, %s2642_s18 }
 0x9cb   : > { %p2644_p7 = pnand %p2643_p6, %p2839_p4 }
 0x9cc   : > { %p2649_p12 = por %p2648_p11, %p2647_p10 }
 0x9cd   : > { %p2645_p9 = pneg %p2644_p7 }
 0x9cf   : > { %p2650_p13 = pnand %p2649_p12, %p2645_p9 }
 0x9d1   : > { %2653 = shalt.err (!%p2650_p13)
}
 0x9d2   : > { %2521 = dma.vmem_to_hbm [thread:$0]  (%p2839_p4), %s2207_s27, 128, %s3154_s24, %s2192_s1  }
 0x9d3 PF: > { %s3227_s2 = sld [smem:[#allocation9_spill]]  ;;  %p2527_p0 = scmp.ge.s32.totalorder %s2704_s23, 2 }
 0x9d5   : > { %p2524_p1 = pnand %p2527_p0, %p2846_p8 }
 0x9d7   : > { %p2525_p2 = pneg %p2524_p1 }
 0x9d9   : > { %s2218_s4 = sand.u32 1, %s3227_s2  }
 0x9da   : > { %s2219_s17 = scalar_lea.sflag [#allocation7], %s2218_s4 }
 0x9db   : > { %2679 = dma.done.wait (%p2525_p2), %s2219_s17, 128  }
 0x9dc   : > { %2681 = vsyncadd (%p2525_p2), %s2219_s17, 4294967168  ;;  %s28_s23 = sadd.s32 1, %s2704_s23   ;;  %s3228_s1 = sld [smem:[#allocation10_spill]] }
 0x9dd   : > { %p25_p3 = scmp.ge.s32.totalorder %s28_s23, 4   ;;  %s3229_s18 = smov %s2688_s19 }
 0x9de   : > { %s3230_s19 = smov %s2692_s20  ;;  %s3231_s20 = smov %s2852_s16 }
 0x9df   : > { %s3232_s21 = smov %s2700_s22  ;;  %27 = sbr.rel (!%p25_p3) target bundleno = 10 (0xa), region = 141 }
 0x9e2   : > { %s3233_s22 = smov %s3228_s1 }
 0x9e4   :  { %2224 = vsyncpa [#allocation7], 1 }
 0x9e5   :  { %2226 = vsyncpa [#allocation7 + $0x1], 1 }

// kernel: tpu_custom_call.1
= control target key start
LH: loop header
LB: loop body
LE: loop exit
PB: predicated region body
PF: predicated region fallthrough
CT: control target
= control target key end

     0   :  { %s3195_s0 = inlined_call_operand.vmem [shape: bf16[2,8,32], index: 0, kind: input, shape index: {}]   ;;  %s3196_s1 = inlined_call_operand.vmem [shape: f32[1,32], index: 1, kind: input, shape index: {}]   ;;  %s3197_s2 = inlined_call_operand.vmem [shape: f32[1,32], index: 2, kind: input, shape index: {}]   ;;  %s3198_s3 = inlined_call_operand.vmem [shape: bf16[32,32], index: 3, kind: input, shape index: {}]   ;;  %s3199_s4 = inlined_call_operand.vmem [shape: f32[1,32], index: 4, kind: input, shape index: {}]   ;;  %s3200_s5 = inlined_call_operand.vmem [shape: bf16[32,64], index: 5, kind: input, shape index: {}]   ;;  %s3201_s6 = inlined_call_operand.vmem [shape: f32[1,64], index: 6, kind: input, shape index: {}]   ;;  %s3202_s7 = inlined_call_operand.vmem [shape: bf16[32,32], index: 7, kind: input, shape index: {}]   ;;  %s3203_s8 = inlined_call_operand.vmem [shape: f32[1,32], index: 8, kind: input, shape index: {}]   ;;  %s3204_s9 = inlined_call_operand.vmem [shape: f32[1,32], index: 9, kind: input, shape index: {}]   ;;  %s3205_s10 = inlined_call_operand.vmem [shape: f32[1,32], index: 10, kind: input, shape index: {}]   ;;  %s3206_s11 = inlined_call_operand.vmem [shape: bf16[32,128], index: 11, kind: input, shape index: {}]   ;;  %s3207_s12 = inlined_call_operand.vmem [shape: f32[1,128], index: 12, kind: input, shape index: {}]   ;;  %s3208_s13 = inlined_call_operand.vmem [shape: bf16[128,32], index: 13, kind: input, shape index: {}]   ;;  %s3209_s14 = inlined_call_operand.vmem [shape: f32[1,32], index: 14, kind: input, shape index: {}]   ;;  %s3210_s15 = inlined_call_operand.hbm [shape: f32[2,8,32], index: 15, kind: output, shape index: {}]  }
   0x1   :  { %3213 = sst [smem:[#allocation11_spill]] %s3195_s0 }
   0x2   :  { %3214 = sst [smem:[#allocation12_spill]] %s3196_s1 }
   0x3   :  { %3215 = sst [smem:[#allocation13_spill]] %s3197_s2 }
   0x4   :  { %3216 = sst [smem:[#allocation14_spill]] %s3198_s3 }
   0x5   :  { %3217 = sst [smem:[#allocation15_spill]] %s3199_s4 }
   0x6   :  { %20 = vsyncpa [#allocation7], 0 }
   0x7   :  { %22 = vsyncpa [#allocation7 + $0x1], 0  ;;  %s2799_s18 = smov 0   ;;  %s2801_s19 = smov 0  }
   0x8   :  { %s2803_s20 = smov 0   ;;  %s2805_s21 = smov 0  }
   0x9   :  { %s2807_s22 = smov 0   ;;  %s2809_s23 = smov 0  }
   0xa LB: > { %3218 = sst [smem:[#allocation9_spill]] %s2684_s18  ;;  %s2329_s24 = sadd.s32 4294967295, %s2704_s23   ;;  %s2704_s23 = sphi %s2809_s23, %s28_s23   ;;  %s2700_s22 = sphi %s2807_s22, %s3233_s22   ;;  %s2696_s21 = sphi %s2805_s21, %s3232_s21   ;;  %s2692_s20 = sphi %s2803_s20, %s3231_s20   ;;  %s2688_s19 = sphi %s2801_s19, %s3230_s19   ;;  %s2684_s18 = sphi %s2799_s18, %s3229_s18  }
   0xb   : > { %s2330_s25 = sadd.s32 4294967294, %s2704_s23   ;;  %s47_s26 = sadd.s32 1, %s2700_s22 }
   0xc   : > { %s391_s27 = sadd.s32 1, %s2692_s20  ;;  %p49_p0 = scmp.ge.s32.totalorder %s47_s26, 2 }
   0xd   : > { %p401_p1 = scmp.ne.s32.totalorder %s2692_s20, %s2688_s19  ;;  %p402_p2 = scmp.eq.s32.totalorder %s2329_s24, 1 }
   0xe   : > { %p407_p3 = scmp.ne.s32.totalorder %s2688_s19, %s2684_s18  ;;  %s3235_s26 = smov (%p49_p0, %s47_s26), 0 }
   0xf   : > { %3219 = sst [smem:[#allocation10_spill]] %s3235_s26  ;;  %p2839_p4 = por %p402_p2, %p401_p1 }
  0x10   : > { %p408_p5 = scmp.eq.s32.totalorder %s2330_s25, 1  ;;  %s386_s29 = ssub.s32 %s2700_s22, %s3235_s26 }
  0x11   : > { %p2336_p6 = scmp.ge.s32.totalorder %s2704_s23, 1  ;;  %p389_p7 = scmp.eq.s32.totalorder %s386_s29, 0 }
  0x12   : > { %p2846_p8 = por %p408_p5, %p407_p3  ;;  %p488_p9 = scmp.lt.s32.totalorder %s2704_s23, 3 }
  0x13   : > { %s2852_s16 = scalar_select %p389_p7, %s2692_s20, %s391_s27  }
  0x14   : > { %p489_p10 = pnand %p2336_p6, %p488_p9 }
  0x15   : > { %p547_p11 = scmp.lt.s32.totalorder (!%p489_p10), %s2696_s21, 1  ;;  %s3222_s0 = sld [smem:[#allocation11_spill]] (!%p489_p10) }
  0x16   : > { %492 = sbr.rel (%p489_p10) target bundleno = 2515 (0x9d3), region = 80  ;;  %s3223_s1 = sld [smem:[#allocation12_spill]] (!%p489_p10) }
  0x17   : > { %s3224_s2 = sld [smem:[#allocation13_spill]] (!%p489_p10)  ;;  %s2708_s18 = smov (!%p489_p10), 120  }
  0x18   : > { %s3225_s3 = sld [smem:[#allocation14_spill]] (!%p489_p10)  ;;  %s2715_s29 = smov (!%p489_p10), 16  }
  0x19   : > { %s3226_s4 = sld [smem:[#allocation15_spill]] (!%p489_p10)  ;;  %s544_s25 = sand.u32 (!%p489_p10), 1, %s2688_s19  }
  0x1b   : > { %s548_s17 = scalar_select %p547_p11, %s2696_s21, 1  ;;  %vm576_vm0 = vcmask 261120   ;;  %v2588_v16 = vld [vmem:[%s3200_s5 + $0x8] sm:$0xff]   ;;  %v2706_v17 = vmov 0.0   ;;  %v2589_v18 = vld [vmem:[%s3200_s5] sm:$0xff]   ;;  %vm2707_vm1 = vmmov 0   ;;  %v683_v56 = vlaneseq }
  0x1c   : > { %2421 = vmatprep.subr.bf16.mxu1 %v2706_v17  ;;  %2449 = vmatprep.subr.bf16.mxu0 %v2706_v17  ;;  %v2339_v26 = vld [vmem:[%s3223_s1] ss:$0 sm:$0xff]  ;;  %v2711_v54 = vmov 1983009808   ;;  %v2712_v59 = vmov 1934713408  }
  0x1d   : > { %s2338_s24 = sshll.u32 %s548_s17, 2  ;;  %2422 = vmatpush3.bf16.msra.mxu1 %v2588_v16  ;;  %2425 = vmatprep.mubr.msk.bf16.mxu1 %vm2707_vm1, %v2706_v17  ;;  %v2340_v28 = vld [vmem:[%s3224_s2] ss:$0 sm:$0xff]  ;;  %s2710_s17 = smov 104   ;;  %v681_v55 = vunpack.c.l.s4 %v2711_v54  ;;  %v684_v58 = vshrl.u32 %v683_v56, 7  ;;  %v698_v60 = vunpack.c.l.s4 %v2712_v59  ;;  %vm953_vm2 = vcmask 60416  }
  0x1e   : > { %s550_s26 = scalar_lea.vmem %s3222_s0, %s2338_s24  ;;  %2423 = vmatprep.subr.bf16.mxu1 %v2706_v17  ;;  %2451 = vmatprep.mubr.msk.bf16.mxu0 %vm2707_vm1, %v2706_v17  ;;  %v2590_v33 = vld [vmem:[%s3225_s3 + $0x8] sm:$0xff]   ;;  %v2591_v36 = vld [vmem:[%s3225_s3] sm:$0xff]   ;;  %vm1309_vm3 = vcmask 64512   ;;  %s2714_s24 = smov 96   ;;  %vm1549_vm4 = vcmask 1043456   ;;  %vm1880_vm5 = vcmask 130048  }
  0x1f   : > { %v572_v0 = vld [vmem:[%s550_s26] sm:$0xf]  ;;  %v682_v57 = vunpack.c.0.s8 %v681_v55  ;;  %v699_v62 = vunpack.c.0.s8 %v698_v60  ;;  %vm1882_vm6 = vcmask 195584   ;;  %vm1984_vm7 = vcmask 257024   ;;  %s2192_s1 = scalar_lea.sflag [#allocation7], %s544_s25  ;;  %s2718_s3 = smov [#allocation6]  }
  0x20   : > { %v1035_v1 = vld [vmem:[%s550_s26] sm:$0xf]  ;;  %v575_v2 = vunpack.c.l.bf16 %v572_v0  ;;  %s2709_s26 = smov 112  }
  0x21   : > { %v2859_v3 = vunpack.c.l.bf16 %v1035_v1  ;;  %2424 = vmatpush3.bf16.msra.mxu1 %v2589_v18  ;;  %v2341_v39 = vld [vmem:[%s3201_s6] ss:$0 sm:$0xff]  ;;  %v2912_v61 = vsub.s32 %v682_v57, %v684_v58  ;;  %v2918_v1 = vsub.s32 %v699_v62, %v684_v58 }
  0x22   : > { %v577_v4 = vsel %vm576_vm0, %v575_v2, 0.0  ;;  %2429 = vmatprep.subr.bf16.mxu1 %v2706_v17  ;;  %v2347_v46 = vld [vmem:[%s3226_s4] ss:$0 sm:$0xff]  ;;  %s2632_s4 = sshll.u32 %s2718_s3, 4  ;;  %s2633_s4 = int_to_ptr.vmem [resolvable:$false] %s2632_s4 }
  0x23   : > { %v1040_v5 = vsel %vm576_vm0, %v2859_v3, 0.0  ;;  %578 = vadd.xlane.f32.xlu0 %v577_v4 }
  0x27   : > { %1041 = vadd.xlane.f32.xlu0 %v1040_v5 }
  0xac   : > { %v579_v6 = vpop.xlane.xlu0 %578 }
  0xad   : > { %v581_v7 = vmul.f32 0.03125, %v579_v6 }
  0xaf   : > { %v582_v8 = vsub.f32 %v575_v2, %v581_v7 }
  0xb0   : > { %v1042_v9 = vpop.xlane.xlu0 %1041 }
  0xb1   : > { %v1044_v10 = vmul.f32 0.03125, %v1042_v9  ;;  %v583_v11 = vmul.f32 %v582_v8, %v582_v8 }
  0xb3   : > { %v1045_v12 = vsub.f32 %v2859_v3, %v1044_v10  ;;  %v584_v13 = vsel %vm576_vm0, %v583_v11, 0.0 }
  0xb4   : > { %585 = vadd.xlane.f32.xlu1 %v584_v13 }
  0xb5   : > { %v1046_v14 = vmul.f32 %v1045_v12, %v1045_v12 }
  0xb7   : > { %v1047_v15 = vsel %vm576_vm0, %v1046_v14, 0.0 }
  0xb8   : > { %1048 = vadd.xlane.f32.xlu1 %v1047_v15 }
 0x13d   : > { %v586_v19 = vpop.xlane.xlu1 %585 }
 0x13e   : > { %v587_v20 = vmul.f32 0.03125, %v586_v19 }
 0x140   : > { %v588_v21 = vadd.f32 1e-05, %v587_v20 }
 0x141   : > { %v1049_v22 = vpop.xlane.xlu1 %1048 }
 0x142   : > { %2604 = vrsqrt.f32 %v588_v21  ;;  %v1050_v23 = vmul.f32 0.03125, %v1049_v22 }
 0x144   : > { %v1051_v24 = vadd.f32 1e-05, %v1050_v23 }
 0x146   : > { %2606 = vrsqrt.f32 %v1051_v24 }
 0x14f   : > { %v2605_v25 = vpop.eup %2604 }
 0x150   : > { %v590_v27 = vmul.f32 %v2605_v25, %v582_v8 }
 0x152   : > { %v597_v29 = vmul.f32 %v2339_v26, %v590_v27 }
 0x153   : > { %v2607_v30 = vpop.eup %2606 }
 0x154   : > { %v1053_v31 = vmul.f32 %v2607_v30, %v1045_v12  ;;  %v604_v32 = vadd.f32 %v2340_v28, %v597_v29  ;;  %v2713_v12 = vmov 0  }
 0x156   : > { %v605_v34 = vpack.c.bf16 %v604_v32, %v604_v32  ;;  %v1060_v35 = vmul.f32 %v2339_v26, %v1053_v31 }
 0x158   : > { %2426 = vmatmul.mubr.msk.bf16.vlgmr.msra.gmra.mxu1 %vm576_vm0, %v605_v34  ;;  %v1067_v37 = vadd.f32 %v2340_v28, %v1060_v35 }
 0x159   : > { %2430 = vmatpush3.bf16.msra.mxu1 %v2590_v33  ;;  %2433 = vmatprep.mubr.msk.bf16.mxu1 %vm2707_vm1, %v2706_v17 }
 0x15a   : > { %2431 = vmatprep.subr.bf16.mxu1 %v2706_v17  ;;  %v1068_v38 = vpack.c.bf16 %v1067_v37, %v1067_v37 }
 0x15d   : > { %2432 = vmatpush3.bf16.msra.mxu1 %v2591_v36 }
 0x15e   : > { %2437 = vmatprep.subr.bf16.mxu1 %v2706_v17 }
 0x160   : > { %2434 = vmatmul.mubr.msk.bf16.vlgmr.msra.gmra.mxu1 %vm576_vm0, %v1068_v38 }
 0x161   : > { %2439 = vmatprep.mubr.msk.bf16.mxu1 %vm2707_vm1, %v2706_v17 }
 0x218   : > { %v666_v40 = vpop.f32.mrf.mxu1 }
 0x219   : > { %v667_v41 = vadd.f32 %v2341_v39, %v666_v40 }
 0x21a   : > { %v2427_v42 = vpop.f32.mrf.mxu1 }
 0x21b   : > { %v2904_v43 = vpack.c.bf16 %v667_v41, %v667_v41 }
 0x21c   : > { %v669_v44 = vpop.f32.mrf.mxu1 }
 0x21d   : > { %674 = vrot.lane.b32.xlu0 %v2904_v43, %s2708_s18  ;;  %676 = vrot.lane.b32.xlu1 %v2904_v43, %s2709_s26  ;;  %v686_v0 = vrot.slane %v2904_v43, %v2912_v61 }
 0x21e   : > { %v2428_v45 = vpop.f32.mrf.mxu1 }
 0x220   : > { %v1129_v47 = vpop.f32.mrf.mxu1 }
 0x221   : > { %v1130_v48 = vadd.f32 %v2347_v46, %v1129_v47  ;;  %678 = vrot.lane.b32.xlu1 %v2904_v43, %s2710_s17 }
 0x222   : > { %v2435_v49 = vpop.f32.mrf.mxu1 }
 0x223   : > { %v1135_v50 = vmul.f32 0.35355338, %v1130_v48 }
 0x224   : > { %v1132_v51 = vpop.f32.mrf.mxu1 }
 0x225   : > { %v1136_v52 = vpack.c.bf16 %v1135_v50, %v1135_v50 }
 0x226   : > { %v2436_v53 = vpop.f32.mrf.mxu1 }
 0x227   : > { %1140 = vrot.lane.b32.xlu0 %v1136_v52, %s2709_s26  ;;  %1138 = vrot.lane.b32.xlu1 %v1136_v52, %s2708_s18  ;;  %v1150_v22 = vrot.slane %v1136_v52, %v2912_v61  ;;  %s2337_s18 = sshll.u32 %s544_s25, 3  ;;  %s2381_s26 = sshll.u32 %s2696_s21, 7 }
 0x228   : > { %s546_s0 = scalar_lea.vmem [#allocation6], %s2337_s18  ;;  %s2634_s21 = scalar_lea.vmem %s2633_s4, 256 }
 0x229   : > { %s2206_s27 = sshll.u32 %s546_s0, 4  ;;  %s2207_s27 = int_to_ptr.vmem [resolvable:$true] %s2206_s27 }
 0x22a   : > { %s2628_s2 = scalar_lea.vmem %s2207_s27, 128  ;;  %p2635_p1 = scmp.lt.s32.totalorder %s2207_s27, %s2633_s4 }
 0x22b   : > { %1142 = vrot.lane.b32.xlu1 %v1136_v52, %s2710_s17  ;;  %s2716_s17 = smov 8   ;;  %p2629_p12 = scmp.ne.s32.totalorder %s2207_s27, %s2628_s2 }
 0x22c   : > { %p2636_p2 = scmp.lt.s32.totalorder %s2634_s21, %s2628_s2 }
 0x22d   : > { %p2630_p13 = pnand %p2629_p12, %p2839_p4 }
 0x22e   : > { %p2637_p3 = por %p2636_p2, %p2635_p1 }
 0x22f   : > { %p2631_p0 = pneg %p2630_p13 }
 0x231   : > { %p2638_p5 = pnand %p2637_p3, %p2631_p0 }
 0x28f   : > { %v2914_v63 = vpop.permute.xlu1 %676  ;;  %v2922_v6 = vpop.permute.xlu0 %674 }
 0x290   : > { %v694_v2 = vrot.slane %v2914_v63, %v2912_v61  ;;  %v720_v11 = vrot.slane %v2922_v6, %v2912_v61 }
 0x292   : > { %v695_v4 = vcombine.low %v686_v0, %v694_v2  ;;  %v696_v5 = vcombine.high %v686_v0, %v694_v2 }
 0x293   : > { %v2924_v7 = vpop.permute.xlu1 %678 }
 0x294   : > { %v703_v8 = vrot.slane %v695_v4, %v2918_v1  ;;  %v710_v9 = vrot.slane %v696_v5, %v2918_v1  ;;  %v728_v10 = vrot.slane %v2924_v7, %v2912_v61 }
 0x296   : > { %v711_v13 = vcombine.high %v703_v8, %v2713_v12  ;;  %v712_v14 = vcombine.high %v710_v9, %v2713_v12  ;;  %v729_v15 = vcombine.low %v720_v11, %v728_v10  ;;  %v730_v16 = vcombine.high %v720_v11, %v728_v10 }
 0x297   : > { %v751_v18 = vshrl.u32 %v703_v8, 16  ;;  %v767_v25 = vshrl.u32 %v710_v9, 16 }
 0x298   : > { %v737_v19 = vrot.slane %v729_v15, %v2918_v1  ;;  %v744_v20 = vrot.slane %v730_v16, %v2918_v1  ;;  %v759_v24 = vshrl.u32 %v711_v13, 16  ;;  %v775_v26 = vshrl.u32 %v712_v14, 16 }
 0x299   : > { %v1139_v21 = vpop.permute.xlu1 %1138  ;;  %v1141_v23 = vpop.permute.xlu0 %1140 }
 0x29a   : > { %v1158_v27 = vrot.slane %v1141_v23, %v2912_v61  ;;  %v745_v28 = vcombine.high %v737_v19, %v2713_v12  ;;  %v746_v29 = vcombine.high %v744_v20, %v2713_v12  ;;  %v749_v30 = vpack.i.b16 %v737_v19, %v703_v8 }
 0x29b   : > { %v752_v31 = vshrl.u32 %v737_v19, 16  ;;  %v765_v32 = vpack.i.b16 %v744_v20, %v710_v9  ;;  %v768_v33 = vshrl.u32 %v744_v20, 16  ;;  %v1184_v52 = vrot.slane %v1139_v21, %v2912_v61 }
 0x29c   : > { %v1159_v34 = vcombine.low %v1150_v22, %v1158_v27  ;;  %v1160_v35 = vcombine.high %v1150_v22, %v1158_v27  ;;  %v757_v37 = vpack.i.b16 %v745_v28, %v711_v13  ;;  %v760_v38 = vshrl.u32 %v745_v28, 16 }
 0x29d   : > { %v753_v36 = vpack.i.b16 %v752_v31, %v751_v18  ;;  %v773_v39 = vpack.i.b16 %v746_v29, %v712_v14  ;;  %v1143_v40 = vpop.permute.xlu1 %1142  ;;  %v769_v41 = vpack.i.b16 %v768_v33, %v767_v25  ;;  %v776_v42 = vshrl.u32 %v746_v29, 16 }
 0x29e   : > { %v887_v44 = vcombine.low %v749_v30, %v765_v32  ;;  %v1167_v45 = vrot.slane %v1159_v34, %v2918_v1  ;;  %v761_v46 = vpack.i.b16 %v760_v38, %v759_v24  ;;  %v1174_v48 = vrot.slane %v1160_v35, %v2918_v1 }
 0x29f   : > { %v895_v47 = vcombine.low %v757_v37, %v773_v39  ;;  %v1192_v49 = vrot.slane %v1143_v40, %v2912_v61  ;;  %v777_v50 = vpack.i.b16 %v776_v42, %v775_v26  ;;  %v912_v51 = vcombine.low %v753_v36, %v769_v41 }
 0x2a0   : > { %v894_v53 = vrot.slane %v887_v44, %v2912_v61  ;;  %v1175_v55 = vcombine.high %v1167_v45, %v2713_v12  ;;  %v1176_v57 = vcombine.high %v1174_v48, %v2713_v12  ;;  %v1215_v2 = vshrl.u32 %v1167_v45, 16 }
 0x2a1   : > { %v902_v54 = vrot.slane %v895_v47, %v2912_v61  ;;  %v920_v56 = vcombine.low %v761_v46, %v777_v50  ;;  %v1193_v58 = vcombine.low %v1184_v52, %v1192_v49  ;;  %v1194_v60 = vcombine.high %v1184_v52, %v1192_v49 }
 0x2a2   : > { %v919_v62 = vrot.slane %v912_v51, %v2912_v61  ;;  %v1223_v8 = vshrl.u32 %v1175_v55, 16  ;;  %v1231_v9 = vshrl.u32 %v1174_v48, 16  ;;  %v1239_v13 = vshrl.u32 %v1176_v57, 16 }
 0x2a3   : > { %v903_v59 = vcombine.low %v894_v53, %v902_v54  ;;  %v927_v0 = vrot.slane %v920_v56, %v2912_v61  ;;  %v1201_v4 = vrot.slane %v1193_v58, %v2918_v1  ;;  %v1208_v10 = vrot.slane %v1194_v60, %v2918_v1 }
 0x2a5   : > { %v910_v5 = vrot.slane %v903_v59, %v2918_v1  ;;  %v928_v11 = vcombine.low %v919_v62, %v927_v0  ;;  %v1209_v14 = vcombine.high %v1201_v4, %v2713_v12  ;;  %v1216_v15 = vshrl.u32 %v1201_v4, 16 }
 0x2a6   : > { %v1210_v19 = vcombine.high %v1208_v10, %v2713_v12  ;;  %v1213_v20 = vpack.i.b16 %v1201_v4, %v1167_v45  ;;  %v1229_v24 = vpack.i.b16 %v1208_v10, %v1174_v48  ;;  %v1232_v26 = vshrl.u32 %v1208_v10, 16 }
 0x2a7   : > { %v911_v16 = vcombine.high %v910_v5, %v2713_v12  ;;  %v941_v18 = vshrl.u32 %v910_v5, 16  ;;  %v935_v21 = vrot.slane %v928_v11, %v2918_v1  ;;  %v1221_v22 = vpack.i.b16 %v1209_v14, %v1175_v55 }
 0x2a8   : > { %v1224_v23 = vshrl.u32 %v1209_v14, 16  ;;  %v1217_v25 = vpack.i.b16 %v1216_v15, %v1215_v2  ;;  %v1237_v27 = vpack.i.b16 %v1210_v19, %v1176_v57  ;;  %v1240_v28 = vshrl.u32 %v1210_v19, 16 }
 0x2a9   : > { %v936_v29 = vcombine.high %v935_v21, %v2713_v12  ;;  %v939_v30 = vpack.i.b16 %v935_v21, %v910_v5  ;;  %v942_v31 = vshrl.u32 %v935_v21, 16  ;;  %v949_v33 = vshrl.u32 %v911_v16, 16 }
 0x2aa   : > { %v1225_v32 = vpack.i.b16 %v1224_v23, %v1223_v8  ;;  %v1233_v34 = vpack.i.b16 %v1232_v26, %v1231_v9  ;;  %v1241_v35 = vpack.i.b16 %v1240_v28, %v1239_v13  ;;  %v1251_v36 = vcombine.low %v1221_v22, %v1237_v27 }
 0x2ab   : > { %v943_v37 = vpack.i.b16 %v942_v31, %v941_v18  ;;  %v947_v38 = vpack.i.b16 %v936_v29, %v911_v16  ;;  %v950_v39 = vshrl.u32 %v936_v29, 16  ;;  %954 = vst.msk [vmem:[#allocation2] sm:$0xf] %vm953_vm2, %v939_v30  ;;  %v1243_v40 = vcombine.low %v1213_v20, %v1229_v24 }
 0x2ac   : > { %v1268_v41 = vcombine.low %v1217_v25, %v1233_v34  ;;  %v1276_v42 = vcombine.low %v1225_v32, %v1241_v35  ;;  %v1258_v45 = vrot.slane %v1251_v36, %v2912_v61 }
 0x2ad   : > { %v951_v44 = vpack.i.b16 %v950_v39, %v949_v33  ;;  %955 = vst.msk [vmem:[#allocation2 + $0x4] sm:$0xf] %vm953_vm2, %v943_v37  ;;  %956 = vst.msk [vmem:[#allocation2 + $0x8] sm:$0xf] %vm953_vm2, %v947_v38  ;;  %v1250_v48 = vrot.slane %v1243_v40, %v2912_v61 }
 0x2ae   : > { %v1275_v46 = vrot.slane %v1268_v41, %v2912_v61  ;;  %v1283_v47 = vrot.slane %v1276_v42, %v2912_v61 }
 0x2af   : > { %957 = vst.msk [vmem:[#allocation2 + $0xc] sm:$0xf] %vm953_vm2, %v951_v44  ;;  %v1259_v50 = vcombine.low %v1250_v48, %v1258_v45 }
 0x2b0   : > { %v1284_v49 = vcombine.low %v1275_v46, %v1283_v47 }
 0x2b1   : > { %v1266_v56 = vrot.slane %v1259_v50, %v2918_v1 }
 0x2b2   : > { %v1305_v51 = vld [vmem:[#allocation2] sm:$0xf]  ;;  %v1291_v53 = vrot.slane %v1284_v49, %v2918_v1 }
 0x2b3   : > { %v1314_v52 = vsel %vm1309_vm3, %v1305_v51, 0  ;;  %v1267_v60 = vcombine.high %v1266_v56, %v2713_v12  ;;  %v1296_v4 = vshrl.u32 %v1266_v56, 16 }
 0x2b4   : > { %2438 = vmatpush3.bf16.xpose.msra.mxu1 %v1314_v52  ;;  %v1307_v54 = vld [vmem:[#allocation2 + $0x8] sm:$0xf]  ;;  %v1292_v57 = vcombine.high %v1291_v53, %v2713_v12  ;;  %v1306_v58 = vld [vmem:[#allocation2 + $0x4] sm:$0xf]  ;;  %v1295_v59 = vpack.i.b16 %v1291_v53, %v1266_v56  ;;  %v1297_v2 = vshrl.u32 %v1291_v53, 16 }
 0x2b5   : > { %v1406_v55 = vsel %vm1309_vm3, %v1307_v54, 0  ;;  %2443 = vmatprep.subr.bf16.mxu1 %v2706_v17  ;;  %v1360_v62 = vsel %vm1309_vm3, %v1306_v58, 0  ;;  %v1302_v11 = vshrl.u32 %v1267_v60, 16 }
 0x2b6   : > { %2450 = vmatpush3.bf16.xpose.msra.mxu0 %v1406_v55  ;;  %v1301_v0 = vpack.i.b16 %v1292_v57, %v1267_v60  ;;  %v1308_v5 = vld [vmem:[#allocation2 + $0xc] sm:$0xf]  ;;  %v1298_v8 = vpack.i.b16 %v1297_v2, %v1296_v4  ;;  %v1303_v10 = vshrl.u32 %v1292_v57, 16 }
 0x2b7   : > { %2461 = vmatprep.subr.bf16.mxu0 %v2706_v17  ;;  %v1452_v9 = vsel %vm1309_vm3, %v1308_v5, 0 }
 0x2b8   : > { %v1304_v13 = vpack.i.b16 %v1303_v10, %v1302_v11 }
 0x2bb   : > { %2440 = vmatmul.mubr.msk.bf16.vlgmr.msra.gmra.mxu1 %vm1309_vm3, %v1295_v59 }
 0x2bc   : > { %2444 = vmatpush3.bf16.xpose.msra.mxu1 %v1360_v62  ;;  %2445 = vmatprep.mubr.msk.bf16.mxu1 %vm2707_vm1, %v2706_v17 }
 0x2bd   : > { %2452 = vmatmul.mubr.msk.bf16.vlgmr.msra.gmra.mxu0 %vm1309_vm3, %v1301_v0  ;;  %2455 = vmatprep.subr.bf16.mxu1 %v2706_v17 }
 0x2be   : > { %2463 = vmatprep.mubr.msk.bf16.mxu0 %vm2707_vm1, %v2706_v17 }
 0x2c3   : > { %2446 = vmatmul.mubr.msk.bf16.vlgmr.msra.gmra.mxu1 %vm1309_vm3, %v1298_v8 }
 0x2c4   : > { %2456 = vmatpush3.bf16.xpose.msra.mxu1 %v1452_v9  ;;  %2457 = vmatprep.mubr.msk.bf16.mxu1 %vm2707_vm1, %v2706_v17 }
 0x2c5   : > { %2467 = vmatprep.subr.bf16.mxu1 %v2706_v17 }
 0x2cb   : > { %2458 = vmatmul.mubr.msk.bf16.vlgmr.msra.gmra.mxu1 %vm1309_vm3, %v1304_v13 }
 0x2cc   : > { %2469 = vmatprep.mubr.msk.bf16.mxu1 %vm2707_vm1, %v2706_v17 }
 0x37b   : > { %v1350_v14 = vpop.f32.mrf.mxu1 }
 0x37c   : > { %v1494_v15 = vsel %vm1309_vm3, %v1350_v14, -inf }
 0x37d   : > { %1495 = vmax.xlane.f32.xlu0 %v1494_v15  ;;  %v2441_v16 = vpop.f32.mrf.mxu1  ;;  %v1442_v18 = vpop.f32.mrf.mxu0 }
 0x37e   : > { %v1500_v21 = vsel %vm1309_vm3, %v1442_v18, -inf }
 0x37f   : > { %v1353_v19 = vpop.f32.mrf.mxu1  ;;  %v2453_v20 = vpop.f32.mrf.mxu0 }
 0x381   : > { %v2442_v22 = vpop.f32.mrf.mxu1  ;;  %1501 = vmax.xlane.f32.xlu0 %v1500_v21  ;;  %v1445_v23 = vpop.f32.mrf.mxu0 }
 0x383   : > { %v1396_v24 = vpop.f32.mrf.mxu1  ;;  %v2454_v25 = vpop.f32.mrf.mxu0 }
 0x384   : > { %v1497_v26 = vsel %vm1309_vm3, %v1396_v24, -inf }
 0x385   : > { %1498 = vmax.xlane.f32.xlu1 %v1497_v26  ;;  %v2447_v27 = vpop.f32.mrf.mxu1 }
 0x387   : > { %v1399_v28 = vpop.f32.mrf.mxu1 }
 0x389   : > { %v2448_v29 = vpop.f32.mrf.mxu1 }
 0x38b   : > { %v1488_v30 = vpop.f32.mrf.mxu1 }
 0x38c   : > { %v1503_v31 = vsel %vm1309_vm3, %v1488_v30, -inf }
 0x38d   : > { %v2459_v32 = vpop.f32.mrf.mxu1  ;;  %1504 = vmax.xlane.f32.xlu0 %v1503_v31 }
 0x38f   : > { %v1491_v33 = vpop.f32.mrf.mxu1 }
 0x391   : > { %v2460_v34 = vpop.f32.mrf.mxu1 }
 0x396   : > { %781 = vrot.lane.b32.xlu1 %v2922_v6, %s2714_s24 }
 0x39a   : > { %783 = vrot.lane.b32.xlu1 %v2914_v63, %s2714_s24 }
 0x39e   : > { %785 = vrot.lane.b32.xlu1 %v2924_v7, %s2714_s24 }
 0x3a3   : > { %779 = vrot.lane.b32.xlu0 %v2904_v43, %s2714_s24  ;;  %s2717_s24 = smov 24  }
 0x406   : > { %v1496_v35 = vpop.xlane.xlu0 %1495 }
 0x407   : > { %v1506_v36 = vsub.f32 %v1350_v14, %v1496_v35 }
 0x409   : > { %v1510_v37 = vmul.f32 1.442695, %v1506_v36 }
 0x40a   : > { %v1502_v38 = vpop.xlane.xlu0 %1501 }
 0x40b   : > { %2608 = vpow2.f32 %v1510_v37  ;;  %v1508_v39 = vsub.f32 %v1442_v18, %v1502_v38 }
 0x40d   : > { %v1514_v40 = vmul.f32 1.442695, %v1508_v39 }
 0x40e   : > { %v1499_v41 = vpop.xlane.xlu1 %1498 }
 0x40f   : > { %2610 = vpow2.f32 %v1514_v40  ;;  %v1507_v42 = vsub.f32 %v1396_v24, %v1499_v41 }
 0x411   : > { %v1512_v44 = vmul.f32 1.442695, %v1507_v42 }
 0x412   : > { %v782_v45 = vpop.permute.xlu1 %781 }
 0x413   : > { %2612 = vpow2.f32 %v1512_v44  ;;  %v828_v48 = vrot.slane %v782_v45, %v2912_v61 }
 0x416   : > { %v784_v6 = vpop.permute.xlu1 %783  ;;  %v1505_v46 = vpop.xlane.xlu0 %1504 }
 0x417   : > { %v1509_v63 = vsub.f32 %v1488_v30, %v1505_v46  ;;  %v802_v51 = vrot.slane %v784_v6, %v2912_v61 }
 0x418   : > { %v2998_v47 = vpop.eup %2608 }
 0x419   : > { %v1516_v7 = vmul.f32 1.442695, %v1509_v63  ;;  %v1518_v43 = vsel %vm1309_vm3, %v2998_v47, 0.0 }
 0x41a   : > { %v786_v49 = vpop.permute.xlu1 %785  ;;  %1519 = vadd.xlane.f32.xlu0 %v1518_v43  ;;  %v780_v50 = vpop.permute.xlu0 %779 }
 0x41b   : > { %2614 = vpow2.f32 %v1516_v7  ;;  %v836_v52 = vrot.slane %v786_v49, %v2912_v61  ;;  %v794_v53 = vrot.slane %v780_v50, %v2912_v61 }
 0x41c   : > { %v3006_v54 = vpop.eup %2610 }
 0x41d   : > { %v837_v55 = vcombine.low %v828_v48, %v836_v52  ;;  %v838_v56 = vcombine.high %v828_v48, %v836_v52  ;;  %v803_v57 = vcombine.low %v794_v53, %v802_v51  ;;  %v804_v58 = vcombine.high %v794_v53, %v802_v51 }
 0x41e   : > { %v1524_v59 = vsel %vm1309_vm3, %v3006_v54, 0.0 }
 0x41f   : > { %v845_v60 = vrot.slane %v837_v55, %v2918_v1  ;;  %v852_v62 = vrot.slane %v838_v56, %v2918_v1  ;;  %v811_v0 = vrot.slane %v803_v57, %v2918_v1  ;;  %v818_v2 = vrot.slane %v804_v58, %v2918_v1  ;;  %1525 = vadd.xlane.f32.xlu0 %v1524_v59 }
 0x420   : > { %v3016_v10 = vpop.eup %2612 }
 0x421   : > { %v853_v4 = vcombine.high %v845_v60, %v2713_v12  ;;  %v854_v5 = vcombine.high %v852_v62, %v2713_v12  ;;  %v860_v8 = vshrl.u32 %v845_v60, 16  ;;  %v876_v9 = vshrl.u32 %v852_v62, 16 }
 0x422   : > { %v819_v11 = vcombine.high %v811_v0, %v2713_v12  ;;  %v820_v13 = vcombine.high %v818_v2, %v2713_v12  ;;  %v857_v14 = vpack.i.b16 %v845_v60, %v811_v0  ;;  %v859_v15 = vshrl.u32 %v811_v0, 16 }
 0x423   : > { %v868_v16 = vshrl.u32 %v853_v4, 16  ;;  %v884_v18 = vshrl.u32 %v854_v5, 16  ;;  %v873_v19 = vpack.i.b16 %v852_v62, %v818_v2  ;;  %v875_v20 = vshrl.u32 %v818_v2, 16 }
 0x424   : > { %v861_v21 = vpack.i.b16 %v860_v8, %v859_v15  ;;  %v865_v22 = vpack.i.b16 %v853_v4, %v819_v11  ;;  %v867_v23 = vshrl.u32 %v819_v11, 16  ;;  %v881_v24 = vpack.i.b16 %v854_v5, %v820_v13 }
 0x425   : > { %v877_v25 = vpack.i.b16 %v876_v9, %v875_v20  ;;  %v883_v26 = vshrl.u32 %v820_v13, 16  ;;  %v958_v27 = vcombine.low %v857_v14, %v873_v19  ;;  %v1521_v28 = vsel %vm1309_vm3, %v3016_v10, 0.0 }
 0x426   : > { %v869_v29 = vpack.i.b16 %v868_v16, %v867_v23  ;;  %v966_v30 = vcombine.low %v865_v22, %v881_v24  ;;  %1522 = vadd.xlane.f32.xlu1 %v1521_v28 }
 0x427   : > { %v885_v31 = vpack.i.b16 %v884_v18, %v883_v26  ;;  %v983_v32 = vcombine.low %v861_v21, %v877_v25  ;;  %v965_v34 = vrot.slane %v958_v27, %v2912_v61 }
 0x428   : > { %v3022_v33 = vpop.eup %2614  ;;  %v973_v35 = vrot.slane %v966_v30, %v2912_v61 }
 0x429   : > { %v991_v36 = vcombine.low %v869_v29, %v885_v31  ;;  %v1527_v37 = vsel %vm1309_vm3, %v3022_v33, 0.0  ;;  %v990_v39 = vrot.slane %v983_v32, %v2912_v61 }
 0x42a   : > { %v974_v38 = vcombine.low %v965_v34, %v973_v35  ;;  %1528 = vadd.xlane.f32.xlu0 %v1527_v37 }
 0x42b   : > { %v998_v40 = vrot.slane %v991_v36, %v2912_v61 }
 0x42c   : > { %v981_v41 = vrot.slane %v974_v38, %v2918_v1 }
 0x42d   : > { %v999_v42 = vcombine.low %v990_v39, %v998_v40 }
 0x42e   : > { %v982_v44 = vcombine.high %v981_v41, %v2713_v12  ;;  %v1012_v63 = vshrl.u32 %v981_v41, 16 }
 0x42f   : > { %v1006_v45 = vrot.slane %v999_v42, %v2918_v1 }
 0x430   : > { %v1020_v49 = vshrl.u32 %v982_v44, 16 }
 0x431   : > { %v1007_v6 = vcombine.high %v1006_v45, %v2713_v12  ;;  %v1010_v46 = vpack.i.b16 %v1006_v45, %v981_v41  ;;  %v1013_v7 = vshrl.u32 %v1006_v45, 16 }
 0x433   : > { %v1014_v43 = vpack.i.b16 %v1013_v7, %v1012_v63  ;;  %v1018_v48 = vpack.i.b16 %v1007_v6, %v982_v44  ;;  %v1021_v50 = vshrl.u32 %v1007_v6, 16  ;;  %1024 = vst.msk [vmem:[#allocation3] sm:$0xf] %vm953_vm2, %v1010_v46  ;;  %v2592_v6 = vld [vmem:[%s3202_s7 + $0x8] sm:$0xff]  }
 0x435   : > { %v1022_v51 = vpack.i.b16 %v1021_v50, %v1020_v49  ;;  %1025 = vst.msk [vmem:[#allocation3 + $0x4] sm:$0xf] %vm953_vm2, %v1014_v43  ;;  %1026 = vst.msk [vmem:[#allocation3 + $0x8] sm:$0xf] %vm953_vm2, %v1018_v48 }
 0x437   : > { %1027 = vst.msk [vmem:[#allocation3 + $0xc] sm:$0xf] %vm953_vm2, %v1022_v51 }
 0x43a   : > { %v1542_v52 = vld [vmem:[#allocation3] sm:$0xf] }
 0x43b   : > { %v1551_v12 = vsel %vm1549_vm4, %v1542_v52, 0 }
 0x43c   : > { %2462 = vmatpush3.bf16.msra.mxu0 %v1551_v12  ;;  %v1543_v53 = vld [vmem:[#allocation3 + $0x4] sm:$0xf]  ;;  %v1544_v0 = vld [vmem:[#allocation3 + $0x8] sm:$0xf]  ;;  %v2593_v12 = vld [vmem:[%s3202_s7] sm:$0xff]  }
 0x43d   : > { %v1597_v55 = vsel %vm1549_vm4, %v1543_v53, 0  ;;  %2473 = vmatprep.subr.bf16.mxu0 %v2706_v17  ;;  %v1643_v5 = vsel %vm1549_vm4, %v1544_v0, 0 }
 0x43e   : > { %2468 = vmatpush3.bf16.msra.mxu1 %v1597_v55  ;;  %v1545_v13 = vld [vmem:[#allocation3 + $0xc] sm:$0xf] }
 0x43f   : > { %2479 = vmatprep.subr.bf16.mxu1 %v2706_v17  ;;  %v1689_v16 = vsel %vm1549_vm4, %v1545_v13, 0 }
 0x4a3   : > { %v1520_v56 = vpop.xlane.xlu0 %1519 }
 0x4a4   : > { %2616 = vrcp.f32 %v1520_v56 }
 0x4a8   : > { %v1526_v57 = vpop.xlane.xlu0 %1525 }
 0x4a9   : > { %2618 = vrcp.f32 %v1526_v57 }
 0x4af   : > { %v1523_v58 = vpop.xlane.xlu1 %1522 }
 0x4b0   : > { %2620 = vrcp.f32 %v1523_v58 }
 0x4b1   : > { %v2617_v59 = vpop.eup %2616 }
 0x4b2   : > { %v1531_v60 = vmul.f32 %v2617_v59, %v2998_v47 }
 0x4b3   : > { %v1529_v62 = vpop.xlane.xlu0 %1528 }
 0x4b4   : > { %2622 = vrcp.f32 %v1529_v62  ;;  %v1538_v2 = vpack.c.bf16 %v1531_v60, %v1531_v60 }
 0x4b6   : > { %v2619_v4 = vpop.eup %2618  ;;  %2464 = vmatmul.mubr.msk.bf16.vlgmr.msra.gmra.mxu0 %vm1309_vm3, %v1538_v2 }
 0x4b7   : > { %2474 = vmatpush3.bf16.msra.mxu0 %v1643_v5  ;;  %2475 = vmatprep.mubr.msk.bf16.mxu0 %vm2707_vm1, %v2706_v17  ;;  %v1535_v8 = vmul.f32 %v2619_v4, %v3006_v54 }
 0x4b8   : > { %2485 = vmatprep.subr.bf16.mxu0 %v2706_v17 }
 0x4b9   : > { %v1540_v9 = vpack.c.bf16 %v1535_v8, %v1535_v8 }
 0x4bd   : > { %v2621_v11 = vpop.eup %2620 }
 0x4be   : > { %v1533_v47 = vmul.f32 %v2621_v11, %v3016_v10  ;;  %2476 = vmatmul.mubr.msk.bf16.vlgmr.msra.gmra.mxu0 %vm1309_vm3, %v1540_v9 }
 0x4bf   : > { %2489 = vmatprep.mubr.msk.bf16.mxu0 %vm2707_vm1, %v2706_v17  ;;  %2486 = vmatpush3.bf16.msra.mxu0 %v2592_v6  ;;  %v2597_v6 = vld [vmem:[%s3208_s13 + $0x30] sm:$0xff]  }
 0x4c0   : > { %v1539_v14 = vpack.c.bf16 %v1533_v47, %v1533_v47  ;;  %2487 = vmatprep.subr.bf16.mxu0 %v2706_v17 }
 0x4c1   : > { %v2623_v15 = vpop.eup %2622 }
 0x4c2   : > { %2470 = vmatmul.mubr.msk.bf16.vlgmr.msra.gmra.mxu1 %vm1309_vm3, %v1539_v14  ;;  %v1537_v54 = vmul.f32 %v2623_v15, %v3022_v33 }
 0x4c3   : > { %2480 = vmatpush3.bf16.msra.mxu1 %v1689_v16  ;;  %2481 = vmatprep.mubr.msk.bf16.mxu1 %vm2707_vm1, %v2706_v17 }
 0x4c4   : > { %2493 = vmatprep.subr.bf16.mxu1 %v2706_v17  ;;  %v1541_v10 = vpack.c.bf16 %v1537_v54, %v1537_v54  ;;  %2488 = vmatpush3.bf16.msra.mxu0 %v2593_v12 }
 0x4c5   : > { %2501 = vmatprep.subr.bf16.mxu0 %v2706_v17 }
 0x4ca   : > { %2482 = vmatmul.mubr.msk.bf16.vlgmr.msra.gmra.mxu1 %vm1309_vm3, %v1541_v10  ;;  %v2361_v10 = vld [vmem:[%s3203_s8] ss:$0 sm:$0xff] }
 0x4cb   : > { %2497 = vmatprep.mubr.msk.bf16.mxu1 %vm2707_vm1, %v2706_v17 }
 0x576   : > { %v1587_v18 = vpop.f32.mrf.mxu0 }
 0x578   : > { %v2465_v19 = vpop.f32.mrf.mxu0 }
 0x57a   : > { %v1590_v20 = vpop.f32.mrf.mxu0 }
 0x57b   : > { %v2367_v20 = vld [vmem:[%s3209_s14] ss:$0 sm:$0xff] }
 0x57c   : > { %v2466_v21 = vpop.f32.mrf.mxu0 }
 0x57e   : > { %v1679_v22 = vpop.f32.mrf.mxu0 }
 0x57f   : > { %v1731_v30 = vcombine.low %v1587_v18, %v1679_v22  ;;  %v1732_v31 = vcombine.high %v1587_v18, %v1679_v22 }
 0x580   : > { %v2477_v23 = vpop.f32.mrf.mxu0 }
 0x581   : > { %v1739_v36 = vrot.slane %v1731_v30, %v2912_v61  ;;  %v1746_v37 = vrot.slane %v1732_v31, %v2912_v61 }
 0x582   : > { %v1633_v24 = vpop.f32.mrf.mxu1  ;;  %v1682_v25 = vpop.f32.mrf.mxu0 }
 0x584   : > { %v2471_v26 = vpop.f32.mrf.mxu1  ;;  %v2478_v27 = vpop.f32.mrf.mxu0 }
 0x586   : > { %v1636_v28 = vpop.f32.mrf.mxu1 }
 0x588   : > { %v2472_v29 = vpop.f32.mrf.mxu1 }
 0x58a   : > { %v1725_v32 = vpop.f32.mrf.mxu1 }
 0x58b   : > { %v1747_v33 = vcombine.low %v1633_v24, %v1725_v32  ;;  %v1748_v34 = vcombine.high %v1633_v24, %v1725_v32  ;;  %v2594_v32 = vld [vmem:[%s3206_s11 + $0x8] sm:$0xff]  }
 0x58c   : > { %v2483_v35 = vpop.f32.mrf.mxu1  ;;  %2494 = vmatpush3.bf16.msra.mxu1 %v2594_v32 }
 0x58d   : > { %v1755_v38 = vrot.slane %v1747_v33, %v2912_v61  ;;  %v1762_v39 = vrot.slane %v1748_v34, %v2912_v61  ;;  %2495 = vmatprep.subr.bf16.mxu1 %v2706_v17 }
 0x58e   : > { %v1728_v40 = vpop.f32.mrf.mxu1 }
 0x58f   : > { %v1763_v41 = vcombine.low %v1739_v36, %v1755_v38  ;;  %v1764_v42 = vcombine.high %v1739_v36, %v1755_v38  ;;  %v1779_v44 = vcombine.low %v1746_v37, %v1762_v39  ;;  %v1780_v45 = vcombine.high %v1746_v37, %v1762_v39  ;;  %v2365_v37 = vld [vmem:[%s3204_s9] ss:$0 sm:$0xff] }
 0x590   : > { %v2484_v46 = vpop.f32.mrf.mxu1  ;;  %v2366_v39 = vld [vmem:[%s3205_s10] ss:$0 sm:$0xff] }
 0x591   : > { %v1771_v63 = vrot.slane %v1763_v41, %v2918_v1  ;;  %v1778_v7 = vrot.slane %v1764_v42, %v2918_v1  ;;  %v1787_v43 = vrot.slane %v1779_v44, %v2918_v1  ;;  %v1794_v48 = vrot.slane %v1780_v45, %v2918_v1  ;;  %v2596_v45 = vld [vmem:[%s3208_s13 + $0x38] sm:$0xff]   ;;  %v2598_v46 = vld [vmem:[%s3208_s13 + $0x28] sm:$0xff]  }
 0x593   : > { %v1799_v49 = vcombine.low %v1771_v63, %v1778_v7  ;;  %v2359_v50 = vcombine.high %v1771_v63, %v1778_v7  ;;  %v1815_v51 = vcombine.low %v1787_v43, %v1794_v48  ;;  %v2360_v52 = vcombine.high %v1787_v43, %v1794_v48  ;;  %v2599_v63 = vld [vmem:[%s3208_s13 + $0x20] sm:$0xff]   ;;  %v2600_v7 = vld [vmem:[%s3208_s13 + $0x18] sm:$0xff]   ;;  %v2601_v43 = vld [vmem:[%s3208_s13 + $0x10] sm:$0xff]  }
 0x594   : > { %v2602_v48 = vld [vmem:[%s3208_s13 + $0x8] sm:$0xff]  }
 0x595   : > { %v1806_v53 = vrot.slane %v1799_v49, %v2912_v61  ;;  %v1814_v55 = vrot.slane %v2359_v50, %v2912_v61  ;;  %v1822_v56 = vrot.slane %v1815_v51, %v2912_v61  ;;  %v1830_v57 = vrot.slane %v2360_v52, %v2912_v61  ;;  %v2603_v49 = vld [vmem:[%s3208_s13] sm:$0xff]  }
 0x596   : > { %v2368_v50 = vld [vmem:[%s3207_s12] ss:$0 sm:$0xff] }
 0x597   : > { %v1832_v58 = vcombine.high %v1806_v53, %v1814_v55  ;;  %v1848_v59 = vcombine.high %v1822_v56, %v1830_v57  ;;  %v1831_v60 = vcombine.low %v1806_v53, %v1814_v55  ;;  %v1847_v62 = vcombine.low %v1822_v56, %v1830_v57 }
 0x599   : > { %v1846_v0 = vrot.slane %v1832_v58, %v2918_v1  ;;  %v1862_v2 = vrot.slane %v1848_v59, %v2918_v1  ;;  %v1839_v4 = vrot.slane %v1831_v60, %v2918_v1  ;;  %v1855_v5 = vrot.slane %v1847_v62, %v2918_v1 }
 0x59b   : > { %v1865_v8 = vcombine.low %v1846_v0, %v1862_v2  ;;  %v1864_v9 = vcombine.high %v1839_v4, %v1855_v5  ;;  %v1863_v11 = vcombine.low %v1839_v4, %v1855_v5  ;;  %v1866_v61 = vcombine.high %v1846_v0, %v1862_v2 }
 0x59d   : > { %1872 = vrot.lane.b32.xlu1 %v1865_v8, %s2715_s29  ;;  %1868 = vrot.lane.b32.xlu0 %v1864_v9, %s2716_s17 }
 0x5a1   : > { %1876 = vrot.lane.b32.xlu1 %v1866_v61, %s2717_s24  ;;  %s3154_s24 = scalar_lea.hbm %s3210_s15, %s2381_s26 }
 0x60f   : > { %v1873_v47 = vpop.permute.xlu1 %1872  ;;  %v1869_v13 = vpop.permute.xlu0 %1868 }
 0x610   : > { %v1879_v14 = vsel %vm1309_vm3, %v1863_v11, %v1869_v13 }
 0x611   : > { %v1881_v16 = vsel %vm1880_vm5, %v1879_v14, %v1873_v47 }
 0x613   : > { %v1877_v15 = vpop.permute.xlu1 %1876 }
 0x614   : > { %v1883_v54 = vsel %vm1882_vm6, %v1881_v16, %v1877_v15 }
 0x615   : > { %v1884_v1 = vpack.c.bf16 %v1883_v54, %v1883_v54 }
 0x617   : > { %2490 = vmatmul.mubr.msk.bf16.vlgmr.msra.gmra.mxu0 %vm576_vm0, %v1884_v1 }
 0x618   : > { %2517 = vmatprep.mubr.msk.bf16.mxu0 %vm2707_vm1, %v2706_v17  ;;  %2502 = vmatpush3.bf16.msra.mxu0 %v2596_v45 }
 0x619   : > { %2503 = vmatprep.subr.bf16.mxu0 %v2706_v17 }
 0x61c   : > { %2504 = vmatpush3.bf16.msra.mxu0 %v2597_v6 }
 0x61d   : > { %2505 = vmatprep.subr.bf16.mxu0 %v2706_v17 }
 0x620   : > { %2506 = vmatpush3.bf16.msra.mxu0 %v2598_v46 }
 0x621   : > { %2507 = vmatprep.subr.bf16.mxu0 %v2706_v17 }
 0x624   : > { %2508 = vmatpush3.bf16.msra.mxu0 %v2599_v63 }
 0x625   : > { %2509 = vmatprep.subr.bf16.mxu0 %v2706_v17 }
 0x628   : > { %2510 = vmatpush3.bf16.msra.mxu0 %v2600_v7 }
 0x629   : > { %2511 = vmatprep.subr.bf16.mxu0 %v2706_v17 }
 0x62c   : > { %2512 = vmatpush3.bf16.msra.mxu0 %v2601_v43 }
 0x62d   : > { %2513 = vmatprep.subr.bf16.mxu0 %v2706_v17 }
 0x630   : > { %2514 = vmatpush3.bf16.msra.mxu0 %v2602_v48 }
 0x631   : > { %2515 = vmatprep.subr.bf16.mxu0 %v2706_v17 }
 0x634   : > { %2516 = vmatpush3.bf16.msra.mxu0 %v2603_v49 }
 0x6d7   : > { %v1945_v18 = vpop.f32.mrf.mxu0 }
 0x6d8   : > { %v1946_v19 = vadd.f32 %v2361_v10, %v1945_v18 }
 0x6d9   : > { %v2491_v21 = vpop.f32.mrf.mxu0 }
 0x6da   : > { %v1951_v22 = vadd.f32 %v1946_v19, %v2859_v3  ;;  %v2595_v3 = vld [vmem:[%s3206_s11] sm:$0xff]  }
 0x6db   : > { %v1948_v23 = vpop.f32.mrf.mxu0  ;;  %2496 = vmatpush3.bf16.msra.mxu1 %v2595_v3 }
 0x6dc   : > { %v1993_v24 = vadd.f32 %v2367_v20, %v1951_v22  ;;  %v1954_v25 = vsel %vm576_vm0, %v1951_v22, 0.0 }
 0x6dd   : > { %1955 = vadd.xlane.f32.xlu1 %v1954_v25  ;;  %v2492_v26 = vpop.f32.mrf.mxu0 }
 0x6de   : > { %1995 = vst.msk [vmem:[#allocation5] sm:$0xff] %vm576_vm0, %v1993_v24 }
 0x6e5   : > { %v2079_v5 = vld [vmem:[#allocation5] sm:$0xff] }
 0x766   : > { %v1956_v27 = vpop.xlane.xlu1 %1955 }
 0x767   : > { %v1957_v28 = vmul.f32 0.03125, %v1956_v27 }
 0x769   : > { %v1958_v29 = vsub.f32 %v1951_v22, %v1957_v28 }
 0x76b   : > { %v1959_v30 = vmul.f32 %v1958_v29, %v1958_v29 }
 0x76d   : > { %v1960_v31 = vsel %vm576_vm0, %v1959_v30, 0.0 }
 0x76e   : > { %1961 = vadd.xlane.f32.xlu0 %v1960_v31 }
 0x7f7   : > { %v1962_v33 = vpop.xlane.xlu0 %1961 }
 0x7f8   : > { %v1963_v34 = vmul.f32 0.03125, %v1962_v33 }
 0x7fa   : > { %v1964_v35 = vadd.f32 1e-05, %v1963_v34 }
 0x7fc   : > { %2624 = vrsqrt.f32 %v1964_v35 }
 0x809   : > { %v2625_v36 = vpop.eup %2624 }
 0x80a   : > { %v1966_v38 = vmul.f32 %v2625_v36, %v1958_v29 }
 0x80c   : > { %v1973_v40 = vmul.f32 %v2365_v37, %v1966_v38 }
 0x80e   : > { %v1980_v41 = vadd.f32 %v2366_v39, %v1973_v40 }
 0x810   : > { %v1981_v42 = vpack.c.bf16 %v1980_v41, %v1980_v41 }
 0x812   : > { %1985 = vst.msk [vmem:[#allocation4] sm:$0xf] %vm1984_vm7, %v1981_v42 }
 0x819   : > { %v2000_v44 = vld [vmem:[#allocation4] sm:$0xf] }
 0x81a   : > { %2498 = vmatmul.mubr.msk.bf16.vlgmr.msra.gmra.mxu1 %vm576_vm0, %v2000_v44 }
 0x8da   : > { %v2062_v51 = vpop.f32.mrf.mxu1 }
 0x8db   : > { %v2063_v52 = vadd.f32 %v2368_v50, %v2062_v51 }
 0x8dc   : > { %v2499_v12 = vpop.f32.mrf.mxu1 }
 0x8dd   : > { %v2069_v53 = vmul.f32 0.044715, %v2063_v52  ;;  %v2068_v17 = vmul.f32 0.5, %v2063_v52 }
 0x8de   : > { %v2065_v55 = vpop.f32.mrf.mxu1 }
 0x8df   : > { %v2070_v56 = vmul.f32 %v2069_v53, %v2063_v52 }
 0x8e0   : > { %v2500_v57 = vpop.f32.mrf.mxu1 }
 0x8e1   : > { %v2071_v58 = vmul.f32 %v2070_v56, %v2063_v52 }
 0x8e3   : > { %v2072_v59 = vadd.f32 %v2071_v58, %v2063_v52 }
 0x8e5   : > { %v2073_v60 = vmul.f32 0.7978846, %v2072_v59 }
 0x8e7   : > { %2626 = vtanh.f32 %v2073_v60 }
 0x8f4   : > { %v2627_v62 = vpop.eup %2626 }
 0x8f5   : > { %v2075_v0 = vadd.f32 1.0, %v2627_v62 }
 0x8f7   : > { %v2076_v2 = vmul.f32 %v2075_v0, %v2068_v17 }
 0x8f9   : > { %v2077_v4 = vpack.c.bf16 %v2076_v2, %v2076_v2 }
 0x8fb   : > { %2518 = vmatmul.mubr.bf16.vlgmr.msra.gmra.mxu0 %v2077_v4 }
 0x9bb   : > { %v2178_v8 = vpop.f32.mrf.mxu0 }
 0x9bc   : > { %v2184_v9 = vadd.f32 %v2178_v8, %v2079_v5 }
 0x9bd   : > { %v2519_v11 = vpop.f32.mrf.mxu0 }
 0x9be   : > { %2185 = vst.msk [vmem:[#allocation5] sm:$0xff] %vm576_vm0, %v2184_v9 }
 0x9bf   : > { %v2181_v61 = vpop.f32.mrf.mxu0 }
 0x9c1   : > { %v2520_v47 = vpop.f32.mrf.mxu0 }
 0x9c5   : > { %v2189_v13 = vld [vmem:[#allocation5] sm:$0xff] }
 0x9c6   : > { %2190 = vst.msk [vmem:[%s546_s0] sm:$0xff] %vm576_vm0, %v2189_v13 }
 0x9c7   : > { %2641 = shalt.err (!%p2638_p5)
}
 0x9c8   : > { %s2642_s18 = scalar_lea.hbm %s3154_s24, 128  ;;  %s2646_s3 = scalar_lea.hbm %s3210_s15, 256 }
 0x9c9   : > { %p2643_p6 = scmp.ne.s32.totalorder %s3154_s24, %s2642_s18  ;;  %p2647_p10 = scmp.lt.s32.totalorder %s3154_s24, %s3210_s15 }
 0x9ca   : > { %p2648_p11 = scmp.lt.s32.totalorder %s2646_s3, %s2642_s18 }
 0x9cb   : > { %p2644_p7 = pnand %p2643_p6, %p2839_p4 }
 0x9cc   : > { %p2649_p12 = por %p2648_p11, %p2647_p10 }
 0x9cd   : > { %p2645_p9 = pneg %p2644_p7 }
 0x9cf   : > { %p2650_p13 = pnand %p2649_p12, %p2645_p9 }
 0x9d1   : > { %2653 = shalt.err (!%p2650_p13)
}
 0x9d2   : > { %2521 = dma.vmem_to_hbm [thread:$0]  (%p2839_p4), %s2207_s27, 128, %s3154_s24, %s2192_s1  }
 0x9d3 PF: > { %s3227_s2 = sld [smem:[#allocation9_spill]]  ;;  %p2527_p0 = scmp.ge.s32.totalorder %s2704_s23, 2 }
 0x9d5   : > { %p2524_p1 = pnand %p2527_p0, %p2846_p8 }
 0x9d7   : > { %p2525_p2 = pneg %p2524_p1 }
 0x9d9   : > { %s2218_s4 = sand.u32 1, %s3227_s2  }
 0x9da   : > { %s2219_s17 = scalar_lea.sflag [#allocation7], %s2218_s4 }
 0x9db   : > { %2679 = dma.done.wait (%p2525_p2), %s2219_s17, 128  }
 0x9dc   : > { %2681 = vsyncadd (%p2525_p2), %s2219_s17, 4294967168  ;;  %s28_s23 = sadd.s32 1, %s2704_s23   ;;  %s3228_s1 = sld [smem:[#allocation10_spill]] }
 0x9dd   : > { %p25_p3 = scmp.ge.s32.totalorder %s28_s23, 4   ;;  %s3229_s18 = smov %s2688_s19 }
 0x9de   : > { %s3230_s19 = smov %s2692_s20  ;;  %s3231_s20 = smov %s2852_s16 }
 0x9df   : > { %s3232_s21 = smov %s2700_s22  ;;  %27 = sbr.rel (!%p25_p3) target bundleno = 10 (0xa), region = 141 }
 0x9e2   : > { %s3233_s22 = smov %s3228_s1 }
 0x9e4   :  { %2224 = vsyncpa [#allocation7], 1 }
 0x9e5   :  { %2226 = vsyncpa [#allocation7 + $0x1], 1 }

</bundles_post_ra>
